<compile_context>
chip_gen: v7x
topology: tpu7x:2x2x1
jax: 0.10.0
libtpu: 0.0.40
codegen_flags: <defaults>
</compile_context>

<pallas_src>
import functools

import jax
import jax.numpy as jnp
from jax.experimental import pallas as pl
from jax.experimental.pallas import tpu as pltpu


def _round_up(x, m):
    return ((x + m - 1) // m) * m


def _vmem_budget_bytes():
    """~75% of this generation's physical VMEM (compiler-scratch headroom)."""
    try:
        cap = int(pltpu.get_tpu_info().vmem_capacity_bytes)
        if cap <= 0:
            raise ValueError("bad vmem capacity")
    except Exception:
        cap = 64 * 1024 * 1024          # conservative: v7x per-core physical
    return (cap * 3) // 4


# ---------------------------------------------------------------------------
# Kernels
# ---------------------------------------------------------------------------

def _gelu(g, approximate):
    if approximate:
        # tanh approximation -> EUP (separate VLIW slot, ~free under the MXU).
        return jax.nn.gelu(g, approximate=True)
    # Exact erf GELU, same as torch.nn.GELU() default.
    return 0.5 * g * (1.0 + jax.lax.erf(g * jnp.float32(0.7071067811865476)))


def geglu_resident_kernel(x_ref, w12_ref, b12_ref, w2_ref, b2_ref, o_ref, *,
                          approximate_gelu):
    """All weights VMEM-resident; grid iterates batch (M) tiles only."""
    # Cast x to the weight dtype in-kernel (bf16 MXU operands on the perf
    # path) instead of materializing a cast copy of x in HBM.
    x = x_ref[...].astype(w12_ref.dtype)

    # Fused input projection: (bm, D) @ (D, 2*Hp) -> (bm, 2*Hp), f32 accum.
    zg = jnp.dot(x, w12_ref[...], preferred_element_type=jnp.float32)
    zg = zg + b12_ref[...].astype(jnp.float32)

    Hp = w12_ref.shape[1] // 2            # multiple of 128 -> lane-aligned split
    z = zg[:, :Hp]
    g = zg[:, Hp:]
    h = z * _gelu(g, approximate_gelu)

    # Output projection: (bm, Hp) @ (Hp, Op) -> (bm, Op), lane-dense store.
    out = jnp.dot(h.astype(w2_ref.dtype), w2_ref[...],
                  preferred_element_type=jnp.float32)
    out = out + b2_ref[...].astype(jnp.float32)
    o_ref[...] = out.astype(o_ref.dtype)


def geglu_ktiled_kernel(x_ref, w12_ref, b12_ref, w2_ref, b2_ref, o_ref,
                        zg_acc, *, approximate_gelu):
    """Large-weight fallback: contraction (D) tiled on an 'arbitrary' grid
    axis; zg accumulated in f32 scratch, epilogue + 2nd matmul on last step."""
    k = pl.program_id(1)

    @pl.when(k == 0)
    def _():
        zg_acc[...] = jnp.zeros_like(zg_acc)

    x = x_ref[...].astype(w12_ref.dtype)
    zg_acc[...] += jnp.dot(x, w12_ref[...], preferred_element_type=jnp.float32)

    @pl.when(k == pl.num_programs(1) - 1)
    def _():
        zg = zg_acc[...] + b12_ref[...].astype(jnp.float32)
        Hp = w12_ref.shape[1] // 2
        z = zg[:, :Hp]
        g = zg[:, Hp:]
        h = z * _gelu(g, approximate_gelu)
        out = jnp.dot(h.astype(w2_ref.dtype), w2_ref[...],
                      preferred_element_type=jnp.float32)
        out = out + b2_ref[...].astype(jnp.float32)
        o_ref[...] = out.astype(o_ref.dtype)


# ---------------------------------------------------------------------------
# One-time parameter preparation (hoisted out of the forward pass)
# ---------------------------------------------------------------------------

def prepare_geglu_params(w1, b1, w_gate, b_gate, w2, b2, *,
                         param_dtype=jnp.float32):
    """Fuse/pad/cast the weights once (do NOT call per forward)."""
    D, H = w1.shape
    O = w2.shape[1]

    # Pad each half of the hidden dim to a multiple of 128 so the in-kernel
    # z/g split lands on a lane boundary (no XLU relayout for generic H).
    Hp = _round_up(H, 128)
    pad_h = Hp - H
    # Lane-dense output; full 256-wide MXU passes when it pays off (O >= 256).
    Op = _round_up(O, 256) if O >= 256 else _round_up(O, 128)

    w12 = jnp.concatenate(
        [jnp.pad(w1, ((0, 0), (0, pad_h))),
         jnp.pad(w_gate, ((0, 0), (0, pad_h)))], axis=1).astype(param_dtype)
    b12 = jnp.concatenate(
        [jnp.pad(b1, (0, pad_h)), jnp.pad(b_gate, (0, pad_h))],
        axis=0).reshape(1, 2 * Hp).astype(jnp.float32)
    w2p = jnp.pad(w2, ((0, pad_h), (0, Op - O))).astype(param_dtype)
    b2p = jnp.pad(b2, (0, Op - O)).reshape(1, Op).astype(jnp.float32)

    return dict(w12=w12, b12=b12, w2p=w2p, b2p=b2p, H=H, O=O)


# ---------------------------------------------------------------------------
# pallas_call construction + forward wrapper
# ---------------------------------------------------------------------------

def _build_geglu_call(*, B, D, H2, Op, bm, bk, resident_weights,
                      single_buffer_weights, approximate_gelu,
                      out_dtype, vmem_limit_bytes):
    def const_spec(shape):
        # Constant-index, VMEM-resident block: single buffer when supported.
        kwargs = {}
        if single_buffer_weights:
            kwargs["pipeline_mode"] = pl.Buffered(1)
        return pl.BlockSpec(shape, lambda *_: (0,) * len(shape), **kwargs)

    if resident_weights:
        grid = (pl.cdiv(B, bm),)
        in_specs = [
            pl.BlockSpec((bm, D), lambda i: (i, 0)),   # pipelined x tile
            const_spec((D, H2)),                       # fused (D, 2Hp) weight
            const_spec((1, H2)),                       # fused bias
            const_spec((H2 // 2, Op)),                 # output weight
            const_spec((1, Op)),                       # output bias
        ]
        out_specs = pl.BlockSpec((bm, Op), lambda i: (i, 0))
        scratch_shapes = []
        kernel = functools.partial(geglu_resident_kernel,
                                   approximate_gelu=approximate_gelu)
        semantics = ("parallel",)
    else:
        grid = (pl.cdiv(B, bm), D // bk)               # bk divides D exactly
        in_specs = [
            pl.BlockSpec((bm, bk), lambda i, k: (i, k)),
            pl.BlockSpec((bk, H2), lambda i, k: (k, 0)),   # streamed weight
            const_spec((1, H2)),
            const_spec((H2 // 2, Op)),
            const_spec((1, Op)),
        ]
        out_specs = pl.BlockSpec((bm, Op), lambda i, k: (i, 0))
        scratch_shapes = [pltpu.VMEM((bm, H2), jnp.float32)]   # zg accumulator
        kernel = functools.partial(geglu_ktiled_kernel,
                                   approximate_gelu=approximate_gelu)
        semantics = ("parallel", "arbitrary")

    return pl.pallas_call(
        kernel,
        out_shape=jax.ShapeDtypeStruct((B, Op), out_dtype),
        grid_spec=pltpu.PrefetchScalarGridSpec(
            num_scalar_prefetch=0,
            grid=grid,
            in_specs=in_specs,
            out_specs=out_specs,
            scratch_shapes=scratch_shapes,
        ),
        compiler_params=pltpu.CompilerParams(
            dimension_semantics=semantics,
            vmem_limit_bytes=int(vmem_limit_bytes),
        ),
    )


def geglu_forward(x, params, *, block_m=512, block_k=512,
                  approximate_gelu=False, force_k_tiling=False):
    """y = (x@w1+b1) * GELU(x@w_gate+b_gate) @ w2 + b2, fused in one kernel."""
    w12, b12, w2p, b2p = params["w12"], params["b12"], params["w2p"], params["b2p"]
    O = params["O"]
    B = x.shape[0]
    x2d = x.reshape(B, -1)                 # flatten; no padded HBM copy of x
    D, H2 = w12.shape
    Hp = H2 // 2
    Op = w2p.shape[1]
    assert x2d.shape[1] == D, "flattened input dim does not match weights"

    w_isize = jnp.dtype(w12.dtype).itemsize
    x_isize = jnp.dtype(x2d.dtype).itemsize
    o_isize = jnp.dtype(x.dtype).itemsize

    vmem_budget = _vmem_budget_bytes()

    w12_bytes = D * H2 * w_isize
    w2_bytes = Hp * Op * w_isize
    bias_bytes = (H2 + Op) * 4

    # Weights stay resident only if they fit in half the budget; otherwise
    # stream w12 along a K-tiled grid axis (critical on v7x's 64 MiB VMEM).
    resident_weights = (not force_k_tiling) and (
        w12_bytes + w2_bytes + bias_bytes <= vmem_budget // 2)

    bk = D
    if not resident_weights:
        # Largest multiple of 128 <= block_k that divides D (a ragged K block
        # would add garbage into the accumulation, so it must divide exactly).
        start = (min(block_k, D) // 128) * 128
        found = 0
        for cand in range(start, 0, -128):
            if D % cand == 0:
                found = cand
                break
        if found == 0:
            resident_weights = True        # no clean K tile; keep resident
        else:
            bk = found

    # Batch tile: sublane packing is 16 rows for bf16, 8 for f32.  A block
    # row-dim equal to the full batch is always layout-legal, so small batches
    # need no padding at all; large batches rely on masked ragged last blocks.
    row_align = 16 if w12.dtype == jnp.bfloat16 else 8
    if B <= block_m:
        bm = B
    else:
        bm = max(row_align, (min(block_m, B) // row_align) * row_align)

    def _fits(bm_):
        w_bytes = (w12_bytes if resident_weights
                   else 2 * bk * H2 * w_isize) + w2_bytes + bias_bytes
        x_tile = bm_ * (D if resident_weights else bk) * x_isize
        out_tile = bm_ * Op * o_isize
        interm = bm_ * H2 * 4 + bm_ * Hp * 4      # zg (+acc scratch) and h, f32
        return w_bytes + 2 * (x_tile + out_tile) + interm <= vmem_budget

    while not _fits(bm) and bm > row_align:
        bm = max(row_align, ((bm // 2) // row_align) * row_align)

    common = dict(B=B, D=D, H2=H2, Op=Op, bm=bm, bk=bk,
                  resident_weights=resident_weights,
                  approximate_gelu=approximate_gelu,
                  out_dtype=x.dtype, vmem_limit_bytes=vmem_budget)
    args = (x2d, w12, b12, w2p, b2p)

    # Preferred config first; degrade gracefully if this jax/Mosaic build
    # rejects pl.Buffered(1) weight blocks (or, as a last resort, erf lowering).
    attempts = [dict(single_buffer_weights=True),
                dict(single_buffer_weights=False)]
    if not approximate_gelu:
        attempts.append(dict(single_buffer_weights=False, approximate_gelu=True))

    last_err = None
    for cfg in attempts:
        try:
            out = _build_geglu_call(**{**common, **cfg})(*args)
            break
        except Exception as err:
            last_err = err
    else:
        raise last_err

    return out[:, :O]


# ---------------------------------------------------------------------------
# Demo / correctness check
# ---------------------------------------------------------------------------

if __name__ == "__main__":
    key = jax.random.PRNGKey(0)
    k_x, k_w1, k_wg, k_w2 = jax.random.split(key, 4)

    # NCHW input (2, 4, 16, 16) flattens to input_dim = 4*16*16 = 1024.
    B, C, Himg, Wimg = 2, 4, 16, 16
    input_dim = C * Himg * Wimg
    hidden_dim = 128
    output_dim = 64

    x = jax.random.normal(k_x, (B, C, Himg, Wimg), dtype=jnp.float32)
    # randn * 0.01 weights, zero biases (mirrors the module's __init__).
    w1 = jax.random.normal(k_w1, (input_dim, hidden_dim), jnp.float32) * 0.01
    b1 = jnp.zeros((hidden_dim,), jnp.float32)
    w_gate = jax.random.normal(k_wg, (input_dim, hidden_dim), jnp.float32) * 0.01
    b_gate = jnp.zeros((hidden_dim,), jnp.float32)
    w2 = jax.random.normal(k_w2, (hidden_dim, output_dim), jnp.float32) * 0.01
    b2 = jnp.zeros((output_dim,), jnp.float32)

    # Pure-JAX reference (exact erf GELU, forced high-precision f32 matmuls).
    xf = x.reshape(B, -1)
    hp = jax.lax.Precision.HIGHEST
    z_ref = jnp.dot(xf, w1, precision=hp) + b1
    g_ref = jnp.dot(xf, w_gate, precision=hp) + b_gate
    h_ref = z_ref * (0.5 * g_ref * (1.0 + jax.lax.erf(g_ref / jnp.sqrt(2.0))))
    ref = jnp.dot(h_ref, w2, precision=hp) + b2

    # 1) f32 parity path (exact erf GELU, resident weights).
    params_f32 = prepare_geglu_params(w1, b1, w_gate, b_gate, w2, b2,
                                      param_dtype=jnp.float32)
    out_f32 = jax.block_until_ready(geglu_forward(x, params_f32))
    assert out_f32.shape == (B, output_dim)
    assert jnp.allclose(out_f32, ref, atol=1e-4, rtol=1e-3), \
        float(jnp.max(jnp.abs(out_f32 - ref)))

    # 2) bf16 MXU path (performance default on v6e/v7x; looser tolerance is
    #    expected quantization error, not a bug).
    params_bf16 = prepare_geglu_params(w1, b1, w_gate, b_gate, w2, b2,
                                       param_dtype=jnp.bfloat16)
    out_bf16 = jax.block_until_ready(geglu_forward(x, params_bf16))
    assert out_bf16.shape == (B, output_dim)
    assert jnp.allclose(out_bf16, ref, atol=3e-3, rtol=3e-2), \
        float(jnp.max(jnp.abs(out_bf16 - ref)))

    # 3) K-tiled large-weight fallback, exercised explicitly (D split into
    #    256-wide K tiles with an f32 accumulator scratch).
    out_kt = jax.block_until_ready(
        geglu_forward(x, params_f32, block_k=256, force_k_tiling=True))
    assert out_kt.shape == (B, output_dim)
    assert jnp.allclose(out_kt, ref, atol=1e-4, rtol=1e-3), \
        float(jnp.max(jnp.abs(out_kt - ref)))

    print("KERNEL_OK")
</pallas_src>

<mosaic_0001>
module attributes {stable_mosaic.version = 11 : i64} {
  func.func @geglu_resident_kernel(%arg0: i32, %arg1: memref<2x1024xf32, #tpu.memory_space<vmem>>, %arg2: memref<1024x256xf32, #tpu.memory_space<vmem>>, %arg3: memref<1x256xf32, #tpu.memory_space<vmem>>, %arg4: memref<128x128xf32, #tpu.memory_space<vmem>>, %arg5: memref<1x128xf32, #tpu.memory_space<vmem>>, %arg6: memref<2x128xf32, #tpu.memory_space<vmem>>) attributes {dimension_semantics = [#tpu.dimension_semantics<parallel>], iteration_bounds = array<i64: 1>, scalar_prefetch = 0 : i64, scratch_operands = 0 : i64, tpu.core_type = #tpu.core_type<tc>, window_params = [{transform_indices = @transform_0, window_bounds = array<i64: 2, 1024>}, {pipeline_mode = #tpu.pipeline_mode<synchronous>, transform_indices = @transform_1, window_bounds = array<i64: 1024, 256>}, {pipeline_mode = #tpu.pipeline_mode<synchronous>, transform_indices = @transform_2, window_bounds = array<i64: 1, 256>}, {pipeline_mode = #tpu.pipeline_mode<synchronous>, transform_indices = @transform_3, window_bounds = array<i64: 128, 128>}, {pipeline_mode = #tpu.pipeline_mode<synchronous>, transform_indices = @transform_4, window_bounds = array<i64: 1, 128>}, {transform_indices = @transform_5, window_bounds = array<i64: 2, 128>}]} {
    %c0 = arith.constant 0 : index
    %c0_0 = arith.constant 0 : index
    %0 = vector.load %arg1[%c0, %c0_0] : memref<2x1024xf32, #tpu.memory_space<vmem>>, vector<2x1024xf32>
    %c0_1 = arith.constant 0 : index
    %c0_2 = arith.constant 0 : index
    %1 = vector.load %arg2[%c0_1, %c0_2] : memref<1024x256xf32, #tpu.memory_space<vmem>>, vector<1024x256xf32>
    %cst = arith.constant dense<0.000000e+00> : vector<2x256xf32>
    %2 = tpu.matmul %0, %1, %cst {dimension_numbers = #tpu.dot_dimension_numbers<[1], [0], [0], [1], [0, 0, 1, 1], [], []>} : vector<2x1024xf32>, vector<1024x256xf32>, vector<2x256xf32> -> vector<2x256xf32>
    %c0_3 = arith.constant 0 : index
    %c0_4 = arith.constant 0 : index
    %3 = vector.load %arg3[%c0_3, %c0_4] : memref<1x256xf32, #tpu.memory_space<vmem>>, vector<1x256xf32>
    %4 = vector.broadcast %3 : vector<1x256xf32> to vector<2x256xf32>
    %5 = arith.addf %2, %4 : vector<2x256xf32>
    %6 = vector.extract_strided_slice %5 {offsets = [0, 0], sizes = [2, 128], strides = [1, 1]} : vector<2x256xf32> to vector<2x128xf32>
    %7 = vector.extract_strided_slice %5 {offsets = [0, 128], sizes = [2, 128], strides = [1, 1]} : vector<2x256xf32> to vector<2x128xf32>
    %cst_5 = arith.constant 5.000000e-01 : f32
    %8 = vector.broadcast %cst_5 : f32 to vector<2x128xf32>
    %9 = arith.mulf %8, %7 : vector<2x128xf32>
    %cst_6 = arith.constant 0.707106769 : f32
    %10 = vector.broadcast %cst_6 : f32 to vector<2x128xf32>
    %11 = arith.mulf %7, %10 : vector<2x128xf32>
    %12 = math.erf %11 : vector<2x128xf32>
    %cst_7 = arith.constant 1.000000e+00 : f32
    %13 = vector.broadcast %cst_7 : f32 to vector<2x128xf32>
    %14 = arith.addf %13, %12 : vector<2x128xf32>
    %15 = arith.mulf %9, %14 : vector<2x128xf32>
    %16 = arith.mulf %6, %15 : vector<2x128xf32>
    %c0_8 = arith.constant 0 : index
    %c0_9 = arith.constant 0 : index
    %17 = vector.load %arg4[%c0_8, %c0_9] : memref<128x128xf32, #tpu.memory_space<vmem>>, vector<128x128xf32>
    %cst_10 = arith.constant dense<0.000000e+00> : vector<2x128xf32>
    %18 = tpu.matmul %16, %17, %cst_10 {dimension_numbers = #tpu.dot_dimension_numbers<[1], [0], [0], [1], [0, 0, 1, 1], [], []>} : vector<2x128xf32>, vector<128x128xf32>, vector<2x128xf32> -> vector<2x128xf32>
    %c0_11 = arith.constant 0 : index
    %c0_12 = arith.constant 0 : index
    %19 = vector.load %arg5[%c0_11, %c0_12] : memref<1x128xf32, #tpu.memory_space<vmem>>, vector<1x128xf32>
    %20 = vector.broadcast %19 : vector<1x128xf32> to vector<2x128xf32>
    %21 = arith.addf %18, %20 : vector<2x128xf32>
    %c0_13 = arith.constant 0 : index
    %c0_14 = arith.constant 0 : index
    %22 = vector.load %arg6[%c0_13, %c0_14] : memref<2x128xf32, #tpu.memory_space<vmem>>, vector<2x128xf32>
    tpu.vector_store %arg6[%c0_13, %c0_14], %21 {strides = array<i32>} : memref<2x128xf32, #tpu.memory_space<vmem>>, vector<2x128xf32>,
    return
  }
  func.func @transform_0(%arg0: i32) -> (i32, i32) {
    %c0_i32 = arith.constant 0 : i32
    %c0_i32_0 = arith.constant 0 : i32
    return %arg0, %c0_i32 : i32, i32
  }
  func.func @transform_1(%arg0: i32) -> (i32, i32) {
    %c0_i32 = arith.constant 0 : i32
    %c0_i32_0 = arith.constant 0 : i32
    %c0_i32_1 = arith.constant 0 : i32
    return %c0_i32, %c0_i32_0 : i32, i32
  }
  func.func @transform_2(%arg0: i32) -> (i32, i32) {
    %c0_i32 = arith.constant 0 : i32
    %c0_i32_0 = arith.constant 0 : i32
    %c0_i32_1 = arith.constant 0 : i32
    return %c0_i32, %c0_i32_0 : i32, i32
  }
  func.func @transform_3(%arg0: i32) -> (i32, i32) {
    %c0_i32 = arith.constant 0 : i32
    %c0_i32_0 = arith.constant 0 : i32
    %c0_i32_1 = arith.constant 0 : i32
    return %c0_i32, %c0_i32_0 : i32, i32
  }
  func.func @transform_4(%arg0: i32) -> (i32, i32) {
    %c0_i32 = arith.constant 0 : i32
    %c0_i32_0 = arith.constant 0 : i32
    %c0_i32_1 = arith.constant 0 : i32
    return %c0_i32, %c0_i32_0 : i32, i32
  }
  func.func @transform_5(%arg0: i32) -> (i32, i32) {
    %c0_i32 = arith.constant 0 : i32
    %c0_i32_0 = arith.constant 0 : i32
    return %arg0, %c0_i32 : i32, i32
  }
}

module attributes {stable_mosaic.version = 11 : i64} {
  func.func @geglu_resident_kernel(%arg0: i32, %arg1: memref<2x1024xf32, #tpu.memory_space<vmem>>, %arg2: memref<1024x256xf32, #tpu.memory_space<vmem>>, %arg3: memref<1x256xf32, #tpu.memory_space<vmem>>, %arg4: memref<128x128xf32, #tpu.memory_space<vmem>>, %arg5: memref<1x128xf32, #tpu.memory_space<vmem>>, %arg6: memref<2x128xf32, #tpu.memory_space<vmem>>) attributes {dimension_semantics = [#tpu.dimension_semantics<parallel>], iteration_bounds = array<i64: 1>, scalar_prefetch = 0 : i64, scratch_operands = 0 : i64, tpu.core_type = #tpu.core_type<tc>, window_params = [{transform_indices = @transform_0, window_bounds = array<i64: 2, 1024>}, {pipeline_mode = #tpu.pipeline_mode<synchronous>, transform_indices = @transform_1, window_bounds = array<i64: 1024, 256>}, {pipeline_mode = #tpu.pipeline_mode<synchronous>, transform_indices = @transform_2, window_bounds = array<i64: 1, 256>}, {pipeline_mode = #tpu.pipeline_mode<synchronous>, transform_indices = @transform_3, window_bounds = array<i64: 128, 128>}, {pipeline_mode = #tpu.pipeline_mode<synchronous>, transform_indices = @transform_4, window_bounds = array<i64: 1, 128>}, {transform_indices = @transform_5, window_bounds = array<i64: 2, 128>}]} {
    %c0 = arith.constant 0 : index
    %c0_0 = arith.constant 0 : index
    %0 = vector.load %arg1[%c0, %c0_0] : memref<2x1024xf32, #tpu.memory_space<vmem>>, vector<2x1024xf32>
    %c0_1 = arith.constant 0 : index
    %c0_2 = arith.constant 0 : index
    %1 = vector.load %arg2[%c0_1, %c0_2] : memref<1024x256xf32, #tpu.memory_space<vmem>>, vector<1024x256xf32>
    %cst = arith.constant dense<0.000000e+00> : vector<2x256xf32>
    %2 = tpu.matmul %0, %1, %cst {dimension_numbers = #tpu.dot_dimension_numbers<[1], [0], [0], [1], [0, 0, 1, 1], [], []>} : vector<2x1024xf32>, vector<1024x256xf32>, vector<2x256xf32> -> vector<2x256xf32>
    %c0_3 = arith.constant 0 : index
    %c0_4 = arith.constant 0 : index
    %3 = vector.load %arg3[%c0_3, %c0_4] : memref<1x256xf32, #tpu.memory_space<vmem>>, vector<1x256xf32>
    %4 = vector.broadcast %3 : vector<1x256xf32> to vector<2x256xf32>
    %5 = arith.addf %2, %4 : vector<2x256xf32>
    %6 = vector.extract_strided_slice %5 {offsets = [0, 0], sizes = [2, 128], strides = [1, 1]} : vector<2x256xf32> to vector<2x128xf32>
    %7 = vector.extract_strided_slice %5 {offsets = [0, 128], sizes = [2, 128], strides = [1, 1]} : vector<2x256xf32> to vector<2x128xf32>
    %cst_5 = arith.constant 5.000000e-01 : f32
    %8 = vector.broadcast %cst_5 : f32 to vector<2x128xf32>
    %9 = arith.mulf %8, %7 : vector<2x128xf32>
    %cst_6 = arith.constant 0.707106769 : f32
    %10 = vector.broadcast %cst_6 : f32 to vector<2x128xf32>
    %11 = arith.mulf %7, %10 : vector<2x128xf32>
    %12 = math.erf %11 : vector<2x128xf32>
    %cst_7 = arith.constant 1.000000e+00 : f32
    %13 = vector.broadcast %cst_7 : f32 to vector<2x128xf32>
    %14 = arith.addf %13, %12 : vector<2x128xf32>
    %15 = arith.mulf %9, %14 : vector<2x128xf32>
    %16 = arith.mulf %6, %15 : vector<2x128xf32>
    %c0_8 = arith.constant 0 : index
    %c0_9 = arith.constant 0 : index
    %17 = vector.load %arg4[%c0_8, %c0_9] : memref<128x128xf32, #tpu.memory_space<vmem>>, vector<128x128xf32>
    %cst_10 = arith.constant dense<0.000000e+00> : vector<2x128xf32>
    %18 = tpu.matmul %16, %17, %cst_10 {dimension_numbers = #tpu.dot_dimension_numbers<[1], [0], [0], [1], [0, 0, 1, 1], [], []>} : vector<2x128xf32>, vector<128x128xf32>, vector<2x128xf32> -> vector<2x128xf32>
    %c0_11 = arith.constant 0 : index
    %c0_12 = arith.constant 0 : index
    %19 = vector.load %arg5[%c0_11, %c0_12] : memref<1x128xf32, #tpu.memory_space<vmem>>, vector<1x128xf32>
    %20 = vector.broadcast %19 : vector<1x128xf32> to vector<2x128xf32>
    %21 = arith.addf %18, %20 : vector<2x128xf32>
    %c0_13 = arith.constant 0 : index
    %c0_14 = arith.constant 0 : index
    %22 = vector.load %arg6[%c0_13, %c0_14] : memref<2x128xf32, #tpu.memory_space<vmem>>, vector<2x128xf32>
    tpu.vector_store %arg6[%c0_13, %c0_14], %21 {strides = array<i32>} : memref<2x128xf32, #tpu.memory_space<vmem>>, vector<2x128xf32>,
    return
  }
  func.func @transform_0(%arg0: i32) -> (i32, i32) {
    %c0_i32 = arith.constant 0 : i32
    %c0_i32_0 = arith.constant 0 : i32
    return %arg0, %c0_i32 : i32, i32
  }
  func.func @transform_1(%arg0: i32) -> (i32, i32) {
    %c0_i32 = arith.constant 0 : i32
    %c0_i32_0 = arith.constant 0 : i32
    %c0_i32_1 = arith.constant 0 : i32
    return %c0_i32, %c0_i32_0 : i32, i32
  }
  func.func @transform_2(%arg0: i32) -> (i32, i32) {
    %c0_i32 = arith.constant 0 : i32
    %c0_i32_0 = arith.constant 0 : i32
    %c0_i32_1 = arith.constant 0 : i32
    return %c0_i32, %c0_i32_0 : i32, i32
  }
  func.func @transform_3(%arg0: i32) -> (i32, i32) {
    %c0_i32 = arith.constant 0 : i32
    %c0_i32_0 = arith.constant 0 : i32
    %c0_i32_1 = arith.constant 0 : i32
    return %c0_i32, %c0_i32_0 : i32, i32
  }
  func.func @transform_4(%arg0: i32) -> (i32, i32) {
    %c0_i32 = arith.constant 0 : i32
    %c0_i32_0 = arith.constant 0 : i32
    %c0_i32_1 = arith.constant 0 : i32
    return %c0_i32, %c0_i32_0 : i32, i32
  }
  func.func @transform_5(%arg0: i32) -> (i32, i32) {
    %c0_i32 = arith.constant 0 : i32
    %c0_i32_0 = arith.constant 0 : i32
    return %arg0, %c0_i32 : i32, i32
  }
}

module attributes {stable_mosaic.version = 11 : i64} {
  func.func @geglu_resident_kernel(%arg0: i32, %arg1: memref<2x1024xf32, #tpu.memory_space<vmem>>, %arg2: memref<1024x256xf32, #tpu.memory_space<vmem>>, %arg3: memref<1x256xf32, #tpu.memory_space<vmem>>, %arg4: memref<128x128xf32, #tpu.memory_space<vmem>>, %arg5: memref<1x128xf32, #tpu.memory_space<vmem>>, %arg6: memref<2x128xf32, #tpu.memory_space<vmem>>) attributes {dimension_semantics = [#tpu.dimension_semantics<parallel>], iteration_bounds = array<i64: 1>, scalar_prefetch = 0 : i64, scratch_operands = 0 : i64, tpu.core_type = #tpu.core_type<tc>, window_params = [{transform_indices = @transform_0, window_bounds = array<i64: 2, 1024>}, {pipeline_mode = #tpu.pipeline_mode<synchronous>, transform_indices = @transform_1, window_bounds = array<i64: 1024, 256>}, {pipeline_mode = #tpu.pipeline_mode<synchronous>, transform_indices = @transform_2, window_bounds = array<i64: 1, 256>}, {pipeline_mode = #tpu.pipeline_mode<synchronous>, transform_indices = @transform_3, window_bounds = array<i64: 128, 128>}, {pipeline_mode = #tpu.pipeline_mode<synchronous>, transform_indices = @transform_4, window_bounds = array<i64: 1, 128>}, {transform_indices = @transform_5, window_bounds = array<i64: 2, 128>}]} {
    %c0 = arith.constant 0 : index
    %c0_0 = arith.constant 0 : index
    %0 = vector.load %arg1[%c0, %c0_0] : memref<2x1024xf32, #tpu.memory_space<vmem>>, vector<2x1024xf32>
    %c0_1 = arith.constant 0 : index
    %c0_2 = arith.constant 0 : index
    %1 = vector.load %arg2[%c0_1, %c0_2] : memref<1024x256xf32, #tpu.memory_space<vmem>>, vector<1024x256xf32>
    %cst = arith.constant dense<0.000000e+00> : vector<2x256xf32>
    %2 = tpu.matmul %0, %1, %cst {dimension_numbers = #tpu.dot_dimension_numbers<[1], [0], [0], [1], [0, 0, 1, 1], [], []>} : vector<2x1024xf32>, vector<1024x256xf32>, vector<2x256xf32> -> vector<2x256xf32>
    %c0_3 = arith.constant 0 : index
    %c0_4 = arith.constant 0 : index
    %3 = vector.load %arg3[%c0_3, %c0_4] : memref<1x256xf32, #tpu.memory_space<vmem>>, vector<1x256xf32>
    %4 = vector.broadcast %3 : vector<1x256xf32> to vector<2x256xf32>
    %5 = arith.addf %2, %4 : vector<2x256xf32>
    %6 = vector.extract_strided_slice %5 {offsets = [0, 0], sizes = [2, 128], strides = [1, 1]} : vector<2x256xf32> to vector<2x128xf32>
    %7 = vector.extract_strided_slice %5 {offsets = [0, 128], sizes = [2, 128], strides = [1, 1]} : vector<2x256xf32> to vector<2x128xf32>
    %8 = arith.mulf %7, %7 : vector<2x128xf32>
    %9 = arith.mulf %7, %8 : vector<2x128xf32>
    %cst_5 = arith.constant 4.471500e-02 : f32
    %10 = vector.broadcast %cst_5 : f32 to vector<2x128xf32>
    %11 = arith.mulf %10, %9 : vector<2x128xf32>
    %12 = arith.addf %7, %11 : vector<2x128xf32>
    %cst_6 = arith.constant 0.797884583 : f32
    %13 = vector.broadcast %cst_6 : f32 to vector<2x128xf32>
    %14 = arith.mulf %13, %12 : vector<2x128xf32>
    %15 = math.tanh %14 : vector<2x128xf32>
    %cst_7 = arith.constant 1.000000e+00 : f32
    %16 = vector.broadcast %cst_7 : f32 to vector<2x128xf32>
    %17 = arith.addf %16, %15 : vector<2x128xf32>
    %cst_8 = arith.constant 5.000000e-01 : f32
    %18 = vector.broadcast %cst_8 : f32 to vector<2x128xf32>
    %19 = arith.mulf %18, %17 : vector<2x128xf32>
    %20 = arith.mulf %7, %19 : vector<2x128xf32>
    %21 = arith.mulf %6, %20 : vector<2x128xf32>
    %c0_9 = arith.constant 0 : index
    %c0_10 = arith.constant 0 : index
    %22 = vector.load %arg4[%c0_9, %c0_10] : memref<128x128xf32, #tpu.memory_space<vmem>>, vector<128x128xf32>
    %cst_11 = arith.constant dense<0.000000e+00> : vector<2x128xf32>
    %23 = tpu.matmul %21, %22, %cst_11 {dimension_numbers = #tpu.dot_dimension_numbers<[1], [0], [0], [1], [0, 0, 1, 1], [], []>} : vector<2x128xf32>, vector<128x128xf32>, vector<2x128xf32> -> vector<2x128xf32>
    %c0_12 = arith.constant 0 : index
    %c0_13 = arith.constant 0 : index
    %24 = vector.load %arg5[%c0_12, %c0_13] : memref<1x128xf32, #tpu.memory_space<vmem>>, vector<1x128xf32>
    %25 = vector.broadcast %24 : vector<1x128xf32> to vector<2x128xf32>
    %26 = arith.addf %23, %25 : vector<2x128xf32>
    %c0_14 = arith.constant 0 : index
    %c0_15 = arith.constant 0 : index
    %27 = vector.load %arg6[%c0_14, %c0_15] : memref<2x128xf32, #tpu.memory_space<vmem>>, vector<2x128xf32>
    tpu.vector_store %arg6[%c0_14, %c0_15], %26 {strides = array<i32>} : memref<2x128xf32, #tpu.memory_space<vmem>>, vector<2x128xf32>,
    return
  }
  func.func @transform_0(%arg0: i32) -> (i32, i32) {
    %c0_i32 = arith.constant 0 : i32
    %c0_i32_0 = arith.constant 0 : i32
    return %arg0, %c0_i32 : i32, i32
  }
  func.func @transform_1(%arg0: i32) -> (i32, i32) {
    %c0_i32 = arith.constant 0 : i32
    %c0_i32_0 = arith.constant 0 : i32
    %c0_i32_1 = arith.constant 0 : i32
    return %c0_i32, %c0_i32_0 : i32, i32
  }
  func.func @transform_2(%arg0: i32) -> (i32, i32) {
    %c0_i32 = arith.constant 0 : i32
    %c0_i32_0 = arith.constant 0 : i32
    %c0_i32_1 = arith.constant 0 : i32
    return %c0_i32, %c0_i32_0 : i32, i32
  }
  func.func @transform_3(%arg0: i32) -> (i32, i32) {
    %c0_i32 = arith.constant 0 : i32
    %c0_i32_0 = arith.constant 0 : i32
    %c0_i32_1 = arith.constant 0 : i32
    return %c0_i32, %c0_i32_0 : i32, i32
  }
  func.func @transform_4(%arg0: i32) -> (i32, i32) {
    %c0_i32 = arith.constant 0 : i32
    %c0_i32_0 = arith.constant 0 : i32
    %c0_i32_1 = arith.constant 0 : i32
    return %c0_i32, %c0_i32_0 : i32, i32
  }
  func.func @transform_5(%arg0: i32) -> (i32, i32) {
    %c0_i32 = arith.constant 0 : i32
    %c0_i32_0 = arith.constant 0 : i32
    return %arg0, %c0_i32 : i32, i32
  }
}

</mosaic_0001>

<bundles_post_ra>
// kernel: tpu_custom_call.1
= control target key start
LH: loop header
LB: loop body
LE: loop exit
PB: predicated region body
PF: predicated region fallthrough
CT: control target
= control target key end

     0   :  { %10 = vsyncpa [#allocation3], 0  ;;  %s1362_s0 = inlined_call_operand.hbm [shape: f32[2,1024], index: 0, kind: input, shape index: {}]   ;;  %s1363_s1 = inlined_call_operand.hbm [shape: f32[1024,256], index: 1, kind: input, shape index: {}]   ;;  %s1364_s2 = inlined_call_operand.vmem [shape: f32[1,256], index: 2, kind: input, shape index: {}]   ;;  %s1365_s3 = inlined_call_operand.hbm [shape: f32[128,128], index: 3, kind: input, shape index: {}]   ;;  %s1366_s4 = inlined_call_operand.vmem [shape: f32[1,128], index: 4, kind: input, shape index: {}]   ;;  %s1367_s5 = inlined_call_operand.hbm [shape: f32[2,128], index: 5, kind: output, shape index: {}]  }
   0x1   :  { %11 = vsyncpa [#allocation6], 0 }
   0x2   :  { %12 = vsyncpa [#allocation4], 0  ;;  %s1225_s18 = smov [#allocation5]   ;;  %s1131_s22 = scalar_lea.hbm %s1363_s1, 32768 }
   0x3   :  { %s28_s19 = sshll.u32 %s1225_s18, 4  ;;  %p1132_p0 = scmp.ne.s32.totalorder %s1363_s1, %s1131_s22  ;;  %s29_s19 = int_to_ptr.vmem [resolvable:$true] %s28_s19 }
   0x4   :  { %p1135_p1 = scmp.lt.u32.totalorder %s1131_s22, %s1363_s1 }
   0x6   :  { %p1137_p2 = pnand %p1135_p1, %p1132_p0 }
   0x8   :  { %1140 = shalt.err (!%p1137_p2)
}
   0x9   :  { %s1141_s27 = scalar_lea.vmem %s29_s19, 32768  ;;  %p1146_p4 = scmp.lt.s32.totalorder %s29_s19, %s29_s19 }
   0xa   :  { %p1142_p3 = scmp.ne.s32.totalorder %s29_s19, %s1141_s27  ;;  %p1147_p5 = scmp.lt.s32.totalorder %s1141_s27, %s1141_s27 }
   0xc   :  { %p1148_p6 = por %p1147_p5, %p1146_p4 }
   0xe   :  { %p1149_p7 = pnand %p1148_p6, %p1142_p3 }
  0x10   :  { %1152 = shalt.err (!%p1149_p7)
}
  0x11   :  { %s1226_s28 = smov 256   ;;  %s1227_s29 = smov 16  }
  0x12   :  { %34 = dma.hbm_to_vmem [thread:$0]  %s1363_s1, 32768, %s29_s19, [#allocation6], %s1226_s28, %s1226_s28, %s1227_s29  }
  0x13   :  { %s1228_s7 = smov [#allocation2]   ;;  %s1229_s9 = smov [#allocation7]  }
  0x14   :  { %s19_s8 = sshll.u32 %s1228_s7, 4  ;;  %s42_s10 = sshll.u32 %s1229_s9, 4  ;;  %s20_s8 = int_to_ptr.vmem [resolvable:$true] %s19_s8  ;;  %s43_s10 = int_to_ptr.vmem [resolvable:$true] %s42_s10 }
  0x15   :  { %s1153_s13 = scalar_lea.hbm %s1362_s0, 256 }
  0x16   :  { %p1154_p8 = scmp.ne.s32.totalorder %s1362_s0, %s1153_s13  ;;  %p1157_p9 = scmp.lt.u32.totalorder %s1153_s13, %s1362_s0 }
  0x18   :  { %p1159_p10 = pnand %p1157_p9, %p1154_p8 }
  0x1a   :  { %1162 = shalt.err (!%p1159_p10)
}
  0x1b   :  { %s1163_s1 = scalar_lea.vmem %s20_s8, 256  ;;  %p1168_p12 = scmp.lt.s32.totalorder %s20_s8, %s20_s8 }
  0x1c   :  { %p1164_p11 = scmp.ne.s32.totalorder %s20_s8, %s1163_s1  ;;  %p1169_p13 = scmp.lt.s32.totalorder %s1163_s1, %s1163_s1 }
  0x1e   :  { %p1170_p0 = por %p1169_p13, %p1168_p12 }
  0x20   :  { %p1171_p1 = pnand %p1170_p0, %p1164_p11 }
  0x22   :  { %1174 = shalt.err (!%p1171_p1)
}
  0x23   :  { %22 = dma.hbm_to_vmem [thread:$0]  %s1362_s0, 256, %s20_s8, [#allocation3]  }
  0x24   :  { %s1175_s22 = scalar_lea.hbm %s1365_s3, 2048 }
  0x25   :  { %p1176_p2 = scmp.ne.s32.totalorder %s1365_s3, %s1175_s22  ;;  %p1179_p3 = scmp.lt.u32.totalorder %s1175_s22, %s1365_s3 }
  0x27   :  { %p1181_p4 = pnand %p1179_p3, %p1176_p2 }
  0x29   :  { %1184 = shalt.err (!%p1181_p4)
}
  0x2a   :  { %s1185_s27 = scalar_lea.vmem %s43_s10, 2048  ;;  %p1190_p6 = scmp.lt.s32.totalorder %s43_s10, %s43_s10 }
  0x2b   :  { %p1186_p5 = scmp.ne.s32.totalorder %s43_s10, %s1185_s27  ;;  %p1191_p7 = scmp.lt.s32.totalorder %s1185_s27, %s1185_s27 }
  0x2d   :  { %p1192_p8 = por %p1191_p7, %p1190_p6 }
  0x2f   :  { %p1193_p9 = pnand %p1192_p8, %p1186_p5 }
  0x31   :  { %1196 = shalt.err (!%p1193_p9)
}
  0x32   :  { %s1230_s0 = smov 128   ;;  %s1231_s28 = smov 8  }
  0x33   :  { %48 = dma.hbm_to_vmem [thread:$0]  %s1365_s3, 2048, %s43_s10, [#allocation6], %s1230_s0, %s1230_s0, %s1231_s28  }
  0x34   :  { %1219 = dma.done.wait [#allocation3], 256  }
  0x35   :  { %1220 = vsyncadd [#allocation3], 4294967040 }
  0x36   :  { %1221 = dma.done.wait [#allocation6], 34816  }
  0x37   :  { %1222 = vsyncadd [#allocation6], 4294932480  ;;  %v63_v0 = vld [vmem:[#allocation5 + $0x8] sm:$0xff]  ;;  %v65_v1 = vld [vmem:[#allocation5 + $0x18] sm:$0xff]  ;;  %vm1234_vm0 = vmmov 0   ;;  %s1236_s8 = smov [#allocation8]  }
  0x38   :  { %v191_v2 = vld [vmem:[#allocation5 + $0x408] sm:$0xff]  ;;  %v827_v3 = vpack.c.bf16 %v65_v1, %v63_v0  ;;  %v193_v4 = vld [vmem:[#allocation5 + $0x418] sm:$0xff]  ;;  %v62_v5 = vld [vmem:[#allocation5] sm:$0xff]  ;;  %s764_s9 = sshll.u32 %s1236_s8, 4  ;;  %s765_s9 = int_to_ptr.vmem [resolvable:$true] %s764_s9 }
  0x39   :  { %v64_v6 = vld [vmem:[#allocation5 + $0x10] sm:$0xff]  ;;  %v955_v7 = vpack.c.bf16 %v193_v4, %v191_v2  ;;  %v190_v9 = vld [vmem:[#allocation5 + $0x400] sm:$0xff]  ;;  %v67_v11 = vld [vmem:[#allocation5 + $0x28] sm:$0xff]  ;;  %s1197_s10 = scalar_lea.vmem %s765_s9, 32  ;;  %p1202_p11 = scmp.lt.s32.totalorder %s765_s9, %s765_s9 }
  0x3a   :  { %v829_v8 = vpack.c.bf16 %v64_v6, %v62_v5  ;;  %v192_v10 = vld [vmem:[#allocation5 + $0x410] sm:$0xff]  ;;  %828 = vmatprep.subr.bf16.mxu1 %v827_v3  ;;  %v69_v13 = vld [vmem:[#allocation5 + $0x38] sm:$0xff]  ;;  %v195_v14 = vld [vmem:[#allocation5 + $0x428] sm:$0xff]  ;;  %p1198_p10 = scmp.ne.s32.totalorder %s765_s9, %s1197_s10  ;;  %p1203_p12 = scmp.lt.s32.totalorder %s1197_s10, %s1197_s10 }
  0x3b   :  { %v957_v12 = vpack.c.bf16 %v192_v10, %v190_v9  ;;  %v197_v15 = vld [vmem:[#allocation5 + $0x438] sm:$0xff]  ;;  %956 = vmatprep.subr.bf16.mxu0 %v955_v7  ;;  %v831_v16 = vpack.c.bf16 %v69_v13, %v67_v11  ;;  %v66_v18 = vld [vmem:[#allocation5 + $0x20] sm:$0xff]  ;;  %v68_v19 = vld [vmem:[#allocation5 + $0x30] sm:$0xff] }
  0x3c   :  { %830 = vmatpush1.bf16.msra.mxu1 %v829_v8  ;;  %v959_v17 = vpack.c.bf16 %v197_v15, %v195_v14  ;;  %v194_v20 = vld [vmem:[#allocation5 + $0x420] sm:$0xff]  ;;  %v833_v21 = vpack.c.bf16 %v68_v19, %v66_v18  ;;  %v196_v22 = vld [vmem:[#allocation5 + $0x430] sm:$0xff]  ;;  %v71_v23 = vld [vmem:[#allocation5 + $0x48] sm:$0xff]  ;;  %p1204_p13 = por %p1203_p12, %p1202_p11 }
  0x3d   :  { %958 = vmatpush1.bf16.msra.mxu0 %v957_v12  ;;  %v73_v24 = vld [vmem:[#allocation5 + $0x58] sm:$0xff]  ;;  %832 = vmatprep.subr.bf16.mxu1 %v831_v16  ;;  %v961_v25 = vpack.c.bf16 %v196_v22, %v194_v20  ;;  %v199_v27 = vld [vmem:[#allocation5 + $0x448] sm:$0xff]  ;;  %v70_v29 = vld [vmem:[#allocation5 + $0x40] sm:$0xff] }
  0x3e   :  { %960 = vmatprep.subr.bf16.mxu0 %v959_v17  ;;  %v835_v26 = vpack.c.bf16 %v73_v24, %v71_v23  ;;  %v201_v28 = vld [vmem:[#allocation5 + $0x458] sm:$0xff]  ;;  %v72_v31 = vld [vmem:[#allocation5 + $0x50] sm:$0xff]  ;;  %v198_v32 = vld [vmem:[#allocation5 + $0x440] sm:$0xff]  ;;  %p1205_p0 = pnand %p1204_p13, %p1198_p10 }
  0x3f   :  { %v963_v30 = vpack.c.bf16 %v201_v28, %v199_v27  ;;  %v200_v33 = vld [vmem:[#allocation5 + $0x450] sm:$0xff]  ;;  %v837_v34 = vpack.c.bf16 %v72_v31, %v70_v29  ;;  %v75_v35 = vld [vmem:[#allocation5 + $0x68] sm:$0xff]  ;;  %v77_v36 = vld [vmem:[#allocation5 + $0x78] sm:$0xff] }
  0x40   :  { %834 = vmatpush1.bf16.msra.mxu1 %v833_v21  ;;  %v203_v37 = vld [vmem:[#allocation5 + $0x468] sm:$0xff]  ;;  %v965_v38 = vpack.c.bf16 %v200_v33, %v198_v32  ;;  %v839_v39 = vpack.c.bf16 %v77_v36, %v75_v35  ;;  %v205_v40 = vld [vmem:[#allocation5 + $0x478] sm:$0xff]  ;;  %v74_v41 = vld [vmem:[#allocation5 + $0x60] sm:$0xff] }
  0x41   :  { %962 = vmatpush1.bf16.msra.mxu0 %v961_v25  ;;  %836 = vmatprep.subr.bf16.mxu1 %v835_v26  ;;  %v76_v42 = vld [vmem:[#allocation5 + $0x70] sm:$0xff]  ;;  %v967_v43 = vpack.c.bf16 %v205_v40, %v203_v37  ;;  %v202_v44 = vld [vmem:[#allocation5 + $0x460] sm:$0xff]  ;;  %v79_v46 = vld [vmem:[#allocation5 + $0x88] sm:$0xff] }
  0x42   :  { %964 = vmatprep.subr.bf16.mxu0 %v963_v30  ;;  %v204_v45 = vld [vmem:[#allocation5 + $0x470] sm:$0xff]  ;;  %v81_v47 = vld [vmem:[#allocation5 + $0x98] sm:$0xff]  ;;  %v207_v48 = vld [vmem:[#allocation5 + $0x488] sm:$0xff]  ;;  %v841_v50 = vpack.c.bf16 %v76_v42, %v74_v41 }
  0x43   :  { %v209_v49 = vld [vmem:[#allocation5 + $0x498] sm:$0xff]  ;;  %v969_v51 = vpack.c.bf16 %v204_v45, %v202_v44  ;;  %v843_v52 = vpack.c.bf16 %v81_v47, %v79_v46  ;;  %v78_v53 = vld [vmem:[#allocation5 + $0x80] sm:$0xff]  ;;  %v80_v54 = vld [vmem:[#allocation5 + $0x90] sm:$0xff]  ;;  %v320_v46 = vlaneseq  ;;  %v1232_v47 = vmov 1983009808  }
  0x44   :  { %838 = vmatpush1.bf16.msra.mxu1 %v837_v34  ;;  %v206_v55 = vld [vmem:[#allocation5 + $0x480] sm:$0xff]  ;;  %v971_v56 = vpack.c.bf16 %v209_v49, %v207_v48  ;;  %v208_v57 = vld [vmem:[#allocation5 + $0x490] sm:$0xff]  ;;  %v83_v58 = vld [vmem:[#allocation5 + $0xa8] sm:$0xff]  ;;  %v845_v62 = vpack.c.bf16 %v80_v54, %v78_v53  ;;  %v334_v48 = vunpack.c.l.s4 %v1232_v47 }
  0x45   :  { %966 = vmatpush1.bf16.msra.mxu0 %v965_v38  ;;  %840 = vmatprep.subr.bf16.mxu1 %v839_v39  ;;  %v85_v59 = vld [vmem:[#allocation5 + $0xb8] sm:$0xff]  ;;  %v211_v60 = vld [vmem:[#allocation5 + $0x4a8] sm:$0xff]  ;;  %v973_v63 = vpack.c.bf16 %v208_v57, %v206_v55  ;;  %v82_v1 = vld [vmem:[#allocation5 + $0xa0] sm:$0xff] }
  0x46   :  { %968 = vmatprep.subr.bf16.mxu0 %v967_v43  ;;  %v213_v61 = vld [vmem:[#allocation5 + $0x4b8] sm:$0xff]  ;;  %v847_v0 = vpack.c.bf16 %v85_v59, %v83_v58  ;;  %v84_v2 = vld [vmem:[#allocation5 + $0xb0] sm:$0xff]  ;;  %v210_v3 = vld [vmem:[#allocation5 + $0x4a0] sm:$0xff] }
  0x47   :  { %v975_v4 = vpack.c.bf16 %v213_v61, %v211_v60  ;;  %v212_v5 = vld [vmem:[#allocation5 + $0x4b0] sm:$0xff]  ;;  %v87_v6 = vld [vmem:[#allocation5 + $0xc8] sm:$0xff]  ;;  %v89_v7 = vld [vmem:[#allocation5 + $0xd8] sm:$0xff]  ;;  %v849_v10 = vpack.c.bf16 %v84_v2, %v82_v1  ;;  %v1303_v61 = vshrl.u32 %v320_v46, 7 }
  0x48   :  { %842 = vmatpush1.bf16.msra.mxu1 %v841_v50  ;;  %v215_v8 = vld [vmem:[#allocation5 + $0x4c8] sm:$0xff]  ;;  %v217_v9 = vld [vmem:[#allocation5 + $0x4d8] sm:$0xff]  ;;  %v977_v11 = vpack.c.bf16 %v212_v5, %v210_v3  ;;  %v851_v12 = vpack.c.bf16 %v89_v7, %v87_v6  ;;  %v86_v13 = vld [vmem:[#allocation5 + $0xc0] sm:$0xff] }
  0x49   :  { %970 = vmatpush1.bf16.msra.mxu0 %v969_v51  ;;  %844 = vmatprep.subr.bf16.mxu1 %v843_v52  ;;  %v88_v14 = vld [vmem:[#allocation5 + $0xd0] sm:$0xff]  ;;  %v214_v15 = vld [vmem:[#allocation5 + $0x4c0] sm:$0xff]  ;;  %v979_v16 = vpack.c.bf16 %v217_v9, %v215_v8  ;;  %v91_v18 = vld [vmem:[#allocation5 + $0xe8] sm:$0xff] }
  0x4a   :  { %972 = vmatprep.subr.bf16.mxu0 %v971_v56  ;;  %v216_v17 = vld [vmem:[#allocation5 + $0x4d0] sm:$0xff]  ;;  %v93_v19 = vld [vmem:[#allocation5 + $0xf8] sm:$0xff]  ;;  %v219_v20 = vld [vmem:[#allocation5 + $0x4e8] sm:$0xff]  ;;  %v853_v22 = vpack.c.bf16 %v88_v14, %v86_v13 }
  0x4b   :  { %v221_v21 = vld [vmem:[#allocation5 + $0x4f8] sm:$0xff]  ;;  %v981_v23 = vpack.c.bf16 %v216_v17, %v214_v15  ;;  %v855_v24 = vpack.c.bf16 %v93_v19, %v91_v18  ;;  %v90_v25 = vld [vmem:[#allocation5 + $0xe0] sm:$0xff]  ;;  %v92_v26 = vld [vmem:[#allocation5 + $0xf0] sm:$0xff] }
  0x4c   :  { %846 = vmatpush1.bf16.msra.mxu1 %v845_v62  ;;  %v218_v27 = vld [vmem:[#allocation5 + $0x4e0] sm:$0xff]  ;;  %v983_v28 = vpack.c.bf16 %v221_v21, %v219_v20  ;;  %v220_v29 = vld [vmem:[#allocation5 + $0x4f0] sm:$0xff]  ;;  %v95_v30 = vld [vmem:[#allocation5 + $0x108] sm:$0xff]  ;;  %v857_v34 = vpack.c.bf16 %v92_v26, %v90_v25  ;;  %v335_v62 = vunpack.c.0.s8 %v334_v48 }
  0x4d   :  { %974 = vmatpush1.bf16.msra.mxu0 %v973_v63  ;;  %848 = vmatprep.subr.bf16.mxu1 %v847_v0  ;;  %v97_v31 = vld [vmem:[#allocation5 + $0x118] sm:$0xff]  ;;  %v223_v32 = vld [vmem:[#allocation5 + $0x508] sm:$0xff]  ;;  %v985_v35 = vpack.c.bf16 %v220_v29, %v218_v27  ;;  %v94_v37 = vld [vmem:[#allocation5 + $0x100] sm:$0xff] }
  0x4e   :  { %976 = vmatprep.subr.bf16.mxu0 %v975_v4  ;;  %v225_v33 = vld [vmem:[#allocation5 + $0x518] sm:$0xff]  ;;  %v859_v36 = vpack.c.bf16 %v97_v31, %v95_v30  ;;  %v96_v38 = vld [vmem:[#allocation5 + $0x110] sm:$0xff]  ;;  %v222_v39 = vld [vmem:[#allocation5 + $0x500] sm:$0xff] }
  0x4f   :  { %v987_v40 = vpack.c.bf16 %v225_v33, %v223_v32  ;;  %v224_v41 = vld [vmem:[#allocation5 + $0x510] sm:$0xff]  ;;  %v99_v42 = vld [vmem:[#allocation5 + $0x128] sm:$0xff]  ;;  %v101_v43 = vld [vmem:[#allocation5 + $0x138] sm:$0xff]  ;;  %v861_v49 = vpack.c.bf16 %v96_v38, %v94_v37 }
  0x50   :  { %850 = vmatpush1.bf16.msra.mxu1 %v849_v10  ;;  %v227_v44 = vld [vmem:[#allocation5 + $0x528] sm:$0xff]  ;;  %v229_v45 = vld [vmem:[#allocation5 + $0x538] sm:$0xff]  ;;  %v989_v50 = vpack.c.bf16 %v224_v41, %v222_v39  ;;  %v863_v51 = vpack.c.bf16 %v101_v43, %v99_v42  ;;  %v98_v52 = vld [vmem:[#allocation5 + $0x120] sm:$0xff] }
  0x51   :  { %978 = vmatpush1.bf16.msra.mxu0 %v977_v11  ;;  %852 = vmatprep.subr.bf16.mxu1 %v851_v12  ;;  %v100_v53 = vld [vmem:[#allocation5 + $0x130] sm:$0xff]  ;;  %v226_v54 = vld [vmem:[#allocation5 + $0x520] sm:$0xff]  ;;  %v991_v55 = vpack.c.bf16 %v229_v45, %v227_v44  ;;  %v103_v57 = vld [vmem:[#allocation5 + $0x148] sm:$0xff]  ;;  %v1306_v11 = vsub.s32 %v335_v62, %v1303_v61 }
  0x52   :  { %980 = vmatprep.subr.bf16.mxu0 %v979_v16  ;;  %v228_v56 = vld [vmem:[#allocation5 + $0x530] sm:$0xff]  ;;  %v105_v58 = vld [vmem:[#allocation5 + $0x158] sm:$0xff]  ;;  %v231_v59 = vld [vmem:[#allocation5 + $0x548] sm:$0xff]  ;;  %v865_v63 = vpack.c.bf16 %v100_v53, %v98_v52 }
  0x53   :  { %v233_v60 = vld [vmem:[#allocation5 + $0x558] sm:$0xff]  ;;  %v993_v0 = vpack.c.bf16 %v228_v56, %v226_v54  ;;  %v867_v1 = vpack.c.bf16 %v105_v58, %v103_v57  ;;  %v102_v2 = vld [vmem:[#allocation5 + $0x140] sm:$0xff]  ;;  %v104_v3 = vld [vmem:[#allocation5 + $0x150] sm:$0xff] }
  0x54   :  { %854 = vmatpush1.bf16.msra.mxu1 %v853_v22  ;;  %v230_v4 = vld [vmem:[#allocation5 + $0x540] sm:$0xff]  ;;  %v995_v5 = vpack.c.bf16 %v233_v60, %v231_v59  ;;  %v232_v6 = vld [vmem:[#allocation5 + $0x550] sm:$0xff]  ;;  %v107_v7 = vld [vmem:[#allocation5 + $0x168] sm:$0xff]  ;;  %v869_v12 = vpack.c.bf16 %v104_v3, %v102_v2 }
  0x55   :  { %982 = vmatpush1.bf16.msra.mxu0 %v981_v23  ;;  %856 = vmatprep.subr.bf16.mxu1 %v855_v24  ;;  %v109_v8 = vld [vmem:[#allocation5 + $0x178] sm:$0xff]  ;;  %v235_v9 = vld [vmem:[#allocation5 + $0x568] sm:$0xff]  ;;  %v106_v13 = vld [vmem:[#allocation5 + $0x160] sm:$0xff]  ;;  %v997_v14 = vpack.c.bf16 %v232_v6, %v230_v4 }
  0x56   :  { %984 = vmatprep.subr.bf16.mxu0 %v983_v28  ;;  %v237_v10 = vld [vmem:[#allocation5 + $0x578] sm:$0xff]  ;;  %v871_v15 = vpack.c.bf16 %v109_v8, %v107_v7  ;;  %v108_v16 = vld [vmem:[#allocation5 + $0x170] sm:$0xff]  ;;  %v234_v17 = vld [vmem:[#allocation5 + $0x560] sm:$0xff] }
  0x57   :  { %v236_v18 = vld [vmem:[#allocation5 + $0x570] sm:$0xff]  ;;  %v999_v19 = vpack.c.bf16 %v237_v10, %v235_v9  ;;  %v111_v20 = vld [vmem:[#allocation5 + $0x188] sm:$0xff]  ;;  %v113_v21 = vld [vmem:[#allocation5 + $0x198] sm:$0xff]  ;;  %v873_v27 = vpack.c.bf16 %v108_v16, %v106_v13 }
  0x58   :  { %858 = vmatpush1.bf16.msra.mxu1 %v857_v34  ;;  %v1308_v22 = vld [vmem:[#allocation2] sm:$0xff]  ;;  %v239_v23 = vld [vmem:[#allocation5 + $0x588] sm:$0xff]  ;;  %v241_v24 = vld [vmem:[#allocation5 + $0x598] sm:$0xff]  ;;  %v1001_v29 = vpack.c.bf16 %v236_v18, %v234_v17  ;;  %v875_v30 = vpack.c.bf16 %v113_v21, %v111_v20 }
  0x59   :  { %986 = vmatpush1.bf16.msra.mxu0 %v985_v35  ;;  %860 = vmatprep.subr.bf16.mxu1 %v859_v36  ;;  %v1312_v25 = vrot.slane %v1308_v22, %v1306_v11  ;;  %v1314_v26 = vld [vmem:[#allocation2 + $0x8] sm:$0xff]  ;;  %v110_v31 = vld [vmem:[#allocation5 + $0x180] sm:$0xff]  ;;  %v112_v32 = vld [vmem:[#allocation5 + $0x190] sm:$0xff]  ;;  %v1003_v35 = vpack.c.bf16 %v241_v24, %v239_v23 }
  0x5a   :  { %988 = vmatprep.subr.bf16.mxu0 %v987_v40  ;;  %v1318_v28 = vrot.slane %v1314_v26, %v1306_v11  ;;  %v238_v33 = vld [vmem:[#allocation5 + $0x580] sm:$0xff]  ;;  %v240_v36 = vld [vmem:[#allocation5 + $0x590] sm:$0xff]  ;;  %v115_v37 = vld [vmem:[#allocation5 + $0x1a8] sm:$0xff]  ;;  %v877_v42 = vpack.c.bf16 %v112_v32, %v110_v31 }
  0x5b   :  { %v347_v34 = vcombine.high %v1312_v25, %v1312_v25  ;;  %v117_v38 = vld [vmem:[#allocation5 + $0x1b8] sm:$0xff]  ;;  %v243_v40 = vld [vmem:[#allocation5 + $0x5a8] sm:$0xff]  ;;  %v1005_v43 = vpack.c.bf16 %v240_v36, %v238_v33  ;;  %v114_v45 = vld [vmem:[#allocation5 + $0x1a0] sm:$0xff] }
  0x5c   :  { %862 = vmatpush1.bf16.msra.mxu1 %v861_v49  ;;  %v364_v39 = vcombine.high %v1318_v28, %v1318_v28  ;;  %v245_v41 = vld [vmem:[#allocation5 + $0x5b8] sm:$0xff]  ;;  %v879_v44 = vpack.c.bf16 %v117_v38, %v115_v37  ;;  %v116_v46 = vld [vmem:[#allocation5 + $0x1b0] sm:$0xff]  ;;  %v242_v47 = vld [vmem:[#allocation5 + $0x5a0] sm:$0xff] }
  0x5d   :  { %990 = vmatpush1.bf16.msra.mxu0 %v989_v50  ;;  %864 = vmatprep.subr.bf16.mxu1 %v863_v51  ;;  %v1007_v48 = vpack.c.bf16 %v245_v41, %v243_v40  ;;  %v244_v49 = vld [vmem:[#allocation5 + $0x5b0] sm:$0xff]  ;;  %v119_v50 = vld [vmem:[#allocation5 + $0x1c8] sm:$0xff]  ;;  %v121_v51 = vld [vmem:[#allocation5 + $0x1d8] sm:$0xff]  ;;  %v881_v54 = vpack.c.bf16 %v116_v46, %v114_v45 }
  0x5e   :  { %992 = vmatprep.subr.bf16.mxu0 %v991_v55  ;;  %438 = vmatprep.mubr.f32.mxu1 %v347_v34  ;;  %v247_v52 = vld [vmem:[#allocation5 + $0x5c8] sm:$0xff]  ;;  %v249_v53 = vld [vmem:[#allocation5 + $0x5d8] sm:$0xff]  ;;  %v1009_v55 = vpack.c.bf16 %v244_v49, %v242_v47  ;;  %v883_v56 = vpack.c.bf16 %v121_v51, %v119_v50  ;;  %v118_v57 = vld [vmem:[#allocation5 + $0x1c0] sm:$0xff] }
  0x5f   :  { %580 = vmatprep.mubr.f32.mxu0 %v364_v39  ;;  %v120_v58 = vld [vmem:[#allocation5 + $0x1d0] sm:$0xff]  ;;  %v246_v59 = vld [vmem:[#allocation5 + $0x5c0] sm:$0xff]  ;;  %v1011_v60 = vpack.c.bf16 %v249_v53, %v247_v52  ;;  %v253_v2 = vld [vmem:[#allocation5 + $0x5f8] sm:$0xff] }
  0x60   :  { %866 = vmatpush1.bf16.msra.mxu1 %v865_v63  ;;  %v248_v62 = vld [vmem:[#allocation5 + $0x5d0] sm:$0xff]  ;;  %v123_v63 = vld [vmem:[#allocation5 + $0x1e8] sm:$0xff]  ;;  %v885_v3 = vpack.c.bf16 %v120_v58, %v118_v57  ;;  %v122_v6 = vld [vmem:[#allocation5 + $0x1e0] sm:$0xff] }
  0x61   :  { %994 = vmatpush1.bf16.msra.mxu0 %v993_v0  ;;  %868 = vmatprep.subr.bf16.mxu1 %v867_v1  ;;  %v125_v0 = vld [vmem:[#allocation5 + $0x1f8] sm:$0xff]  ;;  %v251_v1 = vld [vmem:[#allocation5 + $0x5e8] sm:$0xff]  ;;  %v1013_v4 = vpack.c.bf16 %v248_v62, %v246_v59  ;;  %v124_v7 = vld [vmem:[#allocation5 + $0x1f0] sm:$0xff] }
  0x62   :  { %996 = vmatprep.subr.bf16.mxu0 %v995_v5  ;;  %v887_v5 = vpack.c.bf16 %v125_v0, %v123_v63  ;;  %v250_v8 = vld [vmem:[#allocation5 + $0x5e0] sm:$0xff]  ;;  %v1015_v9 = vpack.c.bf16 %v253_v2, %v251_v1  ;;  %v252_v10 = vld [vmem:[#allocation5 + $0x5f0] sm:$0xff]  ;;  %v127_v13 = vld [vmem:[#allocation5 + $0x208] sm:$0xff]  ;;  %v889_v18 = vpack.c.bf16 %v124_v7, %v122_v6 }
  0x63   :  { %v255_v16 = vld [vmem:[#allocation5 + $0x608] sm:$0xff]  ;;  %v257_v17 = vld [vmem:[#allocation5 + $0x618] sm:$0xff]  ;;  %v126_v21 = vld [vmem:[#allocation5 + $0x200] sm:$0xff] }
  0x64   :  { %870 = vmatpush1.bf16.msra.mxu1 %v869_v12  ;;  %v332_v12 = vcombine.high %v1308_v22, %v1308_v22  ;;  %v128_v23 = vld [vmem:[#allocation5 + $0x210] sm:$0xff]  ;;  %v254_v24 = vld [vmem:[#allocation5 + $0x600] sm:$0xff]  ;;  %v131_v22 = vld [vmem:[#allocation5 + $0x228] sm:$0xff] }
  0x65   :  { %998 = vmatpush1.bf16.msra.mxu0 %v997_v14  ;;  %872 = vmatprep.subr.bf16.mxu1 %v871_v15  ;;  %v129_v14 = vld [vmem:[#allocation5 + $0x218] sm:$0xff]  ;;  %v349_v15 = vcombine.high %v1314_v26, %v1314_v26  ;;  %v259_v26 = vld [vmem:[#allocation5 + $0x628] sm:$0xff]  ;;  %v893_v34 = vpack.c.bf16 %v128_v23, %v126_v21  ;;  %v130_v37 = vld [vmem:[#allocation5 + $0x220] sm:$0xff] }
  0x66   :  { %1000 = vmatprep.subr.bf16.mxu0 %v999_v19  ;;  %v1017_v19 = vpack.c.bf16 %v252_v10, %v250_v8  ;;  %v891_v20 = vpack.c.bf16 %v129_v14, %v127_v13  ;;  %v1329_v31 = vrot.slane %v332_v12, %v1306_v11  ;;  %v261_v32 = vld [vmem:[#allocation5 + $0x638] sm:$0xff]  ;;  %v132_v38 = vld [vmem:[#allocation5 + $0x230] sm:$0xff]  ;;  %v258_v39 = vld [vmem:[#allocation5 + $0x620] sm:$0xff] }
  0x67   :  { %v1332_v33 = vrot.slane %v349_v15, %v1306_v11  ;;  %v1023_v40 = vpack.c.bf16 %v261_v32, %v259_v26  ;;  %v260_v41 = vld [vmem:[#allocation5 + $0x630] sm:$0xff]  ;;  %v263_v11 = vld [vmem:[#allocation5 + $0x648] sm:$0xff]  ;;  %v265_v45 = vld [vmem:[#allocation5 + $0x658] sm:$0xff]  ;;  %v897_v47 = vpack.c.bf16 %v132_v38, %v130_v37 }
  0x68   :  { %874 = vmatpush1.bf16.msra.mxu1 %v873_v27  ;;  %v1019_v27 = vpack.c.bf16 %v257_v17, %v255_v16  ;;  %v134_v50 = vld [vmem:[#allocation5 + $0x240] sm:$0xff]  ;;  %v136_v51 = vld [vmem:[#allocation5 + $0x250] sm:$0xff]  ;;  %v1027_v53 = vpack.c.bf16 %v265_v45, %v263_v11  ;;  %v269_v57 = vld [vmem:[#allocation5 + $0x678] sm:$0xff] }
  0x69   :  { %1002 = vmatpush1.bf16.msra.mxu0 %v1001_v29  ;;  %876 = vmatprep.subr.bf16.mxu1 %v875_v30  ;;  %v256_v29 = vld [vmem:[#allocation5 + $0x610] sm:$0xff]  ;;  %v133_v30 = vld [vmem:[#allocation5 + $0x238] sm:$0xff]  ;;  %v365_v46 = vcombine.high %v1332_v33, %v1332_v33  ;;  %v262_v52 = vld [vmem:[#allocation5 + $0x640] sm:$0xff]  ;;  %v901_v58 = vpack.c.bf16 %v136_v51, %v134_v50 }
  0x6a   :  { %1004 = vmatprep.subr.bf16.mxu0 %v1003_v35  ;;  %v1021_v35 = vpack.c.bf16 %v256_v29, %v254_v24  ;;  %v895_v36 = vpack.c.bf16 %v133_v30, %v131_v22  ;;  %v140_v62 = vld [vmem:[#allocation5 + $0x270] sm:$0xff]  ;;  %v266_v63 = vld [vmem:[#allocation5 + $0x660] sm:$0xff]  ;;  %v143_v2 = vld [vmem:[#allocation5 + $0x288] sm:$0xff] }
  0x6b   :  { %v268_v1 = vld [vmem:[#allocation5 + $0x670] sm:$0xff]  ;;  %v270_v12 = vld [vmem:[#allocation5 + $0x680] sm:$0xff]  ;;  %v147_v15 = vld [vmem:[#allocation5 + $0x2a8] sm:$0xff] }
  0x6c   :  { %878 = vmatpush1.bf16.msra.mxu1 %v877_v42  ;;  %v135_v42 = vld [vmem:[#allocation5 + $0x248] sm:$0xff]  ;;  %v1033_v7 = vpack.c.bf16 %v268_v1, %v266_v63  ;;  %v144_v10 = vld [vmem:[#allocation5 + $0x290] sm:$0xff]  ;;  %v149_v16 = vld [vmem:[#allocation5 + $0x2b8] sm:$0xff] }
  0x6d   :  { %1006 = vmatpush1.bf16.msra.mxu0 %v1005_v43  ;;  %880 = vmatprep.subr.bf16.mxu1 %v879_v44  ;;  %v137_v43 = vld [vmem:[#allocation5 + $0x258] sm:$0xff]  ;;  %v348_v44 = vcombine.high %v1329_v31, %v1329_v31  ;;  %v272_v14 = vld [vmem:[#allocation5 + $0x690] sm:$0xff]  ;;  %v275_v17 = vld [vmem:[#allocation5 + $0x6a8] sm:$0xff]  ;;  %v911_v21 = vpack.c.bf16 %v149_v16, %v147_v15 }
  0x6e   :  { %1008 = vmatprep.subr.bf16.mxu0 %v1007_v48  ;;  %v1025_v48 = vpack.c.bf16 %v260_v41, %v258_v39  ;;  %v899_v49 = vpack.c.bf16 %v137_v43, %v135_v42  ;;  %v146_v23 = vld [vmem:[#allocation5 + $0x2a0] sm:$0xff]  ;;  %v148_v24 = vld [vmem:[#allocation5 + $0x2b0] sm:$0xff]  ;;  %v151_v30 = vld [vmem:[#allocation5 + $0x2c8] sm:$0xff] }
  0x6f   :  { %v276_v22 = vld [vmem:[#allocation5 + $0x6b0] sm:$0xff]  ;;  %v153_v26 = vld [vmem:[#allocation5 + $0x2d8] sm:$0xff]  ;;  %v279_v32 = vld [vmem:[#allocation5 + $0x6c8] sm:$0xff] }
  0x70   :  { %882 = vmatpush1.bf16.msra.mxu1 %v881_v54  ;;  %v264_v54 = vld [vmem:[#allocation5 + $0x650] sm:$0xff]  ;;  %v915_v37 = vpack.c.bf16 %v153_v26, %v151_v30  ;;  %v150_v38 = vld [vmem:[#allocation5 + $0x2c0] sm:$0xff]  ;;  %v155_v43 = vld [vmem:[#allocation5 + $0x2e8] sm:$0xff] }
  0x71   :  { %1010 = vmatpush1.bf16.msra.mxu0 %v1009_v55  ;;  %884 = vmatprep.subr.bf16.mxu1 %v883_v56  ;;  %v141_v55 = vld [vmem:[#allocation5 + $0x278] sm:$0xff]  ;;  %v267_v56 = vld [vmem:[#allocation5 + $0x668] sm:$0xff]  ;;  %v152_v39 = vld [vmem:[#allocation5 + $0x2d0] sm:$0xff] }
  0x72   :  { %1012 = vmatprep.subr.bf16.mxu0 %v1011_v60  ;;  %v138_v60 = vld [vmem:[#allocation5 + $0x260] sm:$0xff]  ;;  %v1031_v0 = vpack.c.bf16 %v269_v57, %v267_v56  ;;  %v280_v42 = vld [vmem:[#allocation5 + $0x6d0] sm:$0xff]  ;;  %v283_v11 = vld [vmem:[#allocation5 + $0x6e8] sm:$0xff] }
  0x73   :  { %v905_v6 = vpack.c.bf16 %v140_v62, %v138_v60  ;;  %v285_v45 = vld [vmem:[#allocation5 + $0x6f8] sm:$0xff]  ;;  %v156_v50 = vld [vmem:[#allocation5 + $0x2f0] sm:$0xff]  ;;  %v282_v51 = vld [vmem:[#allocation5 + $0x6e0] sm:$0xff] }
  0x74   :  { %886 = vmatpush1.bf16.msra.mxu1 %v885_v3  ;;  %v145_v3 = vld [vmem:[#allocation5 + $0x298] sm:$0xff]  ;;  %v160_v60 = vld [vmem:[#allocation5 + $0x310] sm:$0xff]  ;;  %v286_v62 = vld [vmem:[#allocation5 + $0x700] sm:$0xff] }
  0x75   :  { %1014 = vmatpush1.bf16.msra.mxu0 %v1013_v4  ;;  %888 = vmatprep.subr.bf16.mxu1 %v887_v5  ;;  %v271_v4 = vld [vmem:[#allocation5 + $0x688] sm:$0xff]  ;;  %v273_v5 = vld [vmem:[#allocation5 + $0x698] sm:$0xff]  ;;  %v907_v8 = vpack.c.bf16 %v145_v3, %v143_v2 }
  0x76   :  { %1016 = vmatprep.subr.bf16.mxu0 %v1015_v9  ;;  %v142_v9 = vld [vmem:[#allocation5 + $0x280] sm:$0xff]  ;;  %v1035_v13 = vpack.c.bf16 %v273_v5, %v271_v4  ;;  %v289_v56 = vld [vmem:[#allocation5 + $0x718] sm:$0xff]  ;;  %v163_v1 = vld [vmem:[#allocation5 + $0x328] sm:$0xff] }
  0x77   :  { %v165_v2 = vld [vmem:[#allocation5 + $0x338] sm:$0xff]  ;;  %v291_v3 = vld [vmem:[#allocation5 + $0x728] sm:$0xff] }
  0x78   :  { %890 = vmatpush1.bf16.msra.mxu1 %v889_v18  ;;  %v277_v18 = vld [vmem:[#allocation5 + $0x6b8] sm:$0xff]  ;;  %v295_v16 = vld [vmem:[#allocation5 + $0x748] sm:$0xff] }
  0x79   :  { %1018 = vmatpush1.bf16.msra.mxu0 %v1017_v19  ;;  %892 = vmatprep.subr.bf16.mxu1 %v891_v20  ;;  %v909_v19 = vpack.c.bf16 %v144_v10, %v142_v9  ;;  %v1037_v20 = vpack.c.bf16 %v272_v14, %v270_v12  ;;  %v1039_v29 = vpack.c.bf16 %v277_v18, %v275_v17  ;;  %v293_v4 = vld [vmem:[#allocation5 + $0x738] sm:$0xff]  ;;  %v164_v9 = vld [vmem:[#allocation5 + $0x330] sm:$0xff]  ;;  %v290_v10 = vld [vmem:[#allocation5 + $0x720] sm:$0xff] }
  0x7a   :  { %1020 = vmatprep.subr.bf16.mxu0 %v1019_v27  ;;  %v274_v27 = vld [vmem:[#allocation5 + $0x6a0] sm:$0xff]  ;;  %v1055_v12 = vpack.c.bf16 %v293_v4, %v291_v3  ;;  %v167_v14 = vld [vmem:[#allocation5 + $0x348] sm:$0xff]  ;;  %v169_v15 = vld [vmem:[#allocation5 + $0x358] sm:$0xff] }
  0x7b   :  { %439 = vmatmul.mubr.f32.vlgmr.msra.gmra.mrb[0].mxu1 %v1312_v25  ;;  %v139_v25 = vld [vmem:[#allocation5 + $0x268] sm:$0xff]  ;;  %v297_v17 = vld [vmem:[#allocation5 + $0x758] sm:$0xff] }
  0x7c   :  { %894 = vmatpush1.bf16.msra.mxu1 %v893_v34  ;;  %581 = vmatmul.mubr.f32.vlgmr.msra.gmra.mrb[0].mxu0 %v1318_v28  ;;  %v1029_v28 = vpack.c.bf16 %v264_v54, %v262_v52  ;;  %v903_v59 = vpack.c.bf16 %v141_v55, %v139_v25  ;;  %v281_v34 = vld [vmem:[#allocation5 + $0x6d8] sm:$0xff]  ;;  %v1047_v52 = vpack.c.bf16 %v285_v45, %v283_v11  ;;  %v159_v54 = vld [vmem:[#allocation5 + $0x308] sm:$0xff] }
  0x7d   :  { %1022 = vmatpush1.bf16.msra.mxu0 %v1021_v35  ;;  %896 = vmatprep.subr.bf16.mxu1 %v895_v36  ;;  %v913_v35 = vpack.c.bf16 %v148_v24, %v146_v23  ;;  %v1041_v36 = vpack.c.bf16 %v276_v22, %v274_v27  ;;  %v1043_v41 = vpack.c.bf16 %v281_v34, %v279_v32  ;;  %v161_v25 = vld [vmem:[#allocation5 + $0x318] sm:$0xff]  ;;  %v287_v55 = vld [vmem:[#allocation5 + $0x708] sm:$0xff]  ;;  %v168_v23 = vld [vmem:[#allocation5 + $0x350] sm:$0xff] }
  0x7e   :  { %1024 = vmatprep.subr.bf16.mxu0 %v1023_v40  ;;  %509 = vmatprep.mubr.f32.mxu1 %v348_v44  ;;  %v278_v40 = vld [vmem:[#allocation5 + $0x6c0] sm:$0xff]  ;;  %v157_v44 = vld [vmem:[#allocation5 + $0x2f8] sm:$0xff]  ;;  %v1051_v63 = vpack.c.bf16 %v289_v56, %v287_v55  ;;  %v1059_v27 = vpack.c.bf16 %v297_v17, %v295_v16  ;;  %v171_v22 = vld [vmem:[#allocation5 + $0x368] sm:$0xff] }
  0x7f   :  { %651 = vmatprep.mubr.f32.mxu0 %v365_v46  ;;  %v917_v46 = vpack.c.bf16 %v152_v39, %v150_v38  ;;  %v294_v24 = vld [vmem:[#allocation5 + $0x740] sm:$0xff]  ;;  %v173_v30 = vld [vmem:[#allocation5 + $0x378] sm:$0xff]  ;;  %v299_v26 = vld [vmem:[#allocation5 + $0x768] sm:$0xff] }
  0x80   :  { %898 = vmatpush1.bf16.msra.mxu1 %v897_v47  ;;  %v1045_v47 = vpack.c.bf16 %v280_v42, %v278_v40  ;;  %v301_v32 = vld [vmem:[#allocation5 + $0x778] sm:$0xff]  ;;  %v172_v38 = vld [vmem:[#allocation5 + $0x370] sm:$0xff]  ;;  %v298_v39 = vld [vmem:[#allocation5 + $0x760] sm:$0xff] }
  0x81   :  { %1026 = vmatpush1.bf16.msra.mxu0 %v1025_v48  ;;  %900 = vmatprep.subr.bf16.mxu1 %v899_v49  ;;  %v919_v48 = vpack.c.bf16 %v157_v44, %v155_v43  ;;  %v154_v49 = vld [vmem:[#allocation5 + $0x2e0] sm:$0xff]  ;;  %v1063_v40 = vpack.c.bf16 %v301_v32, %v299_v26  ;;  %v175_v42 = vld [vmem:[#allocation5 + $0x388] sm:$0xff]  ;;  %v177_v43 = vld [vmem:[#allocation5 + $0x398] sm:$0xff] }
  0x82   :  { %1028 = vmatprep.subr.bf16.mxu0 %v1027_v53  ;;  %v284_v53 = vld [vmem:[#allocation5 + $0x6f0] sm:$0xff]  ;;  %v921_v57 = vpack.c.bf16 %v156_v50, %v154_v49  ;;  %v303_v44 = vld [vmem:[#allocation5 + $0x788] sm:$0xff]  ;;  %v305_v11 = vld [vmem:[#allocation5 + $0x798] sm:$0xff] }
  0x83   :  { %v176_v49 = vld [vmem:[#allocation5 + $0x390] sm:$0xff]  ;;  %v302_v50 = vld [vmem:[#allocation5 + $0x780] sm:$0xff]  ;;  %v309_v55 = vld [vmem:[#allocation5 + $0x7b8] sm:$0xff] }
  0x84   :  { %902 = vmatpush1.bf16.msra.mxu1 %v901_v58  ;;  %v1049_v58 = vpack.c.bf16 %v284_v53, %v282_v51  ;;  %v1067_v51 = vpack.c.bf16 %v305_v11, %v303_v44  ;;  %v179_v53 = vld [vmem:[#allocation5 + $0x3a8] sm:$0xff]  ;;  %v313_v3 = vld [vmem:[#allocation5 + $0x7d8] sm:$0xff]  ;;  %v672_v44 = vld [vmem:[#allocation7 + $0x40] sm:$0xff] }
  0x85   :  { %1030 = vmatpush1.bf16.msra.mxu0 %v1029_v28  ;;  %904 = vmatprep.subr.bf16.mxu1 %v903_v59  ;;  %v923_v28 = vpack.c.bf16 %v161_v25, %v159_v54  ;;  %v158_v59 = vld [vmem:[#allocation5 + $0x300] sm:$0xff]  ;;  %v181_v54 = vld [vmem:[#allocation5 + $0x3b8] sm:$0xff]  ;;  %v307_v25 = vld [vmem:[#allocation5 + $0x7a8] sm:$0xff] }
  0x86   :  { %1032 = vmatprep.subr.bf16.mxu0 %v1031_v0  ;;  %v288_v0 = vld [vmem:[#allocation5 + $0x710] sm:$0xff]  ;;  %v925_v5 = vpack.c.bf16 %v160_v60, %v158_v59  ;;  %v306_v60 = vld [vmem:[#allocation5 + $0x7a0] sm:$0xff]  ;;  %v317_v16 = vld [vmem:[#allocation5 + $0x7f8] sm:$0xff] }
  0x87   :  { %v180_v59 = vld [vmem:[#allocation5 + $0x3b0] sm:$0xff]  ;;  %v665_v26 = vld [vmem:[#allocation7 + $0x8] sm:$0xff] }
  0x88   :  { %906 = vmatpush1.bf16.msra.mxu1 %v905_v6  ;;  %v1053_v6 = vpack.c.bf16 %v288_v0, %v286_v62  ;;  %v1071_v62 = vpack.c.bf16 %v309_v55, %v307_v25  ;;  %v183_v0 = vld [vmem:[#allocation5 + $0x3c8] sm:$0xff]  ;;  %v318_v25 = vld [vmem:[%s1364_s2] sm:$0x3]  ;;  %v326_v55 = vsub.s32 1, %v1303_v61 }
  0x89   :  { %1034 = vmatpush1.bf16.msra.mxu0 %v1033_v7  ;;  %908 = vmatprep.subr.bf16.mxu1 %v907_v8  ;;  %v927_v7 = vpack.c.bf16 %v165_v2, %v163_v1  ;;  %v162_v8 = vld [vmem:[#allocation5 + $0x320] sm:$0xff]  ;;  %v185_v1 = vld [vmem:[#allocation5 + $0x3d8] sm:$0xff]  ;;  %v311_v2 = vld [vmem:[#allocation5 + $0x7c8] sm:$0xff] }
  0x8a   :  { %1036 = vmatprep.subr.bf16.mxu0 %v1035_v13  ;;  %v292_v13 = vld [vmem:[#allocation5 + $0x730] sm:$0xff]  ;;  %v929_v18 = vpack.c.bf16 %v164_v9, %v162_v8  ;;  %v310_v9 = vld [vmem:[#allocation5 + $0x7c0] sm:$0xff]  ;;  %v673_v11 = vld [vmem:[#allocation7 + $0x48] sm:$0xff] }
  0x8b   :  { %v184_v8 = vld [vmem:[#allocation5 + $0x3d0] sm:$0xff] }
  0x8c   :  { %910 = vmatpush1.bf16.msra.mxu1 %v909_v19  ;;  %v1057_v19 = vpack.c.bf16 %v292_v13, %v290_v10  ;;  %v1075_v10 = vpack.c.bf16 %v313_v3, %v311_v2  ;;  %v187_v13 = vld [vmem:[#allocation5 + $0x3e8] sm:$0xff] }
  0x8d   :  { %1038 = vmatpush1.bf16.msra.mxu0 %v1037_v20  ;;  %912 = vmatprep.subr.bf16.mxu1 %v911_v21  ;;  %v931_v20 = vpack.c.bf16 %v169_v15, %v167_v14  ;;  %v166_v21 = vld [vmem:[#allocation5 + $0x340] sm:$0xff]  ;;  %v189_v14 = vld [vmem:[#allocation5 + $0x3f8] sm:$0xff]  ;;  %v315_v15 = vld [vmem:[#allocation5 + $0x7e8] sm:$0xff] }
  0x8e   :  { %1040 = vmatprep.subr.bf16.mxu0 %v1039_v29  ;;  %v296_v29 = vld [vmem:[#allocation5 + $0x750] sm:$0xff]  ;;  %v933_v34 = vpack.c.bf16 %v168_v23, %v166_v21  ;;  %v1079_v23 = vpack.c.bf16 %v317_v16, %v315_v15 }
  0x8f   :  { %v188_v21 = vld [vmem:[#allocation5 + $0x3f0] sm:$0xff] }
  0x90   :  { %914 = vmatpush1.bf16.msra.mxu1 %v913_v35  ;;  %v1061_v35 = vpack.c.bf16 %v296_v29, %v294_v24  ;;  %v314_v24 = vld [vmem:[#allocation5 + $0x7e0] sm:$0xff] }
  0x91   :  { %1042 = vmatpush1.bf16.msra.mxu0 %v1041_v36  ;;  %916 = vmatprep.subr.bf16.mxu1 %v915_v37  ;;  %v935_v36 = vpack.c.bf16 %v173_v30, %v171_v22  ;;  %v170_v37 = vld [vmem:[#allocation5 + $0x360] sm:$0xff] }
  0x92   :  { %1044 = vmatprep.subr.bf16.mxu0 %v1043_v41  ;;  %v300_v41 = vld [vmem:[#allocation5 + $0x770] sm:$0xff]  ;;  %v937_v45 = vpack.c.bf16 %v172_v38, %v170_v37  ;;  %v664_v30 = vld [vmem:[#allocation7] sm:$0xff] }
  0x93   :  { %v1084_v32 = vpack.c.bf16 %v665_v26, %v664_v30  ;;  %v668_v38 = vld [vmem:[#allocation7 + $0x20] sm:$0xff] }
  0x94   :  { %918 = vmatpush1.bf16.msra.mxu1 %v917_v46  ;;  %v1065_v46 = vpack.c.bf16 %v300_v41, %v298_v39  ;;  %v669_v39 = vld [vmem:[#allocation7 + $0x28] sm:$0xff]  ;;  %v670_v41 = vld [vmem:[#allocation7 + $0x30] sm:$0xff] }
  0x95   :  { %1046 = vmatpush1.bf16.msra.mxu0 %v1045_v47  ;;  %920 = vmatprep.subr.bf16.mxu1 %v919_v48  ;;  %v939_v47 = vpack.c.bf16 %v177_v43, %v175_v42  ;;  %v174_v48 = vld [vmem:[#allocation5 + $0x380] sm:$0xff]  ;;  %v671_v42 = vld [vmem:[#allocation7 + $0x38] sm:$0xff] }
  0x96   :  { %1048 = vmatprep.subr.bf16.mxu0 %v1047_v52  ;;  %v304_v52 = vld [vmem:[#allocation5 + $0x790] sm:$0xff]  ;;  %v941_v56 = vpack.c.bf16 %v176_v49, %v174_v48  ;;  %v1093_v43 = vpack.c.bf16 %v671_v42, %v670_v41  ;;  %v677_v48 = vld [vmem:[#allocation7 + $0x68] sm:$0xff] }
  0x98   :  { %922 = vmatpush1.bf16.msra.mxu1 %v921_v57  ;;  %v1069_v57 = vpack.c.bf16 %v304_v52, %v302_v50  ;;  %v678_v50 = vld [vmem:[#allocation7 + $0x70] sm:$0xff] }
  0x99   :  { %1050 = vmatpush1.bf16.msra.mxu0 %v1049_v58  ;;  %924 = vmatprep.subr.bf16.mxu1 %v923_v28  ;;  %v943_v58 = vpack.c.bf16 %v181_v54, %v179_v53  ;;  %v178_v28 = vld [vmem:[#allocation5 + $0x3a0] sm:$0xff]  ;;  %v1235_v53 = vmov 0.0   ;;  %v322_v54 = vsub.s32 0, %v1303_v61  ;;  %v774_v61 = vld [vmem:[%s1366_s4] ss:$0 sm:$0xff] }
  0x9a   :  { %1052 = vmatprep.subr.bf16.mxu0 %v1051_v63  ;;  %v308_v63 = vld [vmem:[#allocation5 + $0x7b0] sm:$0xff]  ;;  %v945_v4 = vpack.c.bf16 %v180_v59, %v178_v28 }
  0x9c   :  { %926 = vmatpush1.bf16.msra.mxu1 %v925_v5  ;;  %v1073_v5 = vpack.c.bf16 %v308_v63, %v306_v60 }
  0x9d   :  { %1054 = vmatpush1.bf16.msra.mxu0 %v1053_v6  ;;  %928 = vmatprep.subr.bf16.mxu1 %v927_v7  ;;  %v947_v6 = vpack.c.bf16 %v185_v1, %v183_v0  ;;  %v182_v7 = vld [vmem:[#allocation5 + $0x3c0] sm:$0xff] }
  0x9e   :  { %1056 = vmatprep.subr.bf16.mxu0 %v1055_v12  ;;  %v312_v12 = vld [vmem:[#allocation5 + $0x7d0] sm:$0xff]  ;;  %v949_v17 = vpack.c.bf16 %v184_v8, %v182_v7 }
  0xa0   :  { %930 = vmatpush1.bf16.msra.mxu1 %v929_v18  ;;  %v1077_v18 = vpack.c.bf16 %v312_v12, %v310_v9 }
  0xa1   :  { %1058 = vmatpush1.bf16.msra.mxu0 %v1057_v19  ;;  %932 = vmatprep.subr.bf16.mxu1 %v931_v20  ;;  %v951_v19 = vpack.c.bf16 %v189_v14, %v187_v13  ;;  %v186_v20 = vld [vmem:[#allocation5 + $0x3e0] sm:$0xff] }
  0xa2   :  { %1060 = vmatprep.subr.bf16.mxu0 %v1059_v27  ;;  %v316_v27 = vld [vmem:[#allocation5 + $0x7f0] sm:$0xff]  ;;  %v953_v29 = vpack.c.bf16 %v188_v21, %v186_v20 }
  0xa3   :  { %v1081_v22 = vpack.c.bf16 %v316_v27, %v314_v24 }
  0xa4   :  { %934 = vmatpush1.bf16.msra.mxu1 %v933_v34  ;;  %v1233_v34 = vmov 0.0|0.0  }
  0xa5   :  { %1062 = vmatpush1.bf16.msra.mxu0 %v1061_v35  ;;  %936 = vmatprep.subr.bf16.mxu1 %v935_v36  ;;  %v666_v35 = vld [vmem:[#allocation7 + $0x10] sm:$0xff]  ;;  %v667_v36 = vld [vmem:[#allocation7 + $0x18] sm:$0xff] }
  0xa6   :  { %1064 = vmatprep.subr.bf16.mxu0 %v1063_v40  ;;  %v1087_v37 = vpack.c.bf16 %v667_v36, %v666_v35  ;;  %v1090_v40 = vpack.c.bf16 %v669_v39, %v668_v38 }
  0xa8   :  { %938 = vmatpush1.bf16.msra.mxu1 %v937_v45  ;;  %v675_v45 = vld [vmem:[#allocation7 + $0x58] sm:$0xff] }
  0xa9   :  { %1066 = vmatpush1.bf16.msra.mxu0 %v1065_v46  ;;  %940 = vmatprep.subr.bf16.mxu1 %v939_v47  ;;  %v676_v47 = vld [vmem:[#allocation7 + $0x60] sm:$0xff] }
  0xaa   :  { %1068 = vmatprep.subr.bf16.mxu0 %v1067_v51  ;;  %v1102_v49 = vpack.c.bf16 %v677_v48, %v676_v47  ;;  %v679_v51 = vld [vmem:[#allocation7 + $0x78] sm:$0xff] }
  0xab   :  { %v1105_v52 = vpack.c.bf16 %v679_v51, %v678_v50 }
  0xac   :  { %942 = vmatpush1.bf16.msra.mxu1 %v941_v56  ;;  %v323_v56 = vrot.slane %v318_v25, %v322_v54 }
  0xad   :  { %1070 = vmatpush1.bf16.msra.mxu0 %v1069_v57  ;;  %944 = vmatprep.subr.bf16.mxu1 %v943_v58  ;;  %v327_v57 = vrot.slane %v318_v25, %v326_v55 }
  0xae   :  { %1072 = vmatprep.subr.bf16.mxu0 %v1071_v62 }
  0xb0   :  { %946 = vmatpush1.bf16.msra.mxu1 %v945_v4 }
  0xb1   :  { %1074 = vmatpush1.bf16.msra.mxu0 %v1073_v5  ;;  %948 = vmatprep.subr.bf16.mxu1 %v947_v6 }
  0xb2   :  { %1076 = vmatprep.subr.bf16.mxu0 %v1075_v10 }
  0xb4   :  { %950 = vmatpush1.bf16.msra.mxu1 %v949_v17 }
  0xb5   :  { %1078 = vmatpush1.bf16.msra.mxu0 %v1077_v18  ;;  %952 = vmatprep.subr.bf16.mxu1 %v951_v19 }
  0xb6   :  { %1080 = vmatprep.subr.bf16.mxu0 %v1079_v23 }
  0xb8   :  { %954 = vmatpush1.bf16.msra.mxu1 %v953_v29 }
  0xb9   :  { %1082 = vmatpush1.bf16.msra.mxu0 %v1081_v22  ;;  %1083 = vmatprep.subr.bf16.mxu1 %v1233_v34 }
  0xbb   :  { %510 = vmatmul.mubr.f32.vlgmr.msra.gmra.mrb[0].mxu1 %v1329_v31  ;;  %v1096_v31 = vpack.c.bf16 %v673_v11, %v672_v44 }
  0xbc   :  { %652 = vmatmul.mubr.f32.vlgmr.msra.gmra.mrb[0].mxu0 %v1332_v33  ;;  %1085 = vmatpush3.bf16.msra.mxu1 %v1084_v32  ;;  %v674_v33 = vld [vmem:[#allocation7 + $0x50] sm:$0xff] }
  0xbd   :  { %1086 = vmatprep.subr.bf16.mxu1 %v1233_v34  ;;  %v1099_v46 = vpack.c.bf16 %v675_v45, %v674_v33  ;;  %824 = vmatprep.mubr.msk.f32.mxu1 %vm1234_vm0, %v1235_v53 }
  0xc0   :  { %1088 = vmatpush3.bf16.msra.mxu1 %v1087_v37 }
  0xc1   :  { %1089 = vmatprep.subr.bf16.mxu1 %v1233_v34 }
  0xc4   :  { %1091 = vmatpush3.bf16.msra.mxu1 %v1090_v40 }
  0xc5   :  { %1092 = vmatprep.subr.bf16.mxu1 %v1233_v34 }
  0xc8   :  { %1094 = vmatpush3.bf16.msra.mxu1 %v1093_v43 }
  0xc9   :  { %1095 = vmatprep.subr.bf16.mxu1 %v1233_v34 }
  0xcc   :  { %1097 = vmatpush3.bf16.msra.mxu1 %v1096_v31 }
  0xcd   :  { %1098 = vmatprep.subr.bf16.mxu1 %v1233_v34 }
  0xd0   :  { %1100 = vmatpush3.bf16.msra.mxu1 %v1099_v46 }
  0xd1   :  { %1101 = vmatprep.subr.bf16.mxu1 %v1233_v34 }
  0xd4   :  { %1103 = vmatpush3.bf16.msra.mxu1 %v1102_v49 }
  0xd5   :  { %1104 = vmatprep.subr.bf16.mxu1 %v1233_v34 }
  0xd8   :  { %1106 = vmatpush3.bf16.msra.mxu1 %v1105_v52 }
 0x18e   :  { %v511_v58 = vpop.f32.mrb[0].mxu1 }
 0x18f   :  { %v1107_v28 = vadd.f32 %v511_v58, %v323_v56  ;;  %v653_v59 = vpop.f32.mrb[0].mxu0  ;;  %v513_v60 = vpop.f32.mrb[1].mxu1 }
 0x190   :  { %v1109_v62 = vadd.f32 %v513_v60, %v327_v57  ;;  %v655_v63 = vpop.f32.mrb[1].mxu0 }
 0x191   :  { %v1108_v0 = vadd.f32 %v1107_v28, %v653_v59 }
 0x192   :  { %v1110_v1 = vadd.f32 %v1109_v62, %v655_v63 }
 0x194   :  { %v659_v2 = vmul.f32 0.70710677, %v1110_v1  ;;  %v658_v4 = vmul.f32 0.5, %v1110_v1 }
 0x196   :  { %1129 = verf.f32 %v659_v2 }
 0x1a0   :  { %v1130_v3 = vpop.eup %1129 }
 0x1a1   :  { %v661_v5 = vadd.f32 1.0, %v1130_v3 }
 0x1a3   :  { %v662_v6 = vmul.f32 %v661_v5, %v658_v4 }
 0x1a5   :  { %v663_v7 = vmul.f32 %v1108_v0, %v662_v6 }
 0x1a7   :  { %825 = vmatmul.mubr.f32.vlgmr.msra.gmra.mrb[2].mxu1 %v663_v7 }
 0x27a   :  { %v753_v8 = vpop.f32.mrb[2].mxu1 }
 0x27b   :  { %v754_v9 = vadd.f32 %v774_v61, %v753_v8  ;;  %v826_v10 = vpop.f32.mrb[3].mxu1 }
 0x27d   :  { %757 = vst [vmem:[#allocation8] sm:$0x3] %v754_v9 }
 0x27e   :  { %1208 = shalt.err (!%p1205_p0)
}
 0x27f   :  { %s1209_s13 = scalar_lea.hbm %s1367_s5, 32 }
 0x280   :  { %p1210_p1 = scmp.ne.s32.totalorder %s1367_s5, %s1209_s13  ;;  %p1213_p2 = scmp.lt.u32.totalorder %s1209_s13, %s1367_s5 }
 0x282   :  { %p1215_p3 = pnand %p1213_p2, %p1210_p1 }
 0x284   :  { %1218 = shalt.err (!%p1215_p3)
}
 0x285   :  { %767 = dma.vmem_to_hbm [thread:$0]  %s765_s9, 32, %s1367_s5, [#allocation4]  }
 0x286   :  { %1223 = dma.done.wait [#allocation4], 32  }
 0x287   :  { %1224 = vsyncadd [#allocation4], 4294967264 }
 0x288   :  { %771 = vsyncpa [#allocation3], 1 }
 0x289   :  { %772 = vsyncpa [#allocation6], 1 }
 0x28a   :  { %773 = vsyncpa [#allocation4], 1 }

// kernel: tpu_custom_call.1
= control target key start
LH: loop header
LB: loop body
LE: loop exit
PB: predicated region body
PF: predicated region fallthrough
CT: control target
= control target key end

     0   :  { %10 = vsyncpa [#allocation3], 0  ;;  %s1362_s0 = inlined_call_operand.hbm [shape: f32[2,1024], index: 0, kind: input, shape index: {}]   ;;  %s1363_s1 = inlined_call_operand.hbm [shape: f32[1024,256], index: 1, kind: input, shape index: {}]   ;;  %s1364_s2 = inlined_call_operand.vmem [shape: f32[1,256], index: 2, kind: input, shape index: {}]   ;;  %s1365_s3 = inlined_call_operand.hbm [shape: f32[128,128], index: 3, kind: input, shape index: {}]   ;;  %s1366_s4 = inlined_call_operand.vmem [shape: f32[1,128], index: 4, kind: input, shape index: {}]   ;;  %s1367_s5 = inlined_call_operand.hbm [shape: f32[2,128], index: 5, kind: output, shape index: {}]  }
   0x1   :  { %11 = vsyncpa [#allocation6], 0 }
   0x2   :  { %12 = vsyncpa [#allocation4], 0  ;;  %s1225_s18 = smov [#allocation5]   ;;  %s1131_s22 = scalar_lea.hbm %s1363_s1, 32768 }
   0x3   :  { %s28_s19 = sshll.u32 %s1225_s18, 4  ;;  %p1132_p0 = scmp.ne.s32.totalorder %s1363_s1, %s1131_s22  ;;  %s29_s19 = int_to_ptr.vmem [resolvable:$true] %s28_s19 }
   0x4   :  { %p1135_p1 = scmp.lt.u32.totalorder %s1131_s22, %s1363_s1 }
   0x6   :  { %p1137_p2 = pnand %p1135_p1, %p1132_p0 }
   0x8   :  { %1140 = shalt.err (!%p1137_p2)
}
   0x9   :  { %s1141_s27 = scalar_lea.vmem %s29_s19, 32768  ;;  %p1146_p4 = scmp.lt.s32.totalorder %s29_s19, %s29_s19 }
   0xa   :  { %p1142_p3 = scmp.ne.s32.totalorder %s29_s19, %s1141_s27  ;;  %p1147_p5 = scmp.lt.s32.totalorder %s1141_s27, %s1141_s27 }
   0xc   :  { %p1148_p6 = por %p1147_p5, %p1146_p4 }
   0xe   :  { %p1149_p7 = pnand %p1148_p6, %p1142_p3 }
  0x10   :  { %1152 = shalt.err (!%p1149_p7)
}
  0x11   :  { %s1226_s28 = smov 256   ;;  %s1227_s29 = smov 16  }
  0x12   :  { %34 = dma.hbm_to_vmem [thread:$0]  %s1363_s1, 32768, %s29_s19, [#allocation6], %s1226_s28, %s1226_s28, %s1227_s29  }
  0x13   :  { %s1228_s7 = smov [#allocation2]   ;;  %s1229_s9 = smov [#allocation7]  }
  0x14   :  { %s19_s8 = sshll.u32 %s1228_s7, 4  ;;  %s42_s10 = sshll.u32 %s1229_s9, 4  ;;  %s20_s8 = int_to_ptr.vmem [resolvable:$true] %s19_s8  ;;  %s43_s10 = int_to_ptr.vmem [resolvable:$true] %s42_s10 }
  0x15   :  { %s1153_s13 = scalar_lea.hbm %s1362_s0, 256 }
  0x16   :  { %p1154_p8 = scmp.ne.s32.totalorder %s1362_s0, %s1153_s13  ;;  %p1157_p9 = scmp.lt.u32.totalorder %s1153_s13, %s1362_s0 }
  0x18   :  { %p1159_p10 = pnand %p1157_p9, %p1154_p8 }
  0x1a   :  { %1162 = shalt.err (!%p1159_p10)
}
  0x1b   :  { %s1163_s1 = scalar_lea.vmem %s20_s8, 256  ;;  %p1168_p12 = scmp.lt.s32.totalorder %s20_s8, %s20_s8 }
  0x1c   :  { %p1164_p11 = scmp.ne.s32.totalorder %s20_s8, %s1163_s1  ;;  %p1169_p13 = scmp.lt.s32.totalorder %s1163_s1, %s1163_s1 }
  0x1e   :  { %p1170_p0 = por %p1169_p13, %p1168_p12 }
  0x20   :  { %p1171_p1 = pnand %p1170_p0, %p1164_p11 }
  0x22   :  { %1174 = shalt.err (!%p1171_p1)
}
  0x23   :  { %22 = dma.hbm_to_vmem [thread:$0]  %s1362_s0, 256, %s20_s8, [#allocation3]  }
  0x24   :  { %s1175_s22 = scalar_lea.hbm %s1365_s3, 2048 }
  0x25   :  { %p1176_p2 = scmp.ne.s32.totalorder %s1365_s3, %s1175_s22  ;;  %p1179_p3 = scmp.lt.u32.totalorder %s1175_s22, %s1365_s3 }
  0x27   :  { %p1181_p4 = pnand %p1179_p3, %p1176_p2 }
  0x29   :  { %1184 = shalt.err (!%p1181_p4)
}
  0x2a   :  { %s1185_s27 = scalar_lea.vmem %s43_s10, 2048  ;;  %p1190_p6 = scmp.lt.s32.totalorder %s43_s10, %s43_s10 }
  0x2b   :  { %p1186_p5 = scmp.ne.s32.totalorder %s43_s10, %s1185_s27  ;;  %p1191_p7 = scmp.lt.s32.totalorder %s1185_s27, %s1185_s27 }
  0x2d   :  { %p1192_p8 = por %p1191_p7, %p1190_p6 }
  0x2f   :  { %p1193_p9 = pnand %p1192_p8, %p1186_p5 }
  0x31   :  { %1196 = shalt.err (!%p1193_p9)
}
  0x32   :  { %s1230_s0 = smov 128   ;;  %s1231_s28 = smov 8  }
  0x33   :  { %48 = dma.hbm_to_vmem [thread:$0]  %s1365_s3, 2048, %s43_s10, [#allocation6], %s1230_s0, %s1230_s0, %s1231_s28  }
  0x34   :  { %1219 = dma.done.wait [#allocation3], 256  }
  0x35   :  { %1220 = vsyncadd [#allocation3], 4294967040 }
  0x36   :  { %1221 = dma.done.wait [#allocation6], 34816  }
  0x37   :  { %1222 = vsyncadd [#allocation6], 4294932480  ;;  %v63_v0 = vld [vmem:[#allocation5 + $0x8] sm:$0xff]  ;;  %v65_v1 = vld [vmem:[#allocation5 + $0x18] sm:$0xff]  ;;  %vm1234_vm0 = vmmov 0   ;;  %s1236_s8 = smov [#allocation8]  }
  0x38   :  { %v191_v2 = vld [vmem:[#allocation5 + $0x408] sm:$0xff]  ;;  %v827_v3 = vpack.c.bf16 %v65_v1, %v63_v0  ;;  %v193_v4 = vld [vmem:[#allocation5 + $0x418] sm:$0xff]  ;;  %v62_v5 = vld [vmem:[#allocation5] sm:$0xff]  ;;  %s764_s9 = sshll.u32 %s1236_s8, 4  ;;  %s765_s9 = int_to_ptr.vmem [resolvable:$true] %s764_s9 }
  0x39   :  { %v64_v6 = vld [vmem:[#allocation5 + $0x10] sm:$0xff]  ;;  %v955_v7 = vpack.c.bf16 %v193_v4, %v191_v2  ;;  %v190_v9 = vld [vmem:[#allocation5 + $0x400] sm:$0xff]  ;;  %v67_v11 = vld [vmem:[#allocation5 + $0x28] sm:$0xff]  ;;  %s1197_s10 = scalar_lea.vmem %s765_s9, 32  ;;  %p1202_p11 = scmp.lt.s32.totalorder %s765_s9, %s765_s9 }
  0x3a   :  { %v829_v8 = vpack.c.bf16 %v64_v6, %v62_v5  ;;  %v192_v10 = vld [vmem:[#allocation5 + $0x410] sm:$0xff]  ;;  %828 = vmatprep.subr.bf16.mxu1 %v827_v3  ;;  %v69_v13 = vld [vmem:[#allocation5 + $0x38] sm:$0xff]  ;;  %v195_v14 = vld [vmem:[#allocation5 + $0x428] sm:$0xff]  ;;  %p1198_p10 = scmp.ne.s32.totalorder %s765_s9, %s1197_s10  ;;  %p1203_p12 = scmp.lt.s32.totalorder %s1197_s10, %s1197_s10 }
  0x3b   :  { %v957_v12 = vpack.c.bf16 %v192_v10, %v190_v9  ;;  %v197_v15 = vld [vmem:[#allocation5 + $0x438] sm:$0xff]  ;;  %956 = vmatprep.subr.bf16.mxu0 %v955_v7  ;;  %v831_v16 = vpack.c.bf16 %v69_v13, %v67_v11  ;;  %v66_v18 = vld [vmem:[#allocation5 + $0x20] sm:$0xff]  ;;  %v68_v19 = vld [vmem:[#allocation5 + $0x30] sm:$0xff] }
  0x3c   :  { %830 = vmatpush1.bf16.msra.mxu1 %v829_v8  ;;  %v959_v17 = vpack.c.bf16 %v197_v15, %v195_v14  ;;  %v194_v20 = vld [vmem:[#allocation5 + $0x420] sm:$0xff]  ;;  %v833_v21 = vpack.c.bf16 %v68_v19, %v66_v18  ;;  %v196_v22 = vld [vmem:[#allocation5 + $0x430] sm:$0xff]  ;;  %v71_v23 = vld [vmem:[#allocation5 + $0x48] sm:$0xff]  ;;  %p1204_p13 = por %p1203_p12, %p1202_p11 }
  0x3d   :  { %958 = vmatpush1.bf16.msra.mxu0 %v957_v12  ;;  %v73_v24 = vld [vmem:[#allocation5 + $0x58] sm:$0xff]  ;;  %832 = vmatprep.subr.bf16.mxu1 %v831_v16  ;;  %v961_v25 = vpack.c.bf16 %v196_v22, %v194_v20  ;;  %v199_v27 = vld [vmem:[#allocation5 + $0x448] sm:$0xff]  ;;  %v70_v29 = vld [vmem:[#allocation5 + $0x40] sm:$0xff] }
  0x3e   :  { %960 = vmatprep.subr.bf16.mxu0 %v959_v17  ;;  %v835_v26 = vpack.c.bf16 %v73_v24, %v71_v23  ;;  %v201_v28 = vld [vmem:[#allocation5 + $0x458] sm:$0xff]  ;;  %v72_v31 = vld [vmem:[#allocation5 + $0x50] sm:$0xff]  ;;  %v198_v32 = vld [vmem:[#allocation5 + $0x440] sm:$0xff]  ;;  %p1205_p0 = pnand %p1204_p13, %p1198_p10 }
  0x3f   :  { %v963_v30 = vpack.c.bf16 %v201_v28, %v199_v27  ;;  %v200_v33 = vld [vmem:[#allocation5 + $0x450] sm:$0xff]  ;;  %v837_v34 = vpack.c.bf16 %v72_v31, %v70_v29  ;;  %v75_v35 = vld [vmem:[#allocation5 + $0x68] sm:$0xff]  ;;  %v77_v36 = vld [vmem:[#allocation5 + $0x78] sm:$0xff] }
  0x40   :  { %834 = vmatpush1.bf16.msra.mxu1 %v833_v21  ;;  %v203_v37 = vld [vmem:[#allocation5 + $0x468] sm:$0xff]  ;;  %v965_v38 = vpack.c.bf16 %v200_v33, %v198_v32  ;;  %v839_v39 = vpack.c.bf16 %v77_v36, %v75_v35  ;;  %v205_v40 = vld [vmem:[#allocation5 + $0x478] sm:$0xff]  ;;  %v74_v41 = vld [vmem:[#allocation5 + $0x60] sm:$0xff] }
  0x41   :  { %962 = vmatpush1.bf16.msra.mxu0 %v961_v25  ;;  %836 = vmatprep.subr.bf16.mxu1 %v835_v26  ;;  %v76_v42 = vld [vmem:[#allocation5 + $0x70] sm:$0xff]  ;;  %v967_v43 = vpack.c.bf16 %v205_v40, %v203_v37  ;;  %v202_v44 = vld [vmem:[#allocation5 + $0x460] sm:$0xff]  ;;  %v79_v46 = vld [vmem:[#allocation5 + $0x88] sm:$0xff] }
  0x42   :  { %964 = vmatprep.subr.bf16.mxu0 %v963_v30  ;;  %v204_v45 = vld [vmem:[#allocation5 + $0x470] sm:$0xff]  ;;  %v81_v47 = vld [vmem:[#allocation5 + $0x98] sm:$0xff]  ;;  %v207_v48 = vld [vmem:[#allocation5 + $0x488] sm:$0xff]  ;;  %v841_v50 = vpack.c.bf16 %v76_v42, %v74_v41 }
  0x43   :  { %v209_v49 = vld [vmem:[#allocation5 + $0x498] sm:$0xff]  ;;  %v969_v51 = vpack.c.bf16 %v204_v45, %v202_v44  ;;  %v843_v52 = vpack.c.bf16 %v81_v47, %v79_v46  ;;  %v78_v53 = vld [vmem:[#allocation5 + $0x80] sm:$0xff]  ;;  %v80_v54 = vld [vmem:[#allocation5 + $0x90] sm:$0xff]  ;;  %v320_v46 = vlaneseq  ;;  %v1232_v47 = vmov 1983009808  }
  0x44   :  { %838 = vmatpush1.bf16.msra.mxu1 %v837_v34  ;;  %v206_v55 = vld [vmem:[#allocation5 + $0x480] sm:$0xff]  ;;  %v971_v56 = vpack.c.bf16 %v209_v49, %v207_v48  ;;  %v208_v57 = vld [vmem:[#allocation5 + $0x490] sm:$0xff]  ;;  %v83_v58 = vld [vmem:[#allocation5 + $0xa8] sm:$0xff]  ;;  %v845_v62 = vpack.c.bf16 %v80_v54, %v78_v53  ;;  %v334_v48 = vunpack.c.l.s4 %v1232_v47 }
  0x45   :  { %966 = vmatpush1.bf16.msra.mxu0 %v965_v38  ;;  %840 = vmatprep.subr.bf16.mxu1 %v839_v39  ;;  %v85_v59 = vld [vmem:[#allocation5 + $0xb8] sm:$0xff]  ;;  %v211_v60 = vld [vmem:[#allocation5 + $0x4a8] sm:$0xff]  ;;  %v973_v63 = vpack.c.bf16 %v208_v57, %v206_v55  ;;  %v82_v1 = vld [vmem:[#allocation5 + $0xa0] sm:$0xff] }
  0x46   :  { %968 = vmatprep.subr.bf16.mxu0 %v967_v43  ;;  %v213_v61 = vld [vmem:[#allocation5 + $0x4b8] sm:$0xff]  ;;  %v847_v0 = vpack.c.bf16 %v85_v59, %v83_v58  ;;  %v84_v2 = vld [vmem:[#allocation5 + $0xb0] sm:$0xff]  ;;  %v210_v3 = vld [vmem:[#allocation5 + $0x4a0] sm:$0xff] }
  0x47   :  { %v975_v4 = vpack.c.bf16 %v213_v61, %v211_v60  ;;  %v212_v5 = vld [vmem:[#allocation5 + $0x4b0] sm:$0xff]  ;;  %v87_v6 = vld [vmem:[#allocation5 + $0xc8] sm:$0xff]  ;;  %v89_v7 = vld [vmem:[#allocation5 + $0xd8] sm:$0xff]  ;;  %v849_v10 = vpack.c.bf16 %v84_v2, %v82_v1  ;;  %v1303_v61 = vshrl.u32 %v320_v46, 7 }
  0x48   :  { %842 = vmatpush1.bf16.msra.mxu1 %v841_v50  ;;  %v215_v8 = vld [vmem:[#allocation5 + $0x4c8] sm:$0xff]  ;;  %v217_v9 = vld [vmem:[#allocation5 + $0x4d8] sm:$0xff]  ;;  %v977_v11 = vpack.c.bf16 %v212_v5, %v210_v3  ;;  %v851_v12 = vpack.c.bf16 %v89_v7, %v87_v6  ;;  %v86_v13 = vld [vmem:[#allocation5 + $0xc0] sm:$0xff] }
  0x49   :  { %970 = vmatpush1.bf16.msra.mxu0 %v969_v51  ;;  %844 = vmatprep.subr.bf16.mxu1 %v843_v52  ;;  %v88_v14 = vld [vmem:[#allocation5 + $0xd0] sm:$0xff]  ;;  %v214_v15 = vld [vmem:[#allocation5 + $0x4c0] sm:$0xff]  ;;  %v979_v16 = vpack.c.bf16 %v217_v9, %v215_v8  ;;  %v91_v18 = vld [vmem:[#allocation5 + $0xe8] sm:$0xff] }
  0x4a   :  { %972 = vmatprep.subr.bf16.mxu0 %v971_v56  ;;  %v216_v17 = vld [vmem:[#allocation5 + $0x4d0] sm:$0xff]  ;;  %v93_v19 = vld [vmem:[#allocation5 + $0xf8] sm:$0xff]  ;;  %v219_v20 = vld [vmem:[#allocation5 + $0x4e8] sm:$0xff]  ;;  %v853_v22 = vpack.c.bf16 %v88_v14, %v86_v13 }
  0x4b   :  { %v221_v21 = vld [vmem:[#allocation5 + $0x4f8] sm:$0xff]  ;;  %v981_v23 = vpack.c.bf16 %v216_v17, %v214_v15  ;;  %v855_v24 = vpack.c.bf16 %v93_v19, %v91_v18  ;;  %v90_v25 = vld [vmem:[#allocation5 + $0xe0] sm:$0xff]  ;;  %v92_v26 = vld [vmem:[#allocation5 + $0xf0] sm:$0xff] }
  0x4c   :  { %846 = vmatpush1.bf16.msra.mxu1 %v845_v62  ;;  %v218_v27 = vld [vmem:[#allocation5 + $0x4e0] sm:$0xff]  ;;  %v983_v28 = vpack.c.bf16 %v221_v21, %v219_v20  ;;  %v220_v29 = vld [vmem:[#allocation5 + $0x4f0] sm:$0xff]  ;;  %v95_v30 = vld [vmem:[#allocation5 + $0x108] sm:$0xff]  ;;  %v857_v34 = vpack.c.bf16 %v92_v26, %v90_v25  ;;  %v335_v62 = vunpack.c.0.s8 %v334_v48 }
  0x4d   :  { %974 = vmatpush1.bf16.msra.mxu0 %v973_v63  ;;  %848 = vmatprep.subr.bf16.mxu1 %v847_v0  ;;  %v97_v31 = vld [vmem:[#allocation5 + $0x118] sm:$0xff]  ;;  %v223_v32 = vld [vmem:[#allocation5 + $0x508] sm:$0xff]  ;;  %v985_v35 = vpack.c.bf16 %v220_v29, %v218_v27  ;;  %v94_v37 = vld [vmem:[#allocation5 + $0x100] sm:$0xff] }
  0x4e   :  { %976 = vmatprep.subr.bf16.mxu0 %v975_v4  ;;  %v225_v33 = vld [vmem:[#allocation5 + $0x518] sm:$0xff]  ;;  %v859_v36 = vpack.c.bf16 %v97_v31, %v95_v30  ;;  %v96_v38 = vld [vmem:[#allocation5 + $0x110] sm:$0xff]  ;;  %v222_v39 = vld [vmem:[#allocation5 + $0x500] sm:$0xff] }
  0x4f   :  { %v987_v40 = vpack.c.bf16 %v225_v33, %v223_v32  ;;  %v224_v41 = vld [vmem:[#allocation5 + $0x510] sm:$0xff]  ;;  %v99_v42 = vld [vmem:[#allocation5 + $0x128] sm:$0xff]  ;;  %v101_v43 = vld [vmem:[#allocation5 + $0x138] sm:$0xff]  ;;  %v861_v49 = vpack.c.bf16 %v96_v38, %v94_v37 }
  0x50   :  { %850 = vmatpush1.bf16.msra.mxu1 %v849_v10  ;;  %v227_v44 = vld [vmem:[#allocation5 + $0x528] sm:$0xff]  ;;  %v229_v45 = vld [vmem:[#allocation5 + $0x538] sm:$0xff]  ;;  %v989_v50 = vpack.c.bf16 %v224_v41, %v222_v39  ;;  %v863_v51 = vpack.c.bf16 %v101_v43, %v99_v42  ;;  %v98_v52 = vld [vmem:[#allocation5 + $0x120] sm:$0xff] }
  0x51   :  { %978 = vmatpush1.bf16.msra.mxu0 %v977_v11  ;;  %852 = vmatprep.subr.bf16.mxu1 %v851_v12  ;;  %v100_v53 = vld [vmem:[#allocation5 + $0x130] sm:$0xff]  ;;  %v226_v54 = vld [vmem:[#allocation5 + $0x520] sm:$0xff]  ;;  %v991_v55 = vpack.c.bf16 %v229_v45, %v227_v44  ;;  %v103_v57 = vld [vmem:[#allocation5 + $0x148] sm:$0xff]  ;;  %v1306_v11 = vsub.s32 %v335_v62, %v1303_v61 }
  0x52   :  { %980 = vmatprep.subr.bf16.mxu0 %v979_v16  ;;  %v228_v56 = vld [vmem:[#allocation5 + $0x530] sm:$0xff]  ;;  %v105_v58 = vld [vmem:[#allocation5 + $0x158] sm:$0xff]  ;;  %v231_v59 = vld [vmem:[#allocation5 + $0x548] sm:$0xff]  ;;  %v865_v63 = vpack.c.bf16 %v100_v53, %v98_v52 }
  0x53   :  { %v233_v60 = vld [vmem:[#allocation5 + $0x558] sm:$0xff]  ;;  %v993_v0 = vpack.c.bf16 %v228_v56, %v226_v54  ;;  %v867_v1 = vpack.c.bf16 %v105_v58, %v103_v57  ;;  %v102_v2 = vld [vmem:[#allocation5 + $0x140] sm:$0xff]  ;;  %v104_v3 = vld [vmem:[#allocation5 + $0x150] sm:$0xff] }
  0x54   :  { %854 = vmatpush1.bf16.msra.mxu1 %v853_v22  ;;  %v230_v4 = vld [vmem:[#allocation5 + $0x540] sm:$0xff]  ;;  %v995_v5 = vpack.c.bf16 %v233_v60, %v231_v59  ;;  %v232_v6 = vld [vmem:[#allocation5 + $0x550] sm:$0xff]  ;;  %v107_v7 = vld [vmem:[#allocation5 + $0x168] sm:$0xff]  ;;  %v869_v12 = vpack.c.bf16 %v104_v3, %v102_v2 }
  0x55   :  { %982 = vmatpush1.bf16.msra.mxu0 %v981_v23  ;;  %856 = vmatprep.subr.bf16.mxu1 %v855_v24  ;;  %v109_v8 = vld [vmem:[#allocation5 + $0x178] sm:$0xff]  ;;  %v235_v9 = vld [vmem:[#allocation5 + $0x568] sm:$0xff]  ;;  %v106_v13 = vld [vmem:[#allocation5 + $0x160] sm:$0xff]  ;;  %v997_v14 = vpack.c.bf16 %v232_v6, %v230_v4 }
  0x56   :  { %984 = vmatprep.subr.bf16.mxu0 %v983_v28  ;;  %v237_v10 = vld [vmem:[#allocation5 + $0x578] sm:$0xff]  ;;  %v871_v15 = vpack.c.bf16 %v109_v8, %v107_v7  ;;  %v108_v16 = vld [vmem:[#allocation5 + $0x170] sm:$0xff]  ;;  %v234_v17 = vld [vmem:[#allocation5 + $0x560] sm:$0xff] }
  0x57   :  { %v236_v18 = vld [vmem:[#allocation5 + $0x570] sm:$0xff]  ;;  %v999_v19 = vpack.c.bf16 %v237_v10, %v235_v9  ;;  %v111_v20 = vld [vmem:[#allocation5 + $0x188] sm:$0xff]  ;;  %v113_v21 = vld [vmem:[#allocation5 + $0x198] sm:$0xff]  ;;  %v873_v27 = vpack.c.bf16 %v108_v16, %v106_v13 }
  0x58   :  { %858 = vmatpush1.bf16.msra.mxu1 %v857_v34  ;;  %v1308_v22 = vld [vmem:[#allocation2] sm:$0xff]  ;;  %v239_v23 = vld [vmem:[#allocation5 + $0x588] sm:$0xff]  ;;  %v241_v24 = vld [vmem:[#allocation5 + $0x598] sm:$0xff]  ;;  %v1001_v29 = vpack.c.bf16 %v236_v18, %v234_v17  ;;  %v875_v30 = vpack.c.bf16 %v113_v21, %v111_v20 }
  0x59   :  { %986 = vmatpush1.bf16.msra.mxu0 %v985_v35  ;;  %860 = vmatprep.subr.bf16.mxu1 %v859_v36  ;;  %v1312_v25 = vrot.slane %v1308_v22, %v1306_v11  ;;  %v1314_v26 = vld [vmem:[#allocation2 + $0x8] sm:$0xff]  ;;  %v110_v31 = vld [vmem:[#allocation5 + $0x180] sm:$0xff]  ;;  %v112_v32 = vld [vmem:[#allocation5 + $0x190] sm:$0xff]  ;;  %v1003_v35 = vpack.c.bf16 %v241_v24, %v239_v23 }
  0x5a   :  { %988 = vmatprep.subr.bf16.mxu0 %v987_v40  ;;  %v1318_v28 = vrot.slane %v1314_v26, %v1306_v11  ;;  %v238_v33 = vld [vmem:[#allocation5 + $0x580] sm:$0xff]  ;;  %v240_v36 = vld [vmem:[#allocation5 + $0x590] sm:$0xff]  ;;  %v115_v37 = vld [vmem:[#allocation5 + $0x1a8] sm:$0xff]  ;;  %v877_v42 = vpack.c.bf16 %v112_v32, %v110_v31 }
  0x5b   :  { %v347_v34 = vcombine.high %v1312_v25, %v1312_v25  ;;  %v117_v38 = vld [vmem:[#allocation5 + $0x1b8] sm:$0xff]  ;;  %v243_v40 = vld [vmem:[#allocation5 + $0x5a8] sm:$0xff]  ;;  %v1005_v43 = vpack.c.bf16 %v240_v36, %v238_v33  ;;  %v114_v45 = vld [vmem:[#allocation5 + $0x1a0] sm:$0xff] }
  0x5c   :  { %862 = vmatpush1.bf16.msra.mxu1 %v861_v49  ;;  %v364_v39 = vcombine.high %v1318_v28, %v1318_v28  ;;  %v245_v41 = vld [vmem:[#allocation5 + $0x5b8] sm:$0xff]  ;;  %v879_v44 = vpack.c.bf16 %v117_v38, %v115_v37  ;;  %v116_v46 = vld [vmem:[#allocation5 + $0x1b0] sm:$0xff]  ;;  %v242_v47 = vld [vmem:[#allocation5 + $0x5a0] sm:$0xff] }
  0x5d   :  { %990 = vmatpush1.bf16.msra.mxu0 %v989_v50  ;;  %864 = vmatprep.subr.bf16.mxu1 %v863_v51  ;;  %v1007_v48 = vpack.c.bf16 %v245_v41, %v243_v40  ;;  %v244_v49 = vld [vmem:[#allocation5 + $0x5b0] sm:$0xff]  ;;  %v119_v50 = vld [vmem:[#allocation5 + $0x1c8] sm:$0xff]  ;;  %v121_v51 = vld [vmem:[#allocation5 + $0x1d8] sm:$0xff]  ;;  %v881_v54 = vpack.c.bf16 %v116_v46, %v114_v45 }
  0x5e   :  { %992 = vmatprep.subr.bf16.mxu0 %v991_v55  ;;  %438 = vmatprep.mubr.f32.mxu1 %v347_v34  ;;  %v247_v52 = vld [vmem:[#allocation5 + $0x5c8] sm:$0xff]  ;;  %v249_v53 = vld [vmem:[#allocation5 + $0x5d8] sm:$0xff]  ;;  %v1009_v55 = vpack.c.bf16 %v244_v49, %v242_v47  ;;  %v883_v56 = vpack.c.bf16 %v121_v51, %v119_v50  ;;  %v118_v57 = vld [vmem:[#allocation5 + $0x1c0] sm:$0xff] }
  0x5f   :  { %580 = vmatprep.mubr.f32.mxu0 %v364_v39  ;;  %v120_v58 = vld [vmem:[#allocation5 + $0x1d0] sm:$0xff]  ;;  %v246_v59 = vld [vmem:[#allocation5 + $0x5c0] sm:$0xff]  ;;  %v1011_v60 = vpack.c.bf16 %v249_v53, %v247_v52  ;;  %v253_v2 = vld [vmem:[#allocation5 + $0x5f8] sm:$0xff] }
  0x60   :  { %866 = vmatpush1.bf16.msra.mxu1 %v865_v63  ;;  %v248_v62 = vld [vmem:[#allocation5 + $0x5d0] sm:$0xff]  ;;  %v123_v63 = vld [vmem:[#allocation5 + $0x1e8] sm:$0xff]  ;;  %v885_v3 = vpack.c.bf16 %v120_v58, %v118_v57  ;;  %v122_v6 = vld [vmem:[#allocation5 + $0x1e0] sm:$0xff] }
  0x61   :  { %994 = vmatpush1.bf16.msra.mxu0 %v993_v0  ;;  %868 = vmatprep.subr.bf16.mxu1 %v867_v1  ;;  %v125_v0 = vld [vmem:[#allocation5 + $0x1f8] sm:$0xff]  ;;  %v251_v1 = vld [vmem:[#allocation5 + $0x5e8] sm:$0xff]  ;;  %v1013_v4 = vpack.c.bf16 %v248_v62, %v246_v59  ;;  %v124_v7 = vld [vmem:[#allocation5 + $0x1f0] sm:$0xff] }
  0x62   :  { %996 = vmatprep.subr.bf16.mxu0 %v995_v5  ;;  %v887_v5 = vpack.c.bf16 %v125_v0, %v123_v63  ;;  %v250_v8 = vld [vmem:[#allocation5 + $0x5e0] sm:$0xff]  ;;  %v1015_v9 = vpack.c.bf16 %v253_v2, %v251_v1  ;;  %v252_v10 = vld [vmem:[#allocation5 + $0x5f0] sm:$0xff]  ;;  %v127_v13 = vld [vmem:[#allocation5 + $0x208] sm:$0xff]  ;;  %v889_v18 = vpack.c.bf16 %v124_v7, %v122_v6 }
  0x63   :  { %v255_v16 = vld [vmem:[#allocation5 + $0x608] sm:$0xff]  ;;  %v257_v17 = vld [vmem:[#allocation5 + $0x618] sm:$0xff]  ;;  %v126_v21 = vld [vmem:[#allocation5 + $0x200] sm:$0xff] }
  0x64   :  { %870 = vmatpush1.bf16.msra.mxu1 %v869_v12  ;;  %v332_v12 = vcombine.high %v1308_v22, %v1308_v22  ;;  %v128_v23 = vld [vmem:[#allocation5 + $0x210] sm:$0xff]  ;;  %v254_v24 = vld [vmem:[#allocation5 + $0x600] sm:$0xff]  ;;  %v131_v22 = vld [vmem:[#allocation5 + $0x228] sm:$0xff] }
  0x65   :  { %998 = vmatpush1.bf16.msra.mxu0 %v997_v14  ;;  %872 = vmatprep.subr.bf16.mxu1 %v871_v15  ;;  %v129_v14 = vld [vmem:[#allocation5 + $0x218] sm:$0xff]  ;;  %v349_v15 = vcombine.high %v1314_v26, %v1314_v26  ;;  %v259_v26 = vld [vmem:[#allocation5 + $0x628] sm:$0xff]  ;;  %v893_v34 = vpack.c.bf16 %v128_v23, %v126_v21  ;;  %v130_v37 = vld [vmem:[#allocation5 + $0x220] sm:$0xff] }
  0x66   :  { %1000 = vmatprep.subr.bf16.mxu0 %v999_v19  ;;  %v1017_v19 = vpack.c.bf16 %v252_v10, %v250_v8  ;;  %v891_v20 = vpack.c.bf16 %v129_v14, %v127_v13  ;;  %v1329_v31 = vrot.slane %v332_v12, %v1306_v11  ;;  %v261_v32 = vld [vmem:[#allocation5 + $0x638] sm:$0xff]  ;;  %v132_v38 = vld [vmem:[#allocation5 + $0x230] sm:$0xff]  ;;  %v258_v39 = vld [vmem:[#allocation5 + $0x620] sm:$0xff] }
  0x67   :  { %v1332_v33 = vrot.slane %v349_v15, %v1306_v11  ;;  %v1023_v40 = vpack.c.bf16 %v261_v32, %v259_v26  ;;  %v260_v41 = vld [vmem:[#allocation5 + $0x630] sm:$0xff]  ;;  %v263_v11 = vld [vmem:[#allocation5 + $0x648] sm:$0xff]  ;;  %v265_v45 = vld [vmem:[#allocation5 + $0x658] sm:$0xff]  ;;  %v897_v47 = vpack.c.bf16 %v132_v38, %v130_v37 }
  0x68   :  { %874 = vmatpush1.bf16.msra.mxu1 %v873_v27  ;;  %v1019_v27 = vpack.c.bf16 %v257_v17, %v255_v16  ;;  %v134_v50 = vld [vmem:[#allocation5 + $0x240] sm:$0xff]  ;;  %v136_v51 = vld [vmem:[#allocation5 + $0x250] sm:$0xff]  ;;  %v1027_v53 = vpack.c.bf16 %v265_v45, %v263_v11  ;;  %v269_v57 = vld [vmem:[#allocation5 + $0x678] sm:$0xff] }
  0x69   :  { %1002 = vmatpush1.bf16.msra.mxu0 %v1001_v29  ;;  %876 = vmatprep.subr.bf16.mxu1 %v875_v30  ;;  %v256_v29 = vld [vmem:[#allocation5 + $0x610] sm:$0xff]  ;;  %v133_v30 = vld [vmem:[#allocation5 + $0x238] sm:$0xff]  ;;  %v365_v46 = vcombine.high %v1332_v33, %v1332_v33  ;;  %v262_v52 = vld [vmem:[#allocation5 + $0x640] sm:$0xff]  ;;  %v901_v58 = vpack.c.bf16 %v136_v51, %v134_v50 }
  0x6a   :  { %1004 = vmatprep.subr.bf16.mxu0 %v1003_v35  ;;  %v1021_v35 = vpack.c.bf16 %v256_v29, %v254_v24  ;;  %v895_v36 = vpack.c.bf16 %v133_v30, %v131_v22  ;;  %v140_v62 = vld [vmem:[#allocation5 + $0x270] sm:$0xff]  ;;  %v266_v63 = vld [vmem:[#allocation5 + $0x660] sm:$0xff]  ;;  %v143_v2 = vld [vmem:[#allocation5 + $0x288] sm:$0xff] }
  0x6b   :  { %v268_v1 = vld [vmem:[#allocation5 + $0x670] sm:$0xff]  ;;  %v270_v12 = vld [vmem:[#allocation5 + $0x680] sm:$0xff]  ;;  %v147_v15 = vld [vmem:[#allocation5 + $0x2a8] sm:$0xff] }
  0x6c   :  { %878 = vmatpush1.bf16.msra.mxu1 %v877_v42  ;;  %v135_v42 = vld [vmem:[#allocation5 + $0x248] sm:$0xff]  ;;  %v1033_v7 = vpack.c.bf16 %v268_v1, %v266_v63  ;;  %v144_v10 = vld [vmem:[#allocation5 + $0x290] sm:$0xff]  ;;  %v149_v16 = vld [vmem:[#allocation5 + $0x2b8] sm:$0xff] }
  0x6d   :  { %1006 = vmatpush1.bf16.msra.mxu0 %v1005_v43  ;;  %880 = vmatprep.subr.bf16.mxu1 %v879_v44  ;;  %v137_v43 = vld [vmem:[#allocation5 + $0x258] sm:$0xff]  ;;  %v348_v44 = vcombine.high %v1329_v31, %v1329_v31  ;;  %v272_v14 = vld [vmem:[#allocation5 + $0x690] sm:$0xff]  ;;  %v275_v17 = vld [vmem:[#allocation5 + $0x6a8] sm:$0xff]  ;;  %v911_v21 = vpack.c.bf16 %v149_v16, %v147_v15 }
  0x6e   :  { %1008 = vmatprep.subr.bf16.mxu0 %v1007_v48  ;;  %v1025_v48 = vpack.c.bf16 %v260_v41, %v258_v39  ;;  %v899_v49 = vpack.c.bf16 %v137_v43, %v135_v42  ;;  %v146_v23 = vld [vmem:[#allocation5 + $0x2a0] sm:$0xff]  ;;  %v148_v24 = vld [vmem:[#allocation5 + $0x2b0] sm:$0xff]  ;;  %v151_v30 = vld [vmem:[#allocation5 + $0x2c8] sm:$0xff] }
  0x6f   :  { %v276_v22 = vld [vmem:[#allocation5 + $0x6b0] sm:$0xff]  ;;  %v153_v26 = vld [vmem:[#allocation5 + $0x2d8] sm:$0xff]  ;;  %v279_v32 = vld [vmem:[#allocation5 + $0x6c8] sm:$0xff] }
  0x70   :  { %882 = vmatpush1.bf16.msra.mxu1 %v881_v54  ;;  %v264_v54 = vld [vmem:[#allocation5 + $0x650] sm:$0xff]  ;;  %v915_v37 = vpack.c.bf16 %v153_v26, %v151_v30  ;;  %v150_v38 = vld [vmem:[#allocation5 + $0x2c0] sm:$0xff]  ;;  %v155_v43 = vld [vmem:[#allocation5 + $0x2e8] sm:$0xff] }
  0x71   :  { %1010 = vmatpush1.bf16.msra.mxu0 %v1009_v55  ;;  %884 = vmatprep.subr.bf16.mxu1 %v883_v56  ;;  %v141_v55 = vld [vmem:[#allocation5 + $0x278] sm:$0xff]  ;;  %v267_v56 = vld [vmem:[#allocation5 + $0x668] sm:$0xff]  ;;  %v152_v39 = vld [vmem:[#allocation5 + $0x2d0] sm:$0xff] }
  0x72   :  { %1012 = vmatprep.subr.bf16.mxu0 %v1011_v60  ;;  %v138_v60 = vld [vmem:[#allocation5 + $0x260] sm:$0xff]  ;;  %v1031_v0 = vpack.c.bf16 %v269_v57, %v267_v56  ;;  %v280_v42 = vld [vmem:[#allocation5 + $0x6d0] sm:$0xff]  ;;  %v283_v11 = vld [vmem:[#allocation5 + $0x6e8] sm:$0xff] }
  0x73   :  { %v905_v6 = vpack.c.bf16 %v140_v62, %v138_v60  ;;  %v285_v45 = vld [vmem:[#allocation5 + $0x6f8] sm:$0xff]  ;;  %v156_v50 = vld [vmem:[#allocation5 + $0x2f0] sm:$0xff]  ;;  %v282_v51 = vld [vmem:[#allocation5 + $0x6e0] sm:$0xff] }
  0x74   :  { %886 = vmatpush1.bf16.msra.mxu1 %v885_v3  ;;  %v145_v3 = vld [vmem:[#allocation5 + $0x298] sm:$0xff]  ;;  %v160_v60 = vld [vmem:[#allocation5 + $0x310] sm:$0xff]  ;;  %v286_v62 = vld [vmem:[#allocation5 + $0x700] sm:$0xff] }
  0x75   :  { %1014 = vmatpush1.bf16.msra.mxu0 %v1013_v4  ;;  %888 = vmatprep.subr.bf16.mxu1 %v887_v5  ;;  %v271_v4 = vld [vmem:[#allocation5 + $0x688] sm:$0xff]  ;;  %v273_v5 = vld [vmem:[#allocation5 + $0x698] sm:$0xff]  ;;  %v907_v8 = vpack.c.bf16 %v145_v3, %v143_v2 }
  0x76   :  { %1016 = vmatprep.subr.bf16.mxu0 %v1015_v9  ;;  %v142_v9 = vld [vmem:[#allocation5 + $0x280] sm:$0xff]  ;;  %v1035_v13 = vpack.c.bf16 %v273_v5, %v271_v4  ;;  %v289_v56 = vld [vmem:[#allocation5 + $0x718] sm:$0xff]  ;;  %v163_v1 = vld [vmem:[#allocation5 + $0x328] sm:$0xff] }
  0x77   :  { %v165_v2 = vld [vmem:[#allocation5 + $0x338] sm:$0xff]  ;;  %v291_v3 = vld [vmem:[#allocation5 + $0x728] sm:$0xff] }
  0x78   :  { %890 = vmatpush1.bf16.msra.mxu1 %v889_v18  ;;  %v277_v18 = vld [vmem:[#allocation5 + $0x6b8] sm:$0xff]  ;;  %v295_v16 = vld [vmem:[#allocation5 + $0x748] sm:$0xff] }
  0x79   :  { %1018 = vmatpush1.bf16.msra.mxu0 %v1017_v19  ;;  %892 = vmatprep.subr.bf16.mxu1 %v891_v20  ;;  %v909_v19 = vpack.c.bf16 %v144_v10, %v142_v9  ;;  %v1037_v20 = vpack.c.bf16 %v272_v14, %v270_v12  ;;  %v1039_v29 = vpack.c.bf16 %v277_v18, %v275_v17  ;;  %v293_v4 = vld [vmem:[#allocation5 + $0x738] sm:$0xff]  ;;  %v164_v9 = vld [vmem:[#allocation5 + $0x330] sm:$0xff]  ;;  %v290_v10 = vld [vmem:[#allocation5 + $0x720] sm:$0xff] }
  0x7a   :  { %1020 = vmatprep.subr.bf16.mxu0 %v1019_v27  ;;  %v274_v27 = vld [vmem:[#allocation5 + $0x6a0] sm:$0xff]  ;;  %v1055_v12 = vpack.c.bf16 %v293_v4, %v291_v3  ;;  %v167_v14 = vld [vmem:[#allocation5 + $0x348] sm:$0xff]  ;;  %v169_v15 = vld [vmem:[#allocation5 + $0x358] sm:$0xff] }
  0x7b   :  { %439 = vmatmul.mubr.f32.vlgmr.msra.gmra.mrb[0].mxu1 %v1312_v25  ;;  %v139_v25 = vld [vmem:[#allocation5 + $0x268] sm:$0xff]  ;;  %v297_v17 = vld [vmem:[#allocation5 + $0x758] sm:$0xff] }
  0x7c   :  { %894 = vmatpush1.bf16.msra.mxu1 %v893_v34  ;;  %581 = vmatmul.mubr.f32.vlgmr.msra.gmra.mrb[0].mxu0 %v1318_v28  ;;  %v1029_v28 = vpack.c.bf16 %v264_v54, %v262_v52  ;;  %v903_v59 = vpack.c.bf16 %v141_v55, %v139_v25  ;;  %v281_v34 = vld [vmem:[#allocation5 + $0x6d8] sm:$0xff]  ;;  %v1047_v52 = vpack.c.bf16 %v285_v45, %v283_v11  ;;  %v159_v54 = vld [vmem:[#allocation5 + $0x308] sm:$0xff] }
  0x7d   :  { %1022 = vmatpush1.bf16.msra.mxu0 %v1021_v35  ;;  %896 = vmatprep.subr.bf16.mxu1 %v895_v36  ;;  %v913_v35 = vpack.c.bf16 %v148_v24, %v146_v23  ;;  %v1041_v36 = vpack.c.bf16 %v276_v22, %v274_v27  ;;  %v1043_v41 = vpack.c.bf16 %v281_v34, %v279_v32  ;;  %v161_v25 = vld [vmem:[#allocation5 + $0x318] sm:$0xff]  ;;  %v287_v55 = vld [vmem:[#allocation5 + $0x708] sm:$0xff]  ;;  %v168_v23 = vld [vmem:[#allocation5 + $0x350] sm:$0xff] }
  0x7e   :  { %1024 = vmatprep.subr.bf16.mxu0 %v1023_v40  ;;  %509 = vmatprep.mubr.f32.mxu1 %v348_v44  ;;  %v278_v40 = vld [vmem:[#allocation5 + $0x6c0] sm:$0xff]  ;;  %v157_v44 = vld [vmem:[#allocation5 + $0x2f8] sm:$0xff]  ;;  %v1051_v63 = vpack.c.bf16 %v289_v56, %v287_v55  ;;  %v1059_v27 = vpack.c.bf16 %v297_v17, %v295_v16  ;;  %v171_v22 = vld [vmem:[#allocation5 + $0x368] sm:$0xff] }
  0x7f   :  { %651 = vmatprep.mubr.f32.mxu0 %v365_v46  ;;  %v917_v46 = vpack.c.bf16 %v152_v39, %v150_v38  ;;  %v294_v24 = vld [vmem:[#allocation5 + $0x740] sm:$0xff]  ;;  %v173_v30 = vld [vmem:[#allocation5 + $0x378] sm:$0xff]  ;;  %v299_v26 = vld [vmem:[#allocation5 + $0x768] sm:$0xff] }
  0x80   :  { %898 = vmatpush1.bf16.msra.mxu1 %v897_v47  ;;  %v1045_v47 = vpack.c.bf16 %v280_v42, %v278_v40  ;;  %v301_v32 = vld [vmem:[#allocation5 + $0x778] sm:$0xff]  ;;  %v172_v38 = vld [vmem:[#allocation5 + $0x370] sm:$0xff]  ;;  %v298_v39 = vld [vmem:[#allocation5 + $0x760] sm:$0xff] }
  0x81   :  { %1026 = vmatpush1.bf16.msra.mxu0 %v1025_v48  ;;  %900 = vmatprep.subr.bf16.mxu1 %v899_v49  ;;  %v919_v48 = vpack.c.bf16 %v157_v44, %v155_v43  ;;  %v154_v49 = vld [vmem:[#allocation5 + $0x2e0] sm:$0xff]  ;;  %v1063_v40 = vpack.c.bf16 %v301_v32, %v299_v26  ;;  %v175_v42 = vld [vmem:[#allocation5 + $0x388] sm:$0xff]  ;;  %v177_v43 = vld [vmem:[#allocation5 + $0x398] sm:$0xff] }
  0x82   :  { %1028 = vmatprep.subr.bf16.mxu0 %v1027_v53  ;;  %v284_v53 = vld [vmem:[#allocation5 + $0x6f0] sm:$0xff]  ;;  %v921_v57 = vpack.c.bf16 %v156_v50, %v154_v49  ;;  %v303_v44 = vld [vmem:[#allocation5 + $0x788] sm:$0xff]  ;;  %v305_v11 = vld [vmem:[#allocation5 + $0x798] sm:$0xff] }
  0x83   :  { %v176_v49 = vld [vmem:[#allocation5 + $0x390] sm:$0xff]  ;;  %v302_v50 = vld [vmem:[#allocation5 + $0x780] sm:$0xff]  ;;  %v309_v55 = vld [vmem:[#allocation5 + $0x7b8] sm:$0xff] }
  0x84   :  { %902 = vmatpush1.bf16.msra.mxu1 %v901_v58  ;;  %v1049_v58 = vpack.c.bf16 %v284_v53, %v282_v51  ;;  %v1067_v51 = vpack.c.bf16 %v305_v11, %v303_v44  ;;  %v179_v53 = vld [vmem:[#allocation5 + $0x3a8] sm:$0xff]  ;;  %v313_v3 = vld [vmem:[#allocation5 + $0x7d8] sm:$0xff]  ;;  %v672_v44 = vld [vmem:[#allocation7 + $0x40] sm:$0xff] }
  0x85   :  { %1030 = vmatpush1.bf16.msra.mxu0 %v1029_v28  ;;  %904 = vmatprep.subr.bf16.mxu1 %v903_v59  ;;  %v923_v28 = vpack.c.bf16 %v161_v25, %v159_v54  ;;  %v158_v59 = vld [vmem:[#allocation5 + $0x300] sm:$0xff]  ;;  %v181_v54 = vld [vmem:[#allocation5 + $0x3b8] sm:$0xff]  ;;  %v307_v25 = vld [vmem:[#allocation5 + $0x7a8] sm:$0xff] }
  0x86   :  { %1032 = vmatprep.subr.bf16.mxu0 %v1031_v0  ;;  %v288_v0 = vld [vmem:[#allocation5 + $0x710] sm:$0xff]  ;;  %v925_v5 = vpack.c.bf16 %v160_v60, %v158_v59  ;;  %v306_v60 = vld [vmem:[#allocation5 + $0x7a0] sm:$0xff]  ;;  %v317_v16 = vld [vmem:[#allocation5 + $0x7f8] sm:$0xff] }
  0x87   :  { %v180_v59 = vld [vmem:[#allocation5 + $0x3b0] sm:$0xff]  ;;  %v665_v26 = vld [vmem:[#allocation7 + $0x8] sm:$0xff] }
  0x88   :  { %906 = vmatpush1.bf16.msra.mxu1 %v905_v6  ;;  %v1053_v6 = vpack.c.bf16 %v288_v0, %v286_v62  ;;  %v1071_v62 = vpack.c.bf16 %v309_v55, %v307_v25  ;;  %v183_v0 = vld [vmem:[#allocation5 + $0x3c8] sm:$0xff]  ;;  %v318_v25 = vld [vmem:[%s1364_s2] sm:$0x3]  ;;  %v326_v55 = vsub.s32 1, %v1303_v61 }
  0x89   :  { %1034 = vmatpush1.bf16.msra.mxu0 %v1033_v7  ;;  %908 = vmatprep.subr.bf16.mxu1 %v907_v8  ;;  %v927_v7 = vpack.c.bf16 %v165_v2, %v163_v1  ;;  %v162_v8 = vld [vmem:[#allocation5 + $0x320] sm:$0xff]  ;;  %v185_v1 = vld [vmem:[#allocation5 + $0x3d8] sm:$0xff]  ;;  %v311_v2 = vld [vmem:[#allocation5 + $0x7c8] sm:$0xff] }
  0x8a   :  { %1036 = vmatprep.subr.bf16.mxu0 %v1035_v13  ;;  %v292_v13 = vld [vmem:[#allocation5 + $0x730] sm:$0xff]  ;;  %v929_v18 = vpack.c.bf16 %v164_v9, %v162_v8  ;;  %v310_v9 = vld [vmem:[#allocation5 + $0x7c0] sm:$0xff]  ;;  %v673_v11 = vld [vmem:[#allocation7 + $0x48] sm:$0xff] }
  0x8b   :  { %v184_v8 = vld [vmem:[#allocation5 + $0x3d0] sm:$0xff] }
  0x8c   :  { %910 = vmatpush1.bf16.msra.mxu1 %v909_v19  ;;  %v1057_v19 = vpack.c.bf16 %v292_v13, %v290_v10  ;;  %v1075_v10 = vpack.c.bf16 %v313_v3, %v311_v2  ;;  %v187_v13 = vld [vmem:[#allocation5 + $0x3e8] sm:$0xff] }
  0x8d   :  { %1038 = vmatpush1.bf16.msra.mxu0 %v1037_v20  ;;  %912 = vmatprep.subr.bf16.mxu1 %v911_v21  ;;  %v931_v20 = vpack.c.bf16 %v169_v15, %v167_v14  ;;  %v166_v21 = vld [vmem:[#allocation5 + $0x340] sm:$0xff]  ;;  %v189_v14 = vld [vmem:[#allocation5 + $0x3f8] sm:$0xff]  ;;  %v315_v15 = vld [vmem:[#allocation5 + $0x7e8] sm:$0xff] }
  0x8e   :  { %1040 = vmatprep.subr.bf16.mxu0 %v1039_v29  ;;  %v296_v29 = vld [vmem:[#allocation5 + $0x750] sm:$0xff]  ;;  %v933_v34 = vpack.c.bf16 %v168_v23, %v166_v21  ;;  %v1079_v23 = vpack.c.bf16 %v317_v16, %v315_v15 }
  0x8f   :  { %v188_v21 = vld [vmem:[#allocation5 + $0x3f0] sm:$0xff] }
  0x90   :  { %914 = vmatpush1.bf16.msra.mxu1 %v913_v35  ;;  %v1061_v35 = vpack.c.bf16 %v296_v29, %v294_v24  ;;  %v314_v24 = vld [vmem:[#allocation5 + $0x7e0] sm:$0xff] }
  0x91   :  { %1042 = vmatpush1.bf16.msra.mxu0 %v1041_v36  ;;  %916 = vmatprep.subr.bf16.mxu1 %v915_v37  ;;  %v935_v36 = vpack.c.bf16 %v173_v30, %v171_v22  ;;  %v170_v37 = vld [vmem:[#allocation5 + $0x360] sm:$0xff] }
  0x92   :  { %1044 = vmatprep.subr.bf16.mxu0 %v1043_v41  ;;  %v300_v41 = vld [vmem:[#allocation5 + $0x770] sm:$0xff]  ;;  %v937_v45 = vpack.c.bf16 %v172_v38, %v170_v37  ;;  %v664_v30 = vld [vmem:[#allocation7] sm:$0xff] }
  0x93   :  { %v1084_v32 = vpack.c.bf16 %v665_v26, %v664_v30  ;;  %v668_v38 = vld [vmem:[#allocation7 + $0x20] sm:$0xff] }
  0x94   :  { %918 = vmatpush1.bf16.msra.mxu1 %v917_v46  ;;  %v1065_v46 = vpack.c.bf16 %v300_v41, %v298_v39  ;;  %v669_v39 = vld [vmem:[#allocation7 + $0x28] sm:$0xff]  ;;  %v670_v41 = vld [vmem:[#allocation7 + $0x30] sm:$0xff] }
  0x95   :  { %1046 = vmatpush1.bf16.msra.mxu0 %v1045_v47  ;;  %920 = vmatprep.subr.bf16.mxu1 %v919_v48  ;;  %v939_v47 = vpack.c.bf16 %v177_v43, %v175_v42  ;;  %v174_v48 = vld [vmem:[#allocation5 + $0x380] sm:$0xff]  ;;  %v671_v42 = vld [vmem:[#allocation7 + $0x38] sm:$0xff] }
  0x96   :  { %1048 = vmatprep.subr.bf16.mxu0 %v1047_v52  ;;  %v304_v52 = vld [vmem:[#allocation5 + $0x790] sm:$0xff]  ;;  %v941_v56 = vpack.c.bf16 %v176_v49, %v174_v48  ;;  %v1093_v43 = vpack.c.bf16 %v671_v42, %v670_v41  ;;  %v677_v48 = vld [vmem:[#allocation7 + $0x68] sm:$0xff] }
  0x98   :  { %922 = vmatpush1.bf16.msra.mxu1 %v921_v57  ;;  %v1069_v57 = vpack.c.bf16 %v304_v52, %v302_v50  ;;  %v678_v50 = vld [vmem:[#allocation7 + $0x70] sm:$0xff] }
  0x99   :  { %1050 = vmatpush1.bf16.msra.mxu0 %v1049_v58  ;;  %924 = vmatprep.subr.bf16.mxu1 %v923_v28  ;;  %v943_v58 = vpack.c.bf16 %v181_v54, %v179_v53  ;;  %v178_v28 = vld [vmem:[#allocation5 + $0x3a0] sm:$0xff]  ;;  %v1235_v53 = vmov 0.0   ;;  %v322_v54 = vsub.s32 0, %v1303_v61  ;;  %v774_v61 = vld [vmem:[%s1366_s4] ss:$0 sm:$0xff] }
  0x9a   :  { %1052 = vmatprep.subr.bf16.mxu0 %v1051_v63  ;;  %v308_v63 = vld [vmem:[#allocation5 + $0x7b0] sm:$0xff]  ;;  %v945_v4 = vpack.c.bf16 %v180_v59, %v178_v28 }
  0x9c   :  { %926 = vmatpush1.bf16.msra.mxu1 %v925_v5  ;;  %v1073_v5 = vpack.c.bf16 %v308_v63, %v306_v60 }
  0x9d   :  { %1054 = vmatpush1.bf16.msra.mxu0 %v1053_v6  ;;  %928 = vmatprep.subr.bf16.mxu1 %v927_v7  ;;  %v947_v6 = vpack.c.bf16 %v185_v1, %v183_v0  ;;  %v182_v7 = vld [vmem:[#allocation5 + $0x3c0] sm:$0xff] }
  0x9e   :  { %1056 = vmatprep.subr.bf16.mxu0 %v1055_v12  ;;  %v312_v12 = vld [vmem:[#allocation5 + $0x7d0] sm:$0xff]  ;;  %v949_v17 = vpack.c.bf16 %v184_v8, %v182_v7 }
  0xa0   :  { %930 = vmatpush1.bf16.msra.mxu1 %v929_v18  ;;  %v1077_v18 = vpack.c.bf16 %v312_v12, %v310_v9 }
  0xa1   :  { %1058 = vmatpush1.bf16.msra.mxu0 %v1057_v19  ;;  %932 = vmatprep.subr.bf16.mxu1 %v931_v20  ;;  %v951_v19 = vpack.c.bf16 %v189_v14, %v187_v13  ;;  %v186_v20 = vld [vmem:[#allocation5 + $0x3e0] sm:$0xff] }
  0xa2   :  { %1060 = vmatprep.subr.bf16.mxu0 %v1059_v27  ;;  %v316_v27 = vld [vmem:[#allocation5 + $0x7f0] sm:$0xff]  ;;  %v953_v29 = vpack.c.bf16 %v188_v21, %v186_v20 }
  0xa3   :  { %v1081_v22 = vpack.c.bf16 %v316_v27, %v314_v24 }
  0xa4   :  { %934 = vmatpush1.bf16.msra.mxu1 %v933_v34  ;;  %v1233_v34 = vmov 0.0|0.0  }
  0xa5   :  { %1062 = vmatpush1.bf16.msra.mxu0 %v1061_v35  ;;  %936 = vmatprep.subr.bf16.mxu1 %v935_v36  ;;  %v666_v35 = vld [vmem:[#allocation7 + $0x10] sm:$0xff]  ;;  %v667_v36 = vld [vmem:[#allocation7 + $0x18] sm:$0xff] }
  0xa6   :  { %1064 = vmatprep.subr.bf16.mxu0 %v1063_v40  ;;  %v1087_v37 = vpack.c.bf16 %v667_v36, %v666_v35  ;;  %v1090_v40 = vpack.c.bf16 %v669_v39, %v668_v38 }
  0xa8   :  { %938 = vmatpush1.bf16.msra.mxu1 %v937_v45  ;;  %v675_v45 = vld [vmem:[#allocation7 + $0x58] sm:$0xff] }
  0xa9   :  { %1066 = vmatpush1.bf16.msra.mxu0 %v1065_v46  ;;  %940 = vmatprep.subr.bf16.mxu1 %v939_v47  ;;  %v676_v47 = vld [vmem:[#allocation7 + $0x60] sm:$0xff] }
  0xaa   :  { %1068 = vmatprep.subr.bf16.mxu0 %v1067_v51  ;;  %v1102_v49 = vpack.c.bf16 %v677_v48, %v676_v47  ;;  %v679_v51 = vld [vmem:[#allocation7 + $0x78] sm:$0xff] }
  0xab   :  { %v1105_v52 = vpack.c.bf16 %v679_v51, %v678_v50 }
  0xac   :  { %942 = vmatpush1.bf16.msra.mxu1 %v941_v56  ;;  %v323_v56 = vrot.slane %v318_v25, %v322_v54 }
  0xad   :  { %1070 = vmatpush1.bf16.msra.mxu0 %v1069_v57  ;;  %944 = vmatprep.subr.bf16.mxu1 %v943_v58  ;;  %v327_v57 = vrot.slane %v318_v25, %v326_v55 }
  0xae   :  { %1072 = vmatprep.subr.bf16.mxu0 %v1071_v62 }
  0xb0   :  { %946 = vmatpush1.bf16.msra.mxu1 %v945_v4 }
  0xb1   :  { %1074 = vmatpush1.bf16.msra.mxu0 %v1073_v5  ;;  %948 = vmatprep.subr.bf16.mxu1 %v947_v6 }
  0xb2   :  { %1076 = vmatprep.subr.bf16.mxu0 %v1075_v10 }
  0xb4   :  { %950 = vmatpush1.bf16.msra.mxu1 %v949_v17 }
  0xb5   :  { %1078 = vmatpush1.bf16.msra.mxu0 %v1077_v18  ;;  %952 = vmatprep.subr.bf16.mxu1 %v951_v19 }
  0xb6   :  { %1080 = vmatprep.subr.bf16.mxu0 %v1079_v23 }
  0xb8   :  { %954 = vmatpush1.bf16.msra.mxu1 %v953_v29 }
  0xb9   :  { %1082 = vmatpush1.bf16.msra.mxu0 %v1081_v22  ;;  %1083 = vmatprep.subr.bf16.mxu1 %v1233_v34 }
  0xbb   :  { %510 = vmatmul.mubr.f32.vlgmr.msra.gmra.mrb[0].mxu1 %v1329_v31  ;;  %v1096_v31 = vpack.c.bf16 %v673_v11, %v672_v44 }
  0xbc   :  { %652 = vmatmul.mubr.f32.vlgmr.msra.gmra.mrb[0].mxu0 %v1332_v33  ;;  %1085 = vmatpush3.bf16.msra.mxu1 %v1084_v32  ;;  %v674_v33 = vld [vmem:[#allocation7 + $0x50] sm:$0xff] }
  0xbd   :  { %1086 = vmatprep.subr.bf16.mxu1 %v1233_v34  ;;  %v1099_v46 = vpack.c.bf16 %v675_v45, %v674_v33  ;;  %824 = vmatprep.mubr.msk.f32.mxu1 %vm1234_vm0, %v1235_v53 }
  0xc0   :  { %1088 = vmatpush3.bf16.msra.mxu1 %v1087_v37 }
  0xc1   :  { %1089 = vmatprep.subr.bf16.mxu1 %v1233_v34 }
  0xc4   :  { %1091 = vmatpush3.bf16.msra.mxu1 %v1090_v40 }
  0xc5   :  { %1092 = vmatprep.subr.bf16.mxu1 %v1233_v34 }
  0xc8   :  { %1094 = vmatpush3.bf16.msra.mxu1 %v1093_v43 }
  0xc9   :  { %1095 = vmatprep.subr.bf16.mxu1 %v1233_v34 }
  0xcc   :  { %1097 = vmatpush3.bf16.msra.mxu1 %v1096_v31 }
  0xcd   :  { %1098 = vmatprep.subr.bf16.mxu1 %v1233_v34 }
  0xd0   :  { %1100 = vmatpush3.bf16.msra.mxu1 %v1099_v46 }
  0xd1   :  { %1101 = vmatprep.subr.bf16.mxu1 %v1233_v34 }
  0xd4   :  { %1103 = vmatpush3.bf16.msra.mxu1 %v1102_v49 }
  0xd5   :  { %1104 = vmatprep.subr.bf16.mxu1 %v1233_v34 }
  0xd8   :  { %1106 = vmatpush3.bf16.msra.mxu1 %v1105_v52 }
 0x18e   :  { %v511_v58 = vpop.f32.mrb[0].mxu1 }
 0x18f   :  { %v1107_v28 = vadd.f32 %v511_v58, %v323_v56  ;;  %v653_v59 = vpop.f32.mrb[0].mxu0  ;;  %v513_v60 = vpop.f32.mrb[1].mxu1 }
 0x190   :  { %v1109_v62 = vadd.f32 %v513_v60, %v327_v57  ;;  %v655_v63 = vpop.f32.mrb[1].mxu0 }
 0x191   :  { %v1108_v0 = vadd.f32 %v1107_v28, %v653_v59 }
 0x192   :  { %v1110_v1 = vadd.f32 %v1109_v62, %v655_v63 }
 0x194   :  { %v659_v2 = vmul.f32 0.70710677, %v1110_v1  ;;  %v658_v4 = vmul.f32 0.5, %v1110_v1 }
 0x196   :  { %1129 = verf.f32 %v659_v2 }
 0x1a0   :  { %v1130_v3 = vpop.eup %1129 }
 0x1a1   :  { %v661_v5 = vadd.f32 1.0, %v1130_v3 }
 0x1a3   :  { %v662_v6 = vmul.f32 %v661_v5, %v658_v4 }
 0x1a5   :  { %v663_v7 = vmul.f32 %v1108_v0, %v662_v6 }
 0x1a7   :  { %825 = vmatmul.mubr.f32.vlgmr.msra.gmra.mrb[2].mxu1 %v663_v7 }
 0x27a   :  { %v753_v8 = vpop.f32.mrb[2].mxu1 }
 0x27b   :  { %v754_v9 = vadd.f32 %v774_v61, %v753_v8  ;;  %v826_v10 = vpop.f32.mrb[3].mxu1 }
 0x27d   :  { %757 = vst [vmem:[#allocation8] sm:$0x3] %v754_v9 }
 0x27e   :  { %1208 = shalt.err (!%p1205_p0)
}
 0x27f   :  { %s1209_s13 = scalar_lea.hbm %s1367_s5, 32 }
 0x280   :  { %p1210_p1 = scmp.ne.s32.totalorder %s1367_s5, %s1209_s13  ;;  %p1213_p2 = scmp.lt.u32.totalorder %s1209_s13, %s1367_s5 }
 0x282   :  { %p1215_p3 = pnand %p1213_p2, %p1210_p1 }
 0x284   :  { %1218 = shalt.err (!%p1215_p3)
}
 0x285   :  { %767 = dma.vmem_to_hbm [thread:$0]  %s765_s9, 32, %s1367_s5, [#allocation4]  }
 0x286   :  { %1223 = dma.done.wait [#allocation4], 32  }
 0x287   :  { %1224 = vsyncadd [#allocation4], 4294967264 }
 0x288   :  { %771 = vsyncpa [#allocation3], 1 }
 0x289   :  { %772 = vsyncpa [#allocation6], 1 }
 0x28a   :  { %773 = vsyncpa [#allocation4], 1 }

// kernel: tpu_custom_call.1
= control target key start
LH: loop header
LB: loop body
LE: loop exit
PB: predicated region body
PF: predicated region fallthrough
CT: control target
= control target key end

     0   :  { %10 = vsyncpa [#allocation3], 0  ;;  %s1366_s0 = inlined_call_operand.hbm [shape: f32[2,1024], index: 0, kind: input, shape index: {}]   ;;  %s1367_s1 = inlined_call_operand.hbm [shape: f32[1024,256], index: 1, kind: input, shape index: {}]   ;;  %s1368_s2 = inlined_call_operand.vmem [shape: f32[1,256], index: 2, kind: input, shape index: {}]   ;;  %s1369_s3 = inlined_call_operand.hbm [shape: f32[128,128], index: 3, kind: input, shape index: {}]   ;;  %s1370_s4 = inlined_call_operand.vmem [shape: f32[1,128], index: 4, kind: input, shape index: {}]   ;;  %s1371_s5 = inlined_call_operand.hbm [shape: f32[2,128], index: 5, kind: output, shape index: {}]  }
   0x1   :  { %11 = vsyncpa [#allocation6], 0 }
   0x2   :  { %12 = vsyncpa [#allocation4], 0  ;;  %s1229_s18 = smov [#allocation5]   ;;  %s1135_s22 = scalar_lea.hbm %s1367_s1, 32768 }
   0x3   :  { %s28_s19 = sshll.u32 %s1229_s18, 4  ;;  %p1136_p0 = scmp.ne.s32.totalorder %s1367_s1, %s1135_s22  ;;  %s29_s19 = int_to_ptr.vmem [resolvable:$true] %s28_s19 }
   0x4   :  { %p1139_p1 = scmp.lt.u32.totalorder %s1135_s22, %s1367_s1 }
   0x6   :  { %p1141_p2 = pnand %p1139_p1, %p1136_p0 }
   0x8   :  { %1144 = shalt.err (!%p1141_p2)
}
   0x9   :  { %s1145_s27 = scalar_lea.vmem %s29_s19, 32768  ;;  %p1150_p4 = scmp.lt.s32.totalorder %s29_s19, %s29_s19 }
   0xa   :  { %p1146_p3 = scmp.ne.s32.totalorder %s29_s19, %s1145_s27  ;;  %p1151_p5 = scmp.lt.s32.totalorder %s1145_s27, %s1145_s27 }
   0xc   :  { %p1152_p6 = por %p1151_p5, %p1150_p4 }
   0xe   :  { %p1153_p7 = pnand %p1152_p6, %p1146_p3 }
  0x10   :  { %1156 = shalt.err (!%p1153_p7)
}
  0x11   :  { %s1230_s28 = smov 256   ;;  %s1231_s29 = smov 16  }
  0x12   :  { %34 = dma.hbm_to_vmem [thread:$0]  %s1367_s1, 32768, %s29_s19, [#allocation6], %s1230_s28, %s1230_s28, %s1231_s29  }
  0x13   :  { %s1232_s7 = smov [#allocation2]   ;;  %s1233_s9 = smov [#allocation7]  }
  0x14   :  { %s19_s8 = sshll.u32 %s1232_s7, 4  ;;  %s42_s10 = sshll.u32 %s1233_s9, 4  ;;  %s20_s8 = int_to_ptr.vmem [resolvable:$true] %s19_s8  ;;  %s43_s10 = int_to_ptr.vmem [resolvable:$true] %s42_s10 }
  0x15   :  { %s1157_s13 = scalar_lea.hbm %s1366_s0, 256 }
  0x16   :  { %p1158_p8 = scmp.ne.s32.totalorder %s1366_s0, %s1157_s13  ;;  %p1161_p9 = scmp.lt.u32.totalorder %s1157_s13, %s1366_s0 }
  0x18   :  { %p1163_p10 = pnand %p1161_p9, %p1158_p8 }
  0x1a   :  { %1166 = shalt.err (!%p1163_p10)
}
  0x1b   :  { %s1167_s1 = scalar_lea.vmem %s20_s8, 256  ;;  %p1172_p12 = scmp.lt.s32.totalorder %s20_s8, %s20_s8 }
  0x1c   :  { %p1168_p11 = scmp.ne.s32.totalorder %s20_s8, %s1167_s1  ;;  %p1173_p13 = scmp.lt.s32.totalorder %s1167_s1, %s1167_s1 }
  0x1e   :  { %p1174_p0 = por %p1173_p13, %p1172_p12 }
  0x20   :  { %p1175_p1 = pnand %p1174_p0, %p1168_p11 }
  0x22   :  { %1178 = shalt.err (!%p1175_p1)
}
  0x23   :  { %22 = dma.hbm_to_vmem [thread:$0]  %s1366_s0, 256, %s20_s8, [#allocation3]  }
  0x24   :  { %s1179_s22 = scalar_lea.hbm %s1369_s3, 2048 }
  0x25   :  { %p1180_p2 = scmp.ne.s32.totalorder %s1369_s3, %s1179_s22  ;;  %p1183_p3 = scmp.lt.u32.totalorder %s1179_s22, %s1369_s3 }
  0x27   :  { %p1185_p4 = pnand %p1183_p3, %p1180_p2 }
  0x29   :  { %1188 = shalt.err (!%p1185_p4)
}
  0x2a   :  { %s1189_s27 = scalar_lea.vmem %s43_s10, 2048  ;;  %p1194_p6 = scmp.lt.s32.totalorder %s43_s10, %s43_s10 }
  0x2b   :  { %p1190_p5 = scmp.ne.s32.totalorder %s43_s10, %s1189_s27  ;;  %p1195_p7 = scmp.lt.s32.totalorder %s1189_s27, %s1189_s27 }
  0x2d   :  { %p1196_p8 = por %p1195_p7, %p1194_p6 }
  0x2f   :  { %p1197_p9 = pnand %p1196_p8, %p1190_p5 }
  0x31   :  { %1200 = shalt.err (!%p1197_p9)
}
  0x32   :  { %s1234_s0 = smov 128   ;;  %s1235_s28 = smov 8  }
  0x33   :  { %48 = dma.hbm_to_vmem [thread:$0]  %s1369_s3, 2048, %s43_s10, [#allocation6], %s1234_s0, %s1234_s0, %s1235_s28  }
  0x34   :  { %1223 = dma.done.wait [#allocation3], 256  }
  0x35   :  { %1224 = vsyncadd [#allocation3], 4294967040 }
  0x36   :  { %1225 = dma.done.wait [#allocation6], 34816  }
  0x37   :  { %1226 = vsyncadd [#allocation6], 4294932480  ;;  %v63_v0 = vld [vmem:[#allocation5 + $0x8] sm:$0xff]  ;;  %v65_v1 = vld [vmem:[#allocation5 + $0x18] sm:$0xff]  ;;  %vm1238_vm0 = vmmov 0   ;;  %s1240_s8 = smov [#allocation8]  }
  0x38   :  { %v191_v2 = vld [vmem:[#allocation5 + $0x408] sm:$0xff]  ;;  %v831_v3 = vpack.c.bf16 %v65_v1, %v63_v0  ;;  %v193_v4 = vld [vmem:[#allocation5 + $0x418] sm:$0xff]  ;;  %v62_v5 = vld [vmem:[#allocation5] sm:$0xff]  ;;  %s768_s9 = sshll.u32 %s1240_s8, 4  ;;  %s769_s9 = int_to_ptr.vmem [resolvable:$true] %s768_s9 }
  0x39   :  { %v64_v6 = vld [vmem:[#allocation5 + $0x10] sm:$0xff]  ;;  %v959_v7 = vpack.c.bf16 %v193_v4, %v191_v2  ;;  %v190_v9 = vld [vmem:[#allocation5 + $0x400] sm:$0xff]  ;;  %v67_v11 = vld [vmem:[#allocation5 + $0x28] sm:$0xff]  ;;  %s1201_s10 = scalar_lea.vmem %s769_s9, 32  ;;  %p1206_p11 = scmp.lt.s32.totalorder %s769_s9, %s769_s9 }
  0x3a   :  { %v833_v8 = vpack.c.bf16 %v64_v6, %v62_v5  ;;  %v192_v10 = vld [vmem:[#allocation5 + $0x410] sm:$0xff]  ;;  %832 = vmatprep.subr.bf16.mxu1 %v831_v3  ;;  %v69_v13 = vld [vmem:[#allocation5 + $0x38] sm:$0xff]  ;;  %v195_v14 = vld [vmem:[#allocation5 + $0x428] sm:$0xff]  ;;  %p1202_p10 = scmp.ne.s32.totalorder %s769_s9, %s1201_s10  ;;  %p1207_p12 = scmp.lt.s32.totalorder %s1201_s10, %s1201_s10 }
  0x3b   :  { %v961_v12 = vpack.c.bf16 %v192_v10, %v190_v9  ;;  %v197_v15 = vld [vmem:[#allocation5 + $0x438] sm:$0xff]  ;;  %960 = vmatprep.subr.bf16.mxu0 %v959_v7  ;;  %v835_v16 = vpack.c.bf16 %v69_v13, %v67_v11  ;;  %v66_v18 = vld [vmem:[#allocation5 + $0x20] sm:$0xff]  ;;  %v68_v19 = vld [vmem:[#allocation5 + $0x30] sm:$0xff] }
  0x3c   :  { %834 = vmatpush1.bf16.msra.mxu1 %v833_v8  ;;  %v963_v17 = vpack.c.bf16 %v197_v15, %v195_v14  ;;  %v194_v20 = vld [vmem:[#allocation5 + $0x420] sm:$0xff]  ;;  %v837_v21 = vpack.c.bf16 %v68_v19, %v66_v18  ;;  %v196_v22 = vld [vmem:[#allocation5 + $0x430] sm:$0xff]  ;;  %v71_v23 = vld [vmem:[#allocation5 + $0x48] sm:$0xff]  ;;  %p1208_p13 = por %p1207_p12, %p1206_p11 }
  0x3d   :  { %962 = vmatpush1.bf16.msra.mxu0 %v961_v12  ;;  %v73_v24 = vld [vmem:[#allocation5 + $0x58] sm:$0xff]  ;;  %836 = vmatprep.subr.bf16.mxu1 %v835_v16  ;;  %v965_v25 = vpack.c.bf16 %v196_v22, %v194_v20  ;;  %v199_v27 = vld [vmem:[#allocation5 + $0x448] sm:$0xff]  ;;  %v70_v29 = vld [vmem:[#allocation5 + $0x40] sm:$0xff] }
  0x3e   :  { %964 = vmatprep.subr.bf16.mxu0 %v963_v17  ;;  %v839_v26 = vpack.c.bf16 %v73_v24, %v71_v23  ;;  %v201_v28 = vld [vmem:[#allocation5 + $0x458] sm:$0xff]  ;;  %v72_v31 = vld [vmem:[#allocation5 + $0x50] sm:$0xff]  ;;  %v198_v32 = vld [vmem:[#allocation5 + $0x440] sm:$0xff]  ;;  %p1209_p0 = pnand %p1208_p13, %p1202_p10 }
  0x3f   :  { %v967_v30 = vpack.c.bf16 %v201_v28, %v199_v27  ;;  %v200_v33 = vld [vmem:[#allocation5 + $0x450] sm:$0xff]  ;;  %v841_v34 = vpack.c.bf16 %v72_v31, %v70_v29  ;;  %v75_v35 = vld [vmem:[#allocation5 + $0x68] sm:$0xff]  ;;  %v77_v36 = vld [vmem:[#allocation5 + $0x78] sm:$0xff] }
  0x40   :  { %838 = vmatpush1.bf16.msra.mxu1 %v837_v21  ;;  %v203_v37 = vld [vmem:[#allocation5 + $0x468] sm:$0xff]  ;;  %v969_v38 = vpack.c.bf16 %v200_v33, %v198_v32  ;;  %v843_v39 = vpack.c.bf16 %v77_v36, %v75_v35  ;;  %v205_v40 = vld [vmem:[#allocation5 + $0x478] sm:$0xff]  ;;  %v74_v41 = vld [vmem:[#allocation5 + $0x60] sm:$0xff] }
  0x41   :  { %966 = vmatpush1.bf16.msra.mxu0 %v965_v25  ;;  %840 = vmatprep.subr.bf16.mxu1 %v839_v26  ;;  %v76_v42 = vld [vmem:[#allocation5 + $0x70] sm:$0xff]  ;;  %v971_v43 = vpack.c.bf16 %v205_v40, %v203_v37  ;;  %v202_v44 = vld [vmem:[#allocation5 + $0x460] sm:$0xff]  ;;  %v79_v46 = vld [vmem:[#allocation5 + $0x88] sm:$0xff] }
  0x42   :  { %968 = vmatprep.subr.bf16.mxu0 %v967_v30  ;;  %v204_v45 = vld [vmem:[#allocation5 + $0x470] sm:$0xff]  ;;  %v81_v47 = vld [vmem:[#allocation5 + $0x98] sm:$0xff]  ;;  %v207_v48 = vld [vmem:[#allocation5 + $0x488] sm:$0xff]  ;;  %v845_v50 = vpack.c.bf16 %v76_v42, %v74_v41 }
  0x43   :  { %v209_v49 = vld [vmem:[#allocation5 + $0x498] sm:$0xff]  ;;  %v973_v51 = vpack.c.bf16 %v204_v45, %v202_v44  ;;  %v847_v52 = vpack.c.bf16 %v81_v47, %v79_v46  ;;  %v78_v53 = vld [vmem:[#allocation5 + $0x80] sm:$0xff]  ;;  %v80_v54 = vld [vmem:[#allocation5 + $0x90] sm:$0xff]  ;;  %v320_v46 = vlaneseq  ;;  %v1236_v47 = vmov 1983009808  }
  0x44   :  { %842 = vmatpush1.bf16.msra.mxu1 %v841_v34  ;;  %v206_v55 = vld [vmem:[#allocation5 + $0x480] sm:$0xff]  ;;  %v975_v56 = vpack.c.bf16 %v209_v49, %v207_v48  ;;  %v208_v57 = vld [vmem:[#allocation5 + $0x490] sm:$0xff]  ;;  %v83_v58 = vld [vmem:[#allocation5 + $0xa8] sm:$0xff]  ;;  %v849_v62 = vpack.c.bf16 %v80_v54, %v78_v53  ;;  %v334_v48 = vunpack.c.l.s4 %v1236_v47 }
  0x45   :  { %970 = vmatpush1.bf16.msra.mxu0 %v969_v38  ;;  %844 = vmatprep.subr.bf16.mxu1 %v843_v39  ;;  %v85_v59 = vld [vmem:[#allocation5 + $0xb8] sm:$0xff]  ;;  %v211_v60 = vld [vmem:[#allocation5 + $0x4a8] sm:$0xff]  ;;  %v977_v63 = vpack.c.bf16 %v208_v57, %v206_v55  ;;  %v82_v1 = vld [vmem:[#allocation5 + $0xa0] sm:$0xff] }
  0x46   :  { %972 = vmatprep.subr.bf16.mxu0 %v971_v43  ;;  %v213_v61 = vld [vmem:[#allocation5 + $0x4b8] sm:$0xff]  ;;  %v851_v0 = vpack.c.bf16 %v85_v59, %v83_v58  ;;  %v84_v2 = vld [vmem:[#allocation5 + $0xb0] sm:$0xff]  ;;  %v210_v3 = vld [vmem:[#allocation5 + $0x4a0] sm:$0xff] }
  0x47   :  { %v979_v4 = vpack.c.bf16 %v213_v61, %v211_v60  ;;  %v212_v5 = vld [vmem:[#allocation5 + $0x4b0] sm:$0xff]  ;;  %v87_v6 = vld [vmem:[#allocation5 + $0xc8] sm:$0xff]  ;;  %v89_v7 = vld [vmem:[#allocation5 + $0xd8] sm:$0xff]  ;;  %v853_v10 = vpack.c.bf16 %v84_v2, %v82_v1  ;;  %v1307_v61 = vshrl.u32 %v320_v46, 7 }
  0x48   :  { %846 = vmatpush1.bf16.msra.mxu1 %v845_v50  ;;  %v215_v8 = vld [vmem:[#allocation5 + $0x4c8] sm:$0xff]  ;;  %v217_v9 = vld [vmem:[#allocation5 + $0x4d8] sm:$0xff]  ;;  %v981_v11 = vpack.c.bf16 %v212_v5, %v210_v3  ;;  %v855_v12 = vpack.c.bf16 %v89_v7, %v87_v6  ;;  %v86_v13 = vld [vmem:[#allocation5 + $0xc0] sm:$0xff] }
  0x49   :  { %974 = vmatpush1.bf16.msra.mxu0 %v973_v51  ;;  %848 = vmatprep.subr.bf16.mxu1 %v847_v52  ;;  %v88_v14 = vld [vmem:[#allocation5 + $0xd0] sm:$0xff]  ;;  %v214_v15 = vld [vmem:[#allocation5 + $0x4c0] sm:$0xff]  ;;  %v983_v16 = vpack.c.bf16 %v217_v9, %v215_v8  ;;  %v91_v18 = vld [vmem:[#allocation5 + $0xe8] sm:$0xff] }
  0x4a   :  { %976 = vmatprep.subr.bf16.mxu0 %v975_v56  ;;  %v216_v17 = vld [vmem:[#allocation5 + $0x4d0] sm:$0xff]  ;;  %v93_v19 = vld [vmem:[#allocation5 + $0xf8] sm:$0xff]  ;;  %v219_v20 = vld [vmem:[#allocation5 + $0x4e8] sm:$0xff]  ;;  %v857_v22 = vpack.c.bf16 %v88_v14, %v86_v13 }
  0x4b   :  { %v221_v21 = vld [vmem:[#allocation5 + $0x4f8] sm:$0xff]  ;;  %v985_v23 = vpack.c.bf16 %v216_v17, %v214_v15  ;;  %v859_v24 = vpack.c.bf16 %v93_v19, %v91_v18  ;;  %v90_v25 = vld [vmem:[#allocation5 + $0xe0] sm:$0xff]  ;;  %v92_v26 = vld [vmem:[#allocation5 + $0xf0] sm:$0xff] }
  0x4c   :  { %850 = vmatpush1.bf16.msra.mxu1 %v849_v62  ;;  %v218_v27 = vld [vmem:[#allocation5 + $0x4e0] sm:$0xff]  ;;  %v987_v28 = vpack.c.bf16 %v221_v21, %v219_v20  ;;  %v220_v29 = vld [vmem:[#allocation5 + $0x4f0] sm:$0xff]  ;;  %v95_v30 = vld [vmem:[#allocation5 + $0x108] sm:$0xff]  ;;  %v861_v34 = vpack.c.bf16 %v92_v26, %v90_v25  ;;  %v335_v62 = vunpack.c.0.s8 %v334_v48 }
  0x4d   :  { %978 = vmatpush1.bf16.msra.mxu0 %v977_v63  ;;  %852 = vmatprep.subr.bf16.mxu1 %v851_v0  ;;  %v97_v31 = vld [vmem:[#allocation5 + $0x118] sm:$0xff]  ;;  %v223_v32 = vld [vmem:[#allocation5 + $0x508] sm:$0xff]  ;;  %v989_v35 = vpack.c.bf16 %v220_v29, %v218_v27  ;;  %v94_v37 = vld [vmem:[#allocation5 + $0x100] sm:$0xff] }
  0x4e   :  { %980 = vmatprep.subr.bf16.mxu0 %v979_v4  ;;  %v225_v33 = vld [vmem:[#allocation5 + $0x518] sm:$0xff]  ;;  %v863_v36 = vpack.c.bf16 %v97_v31, %v95_v30  ;;  %v96_v38 = vld [vmem:[#allocation5 + $0x110] sm:$0xff]  ;;  %v222_v39 = vld [vmem:[#allocation5 + $0x500] sm:$0xff] }
  0x4f   :  { %v991_v40 = vpack.c.bf16 %v225_v33, %v223_v32  ;;  %v224_v41 = vld [vmem:[#allocation5 + $0x510] sm:$0xff]  ;;  %v99_v42 = vld [vmem:[#allocation5 + $0x128] sm:$0xff]  ;;  %v101_v43 = vld [vmem:[#allocation5 + $0x138] sm:$0xff]  ;;  %v865_v49 = vpack.c.bf16 %v96_v38, %v94_v37 }
  0x50   :  { %854 = vmatpush1.bf16.msra.mxu1 %v853_v10  ;;  %v227_v44 = vld [vmem:[#allocation5 + $0x528] sm:$0xff]  ;;  %v229_v45 = vld [vmem:[#allocation5 + $0x538] sm:$0xff]  ;;  %v993_v50 = vpack.c.bf16 %v224_v41, %v222_v39  ;;  %v867_v51 = vpack.c.bf16 %v101_v43, %v99_v42  ;;  %v98_v52 = vld [vmem:[#allocation5 + $0x120] sm:$0xff] }
  0x51   :  { %982 = vmatpush1.bf16.msra.mxu0 %v981_v11  ;;  %856 = vmatprep.subr.bf16.mxu1 %v855_v12  ;;  %v100_v53 = vld [vmem:[#allocation5 + $0x130] sm:$0xff]  ;;  %v226_v54 = vld [vmem:[#allocation5 + $0x520] sm:$0xff]  ;;  %v995_v55 = vpack.c.bf16 %v229_v45, %v227_v44  ;;  %v103_v57 = vld [vmem:[#allocation5 + $0x148] sm:$0xff]  ;;  %v1310_v11 = vsub.s32 %v335_v62, %v1307_v61 }
  0x52   :  { %984 = vmatprep.subr.bf16.mxu0 %v983_v16  ;;  %v228_v56 = vld [vmem:[#allocation5 + $0x530] sm:$0xff]  ;;  %v105_v58 = vld [vmem:[#allocation5 + $0x158] sm:$0xff]  ;;  %v231_v59 = vld [vmem:[#allocation5 + $0x548] sm:$0xff]  ;;  %v869_v63 = vpack.c.bf16 %v100_v53, %v98_v52 }
  0x53   :  { %v233_v60 = vld [vmem:[#allocation5 + $0x558] sm:$0xff]  ;;  %v997_v0 = vpack.c.bf16 %v228_v56, %v226_v54  ;;  %v871_v1 = vpack.c.bf16 %v105_v58, %v103_v57  ;;  %v102_v2 = vld [vmem:[#allocation5 + $0x140] sm:$0xff]  ;;  %v104_v3 = vld [vmem:[#allocation5 + $0x150] sm:$0xff] }
  0x54   :  { %858 = vmatpush1.bf16.msra.mxu1 %v857_v22  ;;  %v230_v4 = vld [vmem:[#allocation5 + $0x540] sm:$0xff]  ;;  %v999_v5 = vpack.c.bf16 %v233_v60, %v231_v59  ;;  %v232_v6 = vld [vmem:[#allocation5 + $0x550] sm:$0xff]  ;;  %v107_v7 = vld [vmem:[#allocation5 + $0x168] sm:$0xff]  ;;  %v873_v12 = vpack.c.bf16 %v104_v3, %v102_v2 }
  0x55   :  { %986 = vmatpush1.bf16.msra.mxu0 %v985_v23  ;;  %860 = vmatprep.subr.bf16.mxu1 %v859_v24  ;;  %v109_v8 = vld [vmem:[#allocation5 + $0x178] sm:$0xff]  ;;  %v235_v9 = vld [vmem:[#allocation5 + $0x568] sm:$0xff]  ;;  %v106_v13 = vld [vmem:[#allocation5 + $0x160] sm:$0xff]  ;;  %v1001_v14 = vpack.c.bf16 %v232_v6, %v230_v4 }
  0x56   :  { %988 = vmatprep.subr.bf16.mxu0 %v987_v28  ;;  %v237_v10 = vld [vmem:[#allocation5 + $0x578] sm:$0xff]  ;;  %v875_v15 = vpack.c.bf16 %v109_v8, %v107_v7  ;;  %v108_v16 = vld [vmem:[#allocation5 + $0x170] sm:$0xff]  ;;  %v234_v17 = vld [vmem:[#allocation5 + $0x560] sm:$0xff] }
  0x57   :  { %v236_v18 = vld [vmem:[#allocation5 + $0x570] sm:$0xff]  ;;  %v1003_v19 = vpack.c.bf16 %v237_v10, %v235_v9  ;;  %v111_v20 = vld [vmem:[#allocation5 + $0x188] sm:$0xff]  ;;  %v113_v21 = vld [vmem:[#allocation5 + $0x198] sm:$0xff]  ;;  %v877_v27 = vpack.c.bf16 %v108_v16, %v106_v13 }
  0x58   :  { %862 = vmatpush1.bf16.msra.mxu1 %v861_v34  ;;  %v1312_v22 = vld [vmem:[#allocation2] sm:$0xff]  ;;  %v239_v23 = vld [vmem:[#allocation5 + $0x588] sm:$0xff]  ;;  %v241_v24 = vld [vmem:[#allocation5 + $0x598] sm:$0xff]  ;;  %v1005_v29 = vpack.c.bf16 %v236_v18, %v234_v17  ;;  %v879_v30 = vpack.c.bf16 %v113_v21, %v111_v20 }
  0x59   :  { %990 = vmatpush1.bf16.msra.mxu0 %v989_v35  ;;  %864 = vmatprep.subr.bf16.mxu1 %v863_v36  ;;  %v1316_v25 = vrot.slane %v1312_v22, %v1310_v11  ;;  %v1318_v26 = vld [vmem:[#allocation2 + $0x8] sm:$0xff]  ;;  %v110_v31 = vld [vmem:[#allocation5 + $0x180] sm:$0xff]  ;;  %v112_v32 = vld [vmem:[#allocation5 + $0x190] sm:$0xff]  ;;  %v1007_v35 = vpack.c.bf16 %v241_v24, %v239_v23 }
  0x5a   :  { %992 = vmatprep.subr.bf16.mxu0 %v991_v40  ;;  %v1322_v28 = vrot.slane %v1318_v26, %v1310_v11  ;;  %v238_v33 = vld [vmem:[#allocation5 + $0x580] sm:$0xff]  ;;  %v240_v36 = vld [vmem:[#allocation5 + $0x590] sm:$0xff]  ;;  %v115_v37 = vld [vmem:[#allocation5 + $0x1a8] sm:$0xff]  ;;  %v881_v42 = vpack.c.bf16 %v112_v32, %v110_v31 }
  0x5b   :  { %v347_v34 = vcombine.high %v1316_v25, %v1316_v25  ;;  %v117_v38 = vld [vmem:[#allocation5 + $0x1b8] sm:$0xff]  ;;  %v243_v40 = vld [vmem:[#allocation5 + $0x5a8] sm:$0xff]  ;;  %v1009_v43 = vpack.c.bf16 %v240_v36, %v238_v33  ;;  %v114_v45 = vld [vmem:[#allocation5 + $0x1a0] sm:$0xff] }
  0x5c   :  { %866 = vmatpush1.bf16.msra.mxu1 %v865_v49  ;;  %v364_v39 = vcombine.high %v1322_v28, %v1322_v28  ;;  %v245_v41 = vld [vmem:[#allocation5 + $0x5b8] sm:$0xff]  ;;  %v883_v44 = vpack.c.bf16 %v117_v38, %v115_v37  ;;  %v116_v46 = vld [vmem:[#allocation5 + $0x1b0] sm:$0xff]  ;;  %v242_v47 = vld [vmem:[#allocation5 + $0x5a0] sm:$0xff] }
  0x5d   :  { %994 = vmatpush1.bf16.msra.mxu0 %v993_v50  ;;  %868 = vmatprep.subr.bf16.mxu1 %v867_v51  ;;  %v1011_v48 = vpack.c.bf16 %v245_v41, %v243_v40  ;;  %v244_v49 = vld [vmem:[#allocation5 + $0x5b0] sm:$0xff]  ;;  %v119_v50 = vld [vmem:[#allocation5 + $0x1c8] sm:$0xff]  ;;  %v121_v51 = vld [vmem:[#allocation5 + $0x1d8] sm:$0xff]  ;;  %v885_v54 = vpack.c.bf16 %v116_v46, %v114_v45 }
  0x5e   :  { %996 = vmatprep.subr.bf16.mxu0 %v995_v55  ;;  %438 = vmatprep.mubr.f32.mxu1 %v347_v34  ;;  %v247_v52 = vld [vmem:[#allocation5 + $0x5c8] sm:$0xff]  ;;  %v249_v53 = vld [vmem:[#allocation5 + $0x5d8] sm:$0xff]  ;;  %v1013_v55 = vpack.c.bf16 %v244_v49, %v242_v47  ;;  %v887_v56 = vpack.c.bf16 %v121_v51, %v119_v50  ;;  %v118_v57 = vld [vmem:[#allocation5 + $0x1c0] sm:$0xff] }
  0x5f   :  { %580 = vmatprep.mubr.f32.mxu0 %v364_v39  ;;  %v120_v58 = vld [vmem:[#allocation5 + $0x1d0] sm:$0xff]  ;;  %v246_v59 = vld [vmem:[#allocation5 + $0x5c0] sm:$0xff]  ;;  %v1015_v60 = vpack.c.bf16 %v249_v53, %v247_v52  ;;  %v253_v2 = vld [vmem:[#allocation5 + $0x5f8] sm:$0xff] }
  0x60   :  { %870 = vmatpush1.bf16.msra.mxu1 %v869_v63  ;;  %v248_v62 = vld [vmem:[#allocation5 + $0x5d0] sm:$0xff]  ;;  %v123_v63 = vld [vmem:[#allocation5 + $0x1e8] sm:$0xff]  ;;  %v889_v3 = vpack.c.bf16 %v120_v58, %v118_v57  ;;  %v122_v6 = vld [vmem:[#allocation5 + $0x1e0] sm:$0xff] }
  0x61   :  { %998 = vmatpush1.bf16.msra.mxu0 %v997_v0  ;;  %872 = vmatprep.subr.bf16.mxu1 %v871_v1  ;;  %v125_v0 = vld [vmem:[#allocation5 + $0x1f8] sm:$0xff]  ;;  %v251_v1 = vld [vmem:[#allocation5 + $0x5e8] sm:$0xff]  ;;  %v1017_v4 = vpack.c.bf16 %v248_v62, %v246_v59  ;;  %v124_v7 = vld [vmem:[#allocation5 + $0x1f0] sm:$0xff] }
  0x62   :  { %1000 = vmatprep.subr.bf16.mxu0 %v999_v5  ;;  %v891_v5 = vpack.c.bf16 %v125_v0, %v123_v63  ;;  %v250_v8 = vld [vmem:[#allocation5 + $0x5e0] sm:$0xff]  ;;  %v1019_v9 = vpack.c.bf16 %v253_v2, %v251_v1  ;;  %v252_v10 = vld [vmem:[#allocation5 + $0x5f0] sm:$0xff]  ;;  %v127_v13 = vld [vmem:[#allocation5 + $0x208] sm:$0xff]  ;;  %v893_v18 = vpack.c.bf16 %v124_v7, %v122_v6 }
  0x63   :  { %v255_v16 = vld [vmem:[#allocation5 + $0x608] sm:$0xff]  ;;  %v257_v17 = vld [vmem:[#allocation5 + $0x618] sm:$0xff]  ;;  %v126_v21 = vld [vmem:[#allocation5 + $0x200] sm:$0xff] }
  0x64   :  { %874 = vmatpush1.bf16.msra.mxu1 %v873_v12  ;;  %v332_v12 = vcombine.high %v1312_v22, %v1312_v22  ;;  %v128_v23 = vld [vmem:[#allocation5 + $0x210] sm:$0xff]  ;;  %v254_v24 = vld [vmem:[#allocation5 + $0x600] sm:$0xff]  ;;  %v131_v22 = vld [vmem:[#allocation5 + $0x228] sm:$0xff] }
  0x65   :  { %1002 = vmatpush1.bf16.msra.mxu0 %v1001_v14  ;;  %876 = vmatprep.subr.bf16.mxu1 %v875_v15  ;;  %v129_v14 = vld [vmem:[#allocation5 + $0x218] sm:$0xff]  ;;  %v349_v15 = vcombine.high %v1318_v26, %v1318_v26  ;;  %v259_v26 = vld [vmem:[#allocation5 + $0x628] sm:$0xff]  ;;  %v897_v34 = vpack.c.bf16 %v128_v23, %v126_v21  ;;  %v130_v37 = vld [vmem:[#allocation5 + $0x220] sm:$0xff] }
  0x66   :  { %1004 = vmatprep.subr.bf16.mxu0 %v1003_v19  ;;  %v1021_v19 = vpack.c.bf16 %v252_v10, %v250_v8  ;;  %v895_v20 = vpack.c.bf16 %v129_v14, %v127_v13  ;;  %v1333_v31 = vrot.slane %v332_v12, %v1310_v11  ;;  %v261_v32 = vld [vmem:[#allocation5 + $0x638] sm:$0xff]  ;;  %v132_v38 = vld [vmem:[#allocation5 + $0x230] sm:$0xff]  ;;  %v258_v39 = vld [vmem:[#allocation5 + $0x620] sm:$0xff] }
  0x67   :  { %v1336_v33 = vrot.slane %v349_v15, %v1310_v11  ;;  %v1027_v40 = vpack.c.bf16 %v261_v32, %v259_v26  ;;  %v260_v41 = vld [vmem:[#allocation5 + $0x630] sm:$0xff]  ;;  %v263_v11 = vld [vmem:[#allocation5 + $0x648] sm:$0xff]  ;;  %v265_v45 = vld [vmem:[#allocation5 + $0x658] sm:$0xff]  ;;  %v901_v47 = vpack.c.bf16 %v132_v38, %v130_v37 }
  0x68   :  { %878 = vmatpush1.bf16.msra.mxu1 %v877_v27  ;;  %v1023_v27 = vpack.c.bf16 %v257_v17, %v255_v16  ;;  %v134_v50 = vld [vmem:[#allocation5 + $0x240] sm:$0xff]  ;;  %v136_v51 = vld [vmem:[#allocation5 + $0x250] sm:$0xff]  ;;  %v1031_v53 = vpack.c.bf16 %v265_v45, %v263_v11  ;;  %v269_v57 = vld [vmem:[#allocation5 + $0x678] sm:$0xff] }
  0x69   :  { %1006 = vmatpush1.bf16.msra.mxu0 %v1005_v29  ;;  %880 = vmatprep.subr.bf16.mxu1 %v879_v30  ;;  %v256_v29 = vld [vmem:[#allocation5 + $0x610] sm:$0xff]  ;;  %v133_v30 = vld [vmem:[#allocation5 + $0x238] sm:$0xff]  ;;  %v365_v46 = vcombine.high %v1336_v33, %v1336_v33  ;;  %v262_v52 = vld [vmem:[#allocation5 + $0x640] sm:$0xff]  ;;  %v905_v58 = vpack.c.bf16 %v136_v51, %v134_v50 }
  0x6a   :  { %1008 = vmatprep.subr.bf16.mxu0 %v1007_v35  ;;  %v1025_v35 = vpack.c.bf16 %v256_v29, %v254_v24  ;;  %v899_v36 = vpack.c.bf16 %v133_v30, %v131_v22  ;;  %v140_v62 = vld [vmem:[#allocation5 + $0x270] sm:$0xff]  ;;  %v266_v63 = vld [vmem:[#allocation5 + $0x660] sm:$0xff]  ;;  %v143_v2 = vld [vmem:[#allocation5 + $0x288] sm:$0xff] }
  0x6b   :  { %v268_v1 = vld [vmem:[#allocation5 + $0x670] sm:$0xff]  ;;  %v270_v12 = vld [vmem:[#allocation5 + $0x680] sm:$0xff]  ;;  %v147_v15 = vld [vmem:[#allocation5 + $0x2a8] sm:$0xff] }
  0x6c   :  { %882 = vmatpush1.bf16.msra.mxu1 %v881_v42  ;;  %v135_v42 = vld [vmem:[#allocation5 + $0x248] sm:$0xff]  ;;  %v1037_v7 = vpack.c.bf16 %v268_v1, %v266_v63  ;;  %v144_v10 = vld [vmem:[#allocation5 + $0x290] sm:$0xff]  ;;  %v149_v16 = vld [vmem:[#allocation5 + $0x2b8] sm:$0xff] }
  0x6d   :  { %1010 = vmatpush1.bf16.msra.mxu0 %v1009_v43  ;;  %884 = vmatprep.subr.bf16.mxu1 %v883_v44  ;;  %v137_v43 = vld [vmem:[#allocation5 + $0x258] sm:$0xff]  ;;  %v348_v44 = vcombine.high %v1333_v31, %v1333_v31  ;;  %v272_v14 = vld [vmem:[#allocation5 + $0x690] sm:$0xff]  ;;  %v275_v17 = vld [vmem:[#allocation5 + $0x6a8] sm:$0xff]  ;;  %v915_v21 = vpack.c.bf16 %v149_v16, %v147_v15 }
  0x6e   :  { %1012 = vmatprep.subr.bf16.mxu0 %v1011_v48  ;;  %v1029_v48 = vpack.c.bf16 %v260_v41, %v258_v39  ;;  %v903_v49 = vpack.c.bf16 %v137_v43, %v135_v42  ;;  %v146_v23 = vld [vmem:[#allocation5 + $0x2a0] sm:$0xff]  ;;  %v148_v24 = vld [vmem:[#allocation5 + $0x2b0] sm:$0xff]  ;;  %v151_v30 = vld [vmem:[#allocation5 + $0x2c8] sm:$0xff] }
  0x6f   :  { %v276_v22 = vld [vmem:[#allocation5 + $0x6b0] sm:$0xff]  ;;  %v153_v26 = vld [vmem:[#allocation5 + $0x2d8] sm:$0xff]  ;;  %v279_v32 = vld [vmem:[#allocation5 + $0x6c8] sm:$0xff] }
  0x70   :  { %886 = vmatpush1.bf16.msra.mxu1 %v885_v54  ;;  %v264_v54 = vld [vmem:[#allocation5 + $0x650] sm:$0xff]  ;;  %v919_v37 = vpack.c.bf16 %v153_v26, %v151_v30  ;;  %v150_v38 = vld [vmem:[#allocation5 + $0x2c0] sm:$0xff]  ;;  %v155_v43 = vld [vmem:[#allocation5 + $0x2e8] sm:$0xff] }
  0x71   :  { %1014 = vmatpush1.bf16.msra.mxu0 %v1013_v55  ;;  %888 = vmatprep.subr.bf16.mxu1 %v887_v56  ;;  %v141_v55 = vld [vmem:[#allocation5 + $0x278] sm:$0xff]  ;;  %v267_v56 = vld [vmem:[#allocation5 + $0x668] sm:$0xff]  ;;  %v152_v39 = vld [vmem:[#allocation5 + $0x2d0] sm:$0xff] }
  0x72   :  { %1016 = vmatprep.subr.bf16.mxu0 %v1015_v60  ;;  %v138_v60 = vld [vmem:[#allocation5 + $0x260] sm:$0xff]  ;;  %v1035_v0 = vpack.c.bf16 %v269_v57, %v267_v56  ;;  %v280_v42 = vld [vmem:[#allocation5 + $0x6d0] sm:$0xff]  ;;  %v283_v11 = vld [vmem:[#allocation5 + $0x6e8] sm:$0xff] }
  0x73   :  { %v909_v6 = vpack.c.bf16 %v140_v62, %v138_v60  ;;  %v285_v45 = vld [vmem:[#allocation5 + $0x6f8] sm:$0xff]  ;;  %v156_v50 = vld [vmem:[#allocation5 + $0x2f0] sm:$0xff]  ;;  %v282_v51 = vld [vmem:[#allocation5 + $0x6e0] sm:$0xff] }
  0x74   :  { %890 = vmatpush1.bf16.msra.mxu1 %v889_v3  ;;  %v145_v3 = vld [vmem:[#allocation5 + $0x298] sm:$0xff]  ;;  %v160_v60 = vld [vmem:[#allocation5 + $0x310] sm:$0xff]  ;;  %v286_v62 = vld [vmem:[#allocation5 + $0x700] sm:$0xff] }
  0x75   :  { %1018 = vmatpush1.bf16.msra.mxu0 %v1017_v4  ;;  %892 = vmatprep.subr.bf16.mxu1 %v891_v5  ;;  %v271_v4 = vld [vmem:[#allocation5 + $0x688] sm:$0xff]  ;;  %v273_v5 = vld [vmem:[#allocation5 + $0x698] sm:$0xff]  ;;  %v911_v8 = vpack.c.bf16 %v145_v3, %v143_v2 }
  0x76   :  { %1020 = vmatprep.subr.bf16.mxu0 %v1019_v9  ;;  %v142_v9 = vld [vmem:[#allocation5 + $0x280] sm:$0xff]  ;;  %v1039_v13 = vpack.c.bf16 %v273_v5, %v271_v4  ;;  %v289_v56 = vld [vmem:[#allocation5 + $0x718] sm:$0xff]  ;;  %v163_v1 = vld [vmem:[#allocation5 + $0x328] sm:$0xff] }
  0x77   :  { %v165_v2 = vld [vmem:[#allocation5 + $0x338] sm:$0xff]  ;;  %v291_v3 = vld [vmem:[#allocation5 + $0x728] sm:$0xff] }
  0x78   :  { %894 = vmatpush1.bf16.msra.mxu1 %v893_v18  ;;  %v277_v18 = vld [vmem:[#allocation5 + $0x6b8] sm:$0xff]  ;;  %v295_v16 = vld [vmem:[#allocation5 + $0x748] sm:$0xff] }
  0x79   :  { %1022 = vmatpush1.bf16.msra.mxu0 %v1021_v19  ;;  %896 = vmatprep.subr.bf16.mxu1 %v895_v20  ;;  %v913_v19 = vpack.c.bf16 %v144_v10, %v142_v9  ;;  %v1041_v20 = vpack.c.bf16 %v272_v14, %v270_v12  ;;  %v1043_v29 = vpack.c.bf16 %v277_v18, %v275_v17  ;;  %v293_v4 = vld [vmem:[#allocation5 + $0x738] sm:$0xff]  ;;  %v164_v9 = vld [vmem:[#allocation5 + $0x330] sm:$0xff]  ;;  %v290_v10 = vld [vmem:[#allocation5 + $0x720] sm:$0xff] }
  0x7a   :  { %1024 = vmatprep.subr.bf16.mxu0 %v1023_v27  ;;  %v274_v27 = vld [vmem:[#allocation5 + $0x6a0] sm:$0xff]  ;;  %v1059_v12 = vpack.c.bf16 %v293_v4, %v291_v3  ;;  %v167_v14 = vld [vmem:[#allocation5 + $0x348] sm:$0xff]  ;;  %v169_v15 = vld [vmem:[#allocation5 + $0x358] sm:$0xff] }
  0x7b   :  { %439 = vmatmul.mubr.f32.vlgmr.msra.gmra.mrb[0].mxu1 %v1316_v25  ;;  %v139_v25 = vld [vmem:[#allocation5 + $0x268] sm:$0xff]  ;;  %v297_v17 = vld [vmem:[#allocation5 + $0x758] sm:$0xff] }
  0x7c   :  { %898 = vmatpush1.bf16.msra.mxu1 %v897_v34  ;;  %581 = vmatmul.mubr.f32.vlgmr.msra.gmra.mrb[0].mxu0 %v1322_v28  ;;  %v1033_v28 = vpack.c.bf16 %v264_v54, %v262_v52  ;;  %v907_v59 = vpack.c.bf16 %v141_v55, %v139_v25  ;;  %v281_v34 = vld [vmem:[#allocation5 + $0x6d8] sm:$0xff]  ;;  %v1051_v52 = vpack.c.bf16 %v285_v45, %v283_v11  ;;  %v159_v54 = vld [vmem:[#allocation5 + $0x308] sm:$0xff] }
  0x7d   :  { %1026 = vmatpush1.bf16.msra.mxu0 %v1025_v35  ;;  %900 = vmatprep.subr.bf16.mxu1 %v899_v36  ;;  %v917_v35 = vpack.c.bf16 %v148_v24, %v146_v23  ;;  %v1045_v36 = vpack.c.bf16 %v276_v22, %v274_v27  ;;  %v1047_v41 = vpack.c.bf16 %v281_v34, %v279_v32  ;;  %v161_v25 = vld [vmem:[#allocation5 + $0x318] sm:$0xff]  ;;  %v287_v55 = vld [vmem:[#allocation5 + $0x708] sm:$0xff]  ;;  %v168_v23 = vld [vmem:[#allocation5 + $0x350] sm:$0xff] }
  0x7e   :  { %1028 = vmatprep.subr.bf16.mxu0 %v1027_v40  ;;  %509 = vmatprep.mubr.f32.mxu1 %v348_v44  ;;  %v278_v40 = vld [vmem:[#allocation5 + $0x6c0] sm:$0xff]  ;;  %v157_v44 = vld [vmem:[#allocation5 + $0x2f8] sm:$0xff]  ;;  %v1055_v63 = vpack.c.bf16 %v289_v56, %v287_v55  ;;  %v1063_v27 = vpack.c.bf16 %v297_v17, %v295_v16  ;;  %v171_v22 = vld [vmem:[#allocation5 + $0x368] sm:$0xff] }
  0x7f   :  { %651 = vmatprep.mubr.f32.mxu0 %v365_v46  ;;  %v921_v46 = vpack.c.bf16 %v152_v39, %v150_v38  ;;  %v294_v24 = vld [vmem:[#allocation5 + $0x740] sm:$0xff]  ;;  %v173_v30 = vld [vmem:[#allocation5 + $0x378] sm:$0xff]  ;;  %v299_v26 = vld [vmem:[#allocation5 + $0x768] sm:$0xff] }
  0x80   :  { %902 = vmatpush1.bf16.msra.mxu1 %v901_v47  ;;  %v1049_v47 = vpack.c.bf16 %v280_v42, %v278_v40  ;;  %v301_v32 = vld [vmem:[#allocation5 + $0x778] sm:$0xff]  ;;  %v172_v38 = vld [vmem:[#allocation5 + $0x370] sm:$0xff]  ;;  %v298_v39 = vld [vmem:[#allocation5 + $0x760] sm:$0xff] }
  0x81   :  { %1030 = vmatpush1.bf16.msra.mxu0 %v1029_v48  ;;  %904 = vmatprep.subr.bf16.mxu1 %v903_v49  ;;  %v923_v48 = vpack.c.bf16 %v157_v44, %v155_v43  ;;  %v154_v49 = vld [vmem:[#allocation5 + $0x2e0] sm:$0xff]  ;;  %v1067_v40 = vpack.c.bf16 %v301_v32, %v299_v26  ;;  %v175_v42 = vld [vmem:[#allocation5 + $0x388] sm:$0xff]  ;;  %v177_v43 = vld [vmem:[#allocation5 + $0x398] sm:$0xff] }
  0x82   :  { %1032 = vmatprep.subr.bf16.mxu0 %v1031_v53  ;;  %v284_v53 = vld [vmem:[#allocation5 + $0x6f0] sm:$0xff]  ;;  %v925_v57 = vpack.c.bf16 %v156_v50, %v154_v49  ;;  %v303_v44 = vld [vmem:[#allocation5 + $0x788] sm:$0xff]  ;;  %v305_v11 = vld [vmem:[#allocation5 + $0x798] sm:$0xff] }
  0x83   :  { %v176_v49 = vld [vmem:[#allocation5 + $0x390] sm:$0xff]  ;;  %v302_v50 = vld [vmem:[#allocation5 + $0x780] sm:$0xff]  ;;  %v309_v55 = vld [vmem:[#allocation5 + $0x7b8] sm:$0xff] }
  0x84   :  { %906 = vmatpush1.bf16.msra.mxu1 %v905_v58  ;;  %v1053_v58 = vpack.c.bf16 %v284_v53, %v282_v51  ;;  %v1071_v51 = vpack.c.bf16 %v305_v11, %v303_v44  ;;  %v179_v53 = vld [vmem:[#allocation5 + $0x3a8] sm:$0xff]  ;;  %v313_v3 = vld [vmem:[#allocation5 + $0x7d8] sm:$0xff]  ;;  %v678_v11 = vld [vmem:[#allocation7 + $0x50] sm:$0xff] }
  0x85   :  { %1034 = vmatpush1.bf16.msra.mxu0 %v1033_v28  ;;  %908 = vmatprep.subr.bf16.mxu1 %v907_v59  ;;  %v927_v28 = vpack.c.bf16 %v161_v25, %v159_v54  ;;  %v158_v59 = vld [vmem:[#allocation5 + $0x300] sm:$0xff]  ;;  %v181_v54 = vld [vmem:[#allocation5 + $0x3b8] sm:$0xff]  ;;  %v307_v25 = vld [vmem:[#allocation5 + $0x7a8] sm:$0xff] }
  0x86   :  { %1036 = vmatprep.subr.bf16.mxu0 %v1035_v0  ;;  %v288_v0 = vld [vmem:[#allocation5 + $0x710] sm:$0xff]  ;;  %v929_v5 = vpack.c.bf16 %v160_v60, %v158_v59  ;;  %v306_v60 = vld [vmem:[#allocation5 + $0x7a0] sm:$0xff]  ;;  %v317_v16 = vld [vmem:[#allocation5 + $0x7f8] sm:$0xff] }
  0x87   :  { %v180_v59 = vld [vmem:[#allocation5 + $0x3b0] sm:$0xff]  ;;  %v669_v26 = vld [vmem:[#allocation7 + $0x8] sm:$0xff] }
  0x88   :  { %910 = vmatpush1.bf16.msra.mxu1 %v909_v6  ;;  %v1057_v6 = vpack.c.bf16 %v288_v0, %v286_v62  ;;  %v1075_v62 = vpack.c.bf16 %v309_v55, %v307_v25  ;;  %v183_v0 = vld [vmem:[#allocation5 + $0x3c8] sm:$0xff]  ;;  %v318_v25 = vld [vmem:[%s1368_s2] sm:$0x3]  ;;  %v326_v55 = vsub.s32 1, %v1307_v61 }
  0x89   :  { %1038 = vmatpush1.bf16.msra.mxu0 %v1037_v7  ;;  %912 = vmatprep.subr.bf16.mxu1 %v911_v8  ;;  %v931_v7 = vpack.c.bf16 %v165_v2, %v163_v1  ;;  %v162_v8 = vld [vmem:[#allocation5 + $0x320] sm:$0xff]  ;;  %v185_v1 = vld [vmem:[#allocation5 + $0x3d8] sm:$0xff]  ;;  %v311_v2 = vld [vmem:[#allocation5 + $0x7c8] sm:$0xff] }
  0x8a   :  { %1040 = vmatprep.subr.bf16.mxu0 %v1039_v13  ;;  %v292_v13 = vld [vmem:[#allocation5 + $0x730] sm:$0xff]  ;;  %v933_v18 = vpack.c.bf16 %v164_v9, %v162_v8  ;;  %v310_v9 = vld [vmem:[#allocation5 + $0x7c0] sm:$0xff] }
  0x8b   :  { %v184_v8 = vld [vmem:[#allocation5 + $0x3d0] sm:$0xff] }
  0x8c   :  { %914 = vmatpush1.bf16.msra.mxu1 %v913_v19  ;;  %v1061_v19 = vpack.c.bf16 %v292_v13, %v290_v10  ;;  %v1079_v10 = vpack.c.bf16 %v313_v3, %v311_v2  ;;  %v187_v13 = vld [vmem:[#allocation5 + $0x3e8] sm:$0xff] }
  0x8d   :  { %1042 = vmatpush1.bf16.msra.mxu0 %v1041_v20  ;;  %916 = vmatprep.subr.bf16.mxu1 %v915_v21  ;;  %v935_v20 = vpack.c.bf16 %v169_v15, %v167_v14  ;;  %v166_v21 = vld [vmem:[#allocation5 + $0x340] sm:$0xff]  ;;  %v189_v14 = vld [vmem:[#allocation5 + $0x3f8] sm:$0xff]  ;;  %v315_v15 = vld [vmem:[#allocation5 + $0x7e8] sm:$0xff] }
  0x8e   :  { %1044 = vmatprep.subr.bf16.mxu0 %v1043_v29  ;;  %v296_v29 = vld [vmem:[#allocation5 + $0x750] sm:$0xff]  ;;  %v937_v34 = vpack.c.bf16 %v168_v23, %v166_v21  ;;  %v1083_v23 = vpack.c.bf16 %v317_v16, %v315_v15 }
  0x8f   :  { %v188_v21 = vld [vmem:[#allocation5 + $0x3f0] sm:$0xff] }
  0x90   :  { %918 = vmatpush1.bf16.msra.mxu1 %v917_v35  ;;  %v1065_v35 = vpack.c.bf16 %v296_v29, %v294_v24  ;;  %v314_v24 = vld [vmem:[#allocation5 + $0x7e0] sm:$0xff] }
  0x91   :  { %1046 = vmatpush1.bf16.msra.mxu0 %v1045_v36  ;;  %920 = vmatprep.subr.bf16.mxu1 %v919_v37  ;;  %v939_v36 = vpack.c.bf16 %v173_v30, %v171_v22  ;;  %v170_v37 = vld [vmem:[#allocation5 + $0x360] sm:$0xff] }
  0x92   :  { %1048 = vmatprep.subr.bf16.mxu0 %v1047_v41  ;;  %v300_v41 = vld [vmem:[#allocation5 + $0x770] sm:$0xff]  ;;  %v941_v45 = vpack.c.bf16 %v172_v38, %v170_v37  ;;  %v668_v30 = vld [vmem:[#allocation7] sm:$0xff] }
  0x93   :  { %v1088_v32 = vpack.c.bf16 %v669_v26, %v668_v30  ;;  %v672_v38 = vld [vmem:[#allocation7 + $0x20] sm:$0xff] }
  0x94   :  { %922 = vmatpush1.bf16.msra.mxu1 %v921_v46  ;;  %v1069_v46 = vpack.c.bf16 %v300_v41, %v298_v39  ;;  %v673_v39 = vld [vmem:[#allocation7 + $0x28] sm:$0xff]  ;;  %v675_v41 = vld [vmem:[#allocation7 + $0x38] sm:$0xff] }
  0x95   :  { %1050 = vmatpush1.bf16.msra.mxu0 %v1049_v47  ;;  %924 = vmatprep.subr.bf16.mxu1 %v923_v48  ;;  %v943_v47 = vpack.c.bf16 %v177_v43, %v175_v42  ;;  %v174_v48 = vld [vmem:[#allocation5 + $0x380] sm:$0xff]  ;;  %v677_v43 = vld [vmem:[#allocation7 + $0x48] sm:$0xff] }
  0x96   :  { %1052 = vmatprep.subr.bf16.mxu0 %v1051_v52  ;;  %v304_v52 = vld [vmem:[#allocation5 + $0x790] sm:$0xff]  ;;  %v945_v56 = vpack.c.bf16 %v176_v49, %v174_v48  ;;  %v676_v42 = vld [vmem:[#allocation7 + $0x40] sm:$0xff]  ;;  %v681_v48 = vld [vmem:[#allocation7 + $0x68] sm:$0xff] }
  0x97   :  { %v1100_v44 = vpack.c.bf16 %v677_v43, %v676_v42 }
  0x98   :  { %926 = vmatpush1.bf16.msra.mxu1 %v925_v57  ;;  %v1073_v57 = vpack.c.bf16 %v304_v52, %v302_v50  ;;  %v682_v50 = vld [vmem:[#allocation7 + $0x70] sm:$0xff] }
  0x99   :  { %1054 = vmatpush1.bf16.msra.mxu0 %v1053_v58  ;;  %928 = vmatprep.subr.bf16.mxu1 %v927_v28  ;;  %v947_v58 = vpack.c.bf16 %v181_v54, %v179_v53  ;;  %v178_v28 = vld [vmem:[#allocation5 + $0x3a0] sm:$0xff]  ;;  %v1239_v53 = vmov 0.0   ;;  %v322_v54 = vsub.s32 0, %v1307_v61 }
  0x9a   :  { %1056 = vmatprep.subr.bf16.mxu0 %v1055_v63  ;;  %v308_v63 = vld [vmem:[#allocation5 + $0x7b0] sm:$0xff]  ;;  %v949_v4 = vpack.c.bf16 %v180_v59, %v178_v28 }
  0x9c   :  { %930 = vmatpush1.bf16.msra.mxu1 %v929_v5  ;;  %v1077_v5 = vpack.c.bf16 %v308_v63, %v306_v60 }
  0x9d   :  { %1058 = vmatpush1.bf16.msra.mxu0 %v1057_v6  ;;  %932 = vmatprep.subr.bf16.mxu1 %v931_v7  ;;  %v951_v6 = vpack.c.bf16 %v185_v1, %v183_v0  ;;  %v182_v7 = vld [vmem:[#allocation5 + $0x3c0] sm:$0xff] }
  0x9e   :  { %1060 = vmatprep.subr.bf16.mxu0 %v1059_v12  ;;  %v312_v12 = vld [vmem:[#allocation5 + $0x7d0] sm:$0xff]  ;;  %v953_v17 = vpack.c.bf16 %v184_v8, %v182_v7 }
  0xa0   :  { %934 = vmatpush1.bf16.msra.mxu1 %v933_v18  ;;  %v1081_v18 = vpack.c.bf16 %v312_v12, %v310_v9  ;;  %v778_v12 = vld [vmem:[%s1370_s4] ss:$0 sm:$0xff] }
  0xa1   :  { %1062 = vmatpush1.bf16.msra.mxu0 %v1061_v19  ;;  %936 = vmatprep.subr.bf16.mxu1 %v935_v20  ;;  %v955_v19 = vpack.c.bf16 %v189_v14, %v187_v13  ;;  %v186_v20 = vld [vmem:[#allocation5 + $0x3e0] sm:$0xff] }
  0xa2   :  { %1064 = vmatprep.subr.bf16.mxu0 %v1063_v27  ;;  %v316_v27 = vld [vmem:[#allocation5 + $0x7f0] sm:$0xff]  ;;  %v957_v29 = vpack.c.bf16 %v188_v21, %v186_v20 }
  0xa3   :  { %v1085_v22 = vpack.c.bf16 %v316_v27, %v314_v24 }
  0xa4   :  { %938 = vmatpush1.bf16.msra.mxu1 %v937_v34  ;;  %v1237_v34 = vmov 0.0|0.0  }
  0xa5   :  { %1066 = vmatpush1.bf16.msra.mxu0 %v1065_v35  ;;  %940 = vmatprep.subr.bf16.mxu1 %v939_v36  ;;  %v670_v35 = vld [vmem:[#allocation7 + $0x10] sm:$0xff]  ;;  %v671_v36 = vld [vmem:[#allocation7 + $0x18] sm:$0xff] }
  0xa6   :  { %1068 = vmatprep.subr.bf16.mxu0 %v1067_v40  ;;  %v1091_v37 = vpack.c.bf16 %v671_v36, %v670_v35  ;;  %v1094_v40 = vpack.c.bf16 %v673_v39, %v672_v38 }
  0xa8   :  { %942 = vmatpush1.bf16.msra.mxu1 %v941_v45  ;;  %v679_v45 = vld [vmem:[#allocation7 + $0x58] sm:$0xff] }
  0xa9   :  { %1070 = vmatpush1.bf16.msra.mxu0 %v1069_v46  ;;  %944 = vmatprep.subr.bf16.mxu1 %v943_v47  ;;  %v1103_v46 = vpack.c.bf16 %v679_v45, %v678_v11  ;;  %v680_v47 = vld [vmem:[#allocation7 + $0x60] sm:$0xff] }
  0xaa   :  { %1072 = vmatprep.subr.bf16.mxu0 %v1071_v51  ;;  %v1106_v49 = vpack.c.bf16 %v681_v48, %v680_v47  ;;  %v683_v51 = vld [vmem:[#allocation7 + $0x78] sm:$0xff] }
  0xab   :  { %v1109_v52 = vpack.c.bf16 %v683_v51, %v682_v50 }
  0xac   :  { %946 = vmatpush1.bf16.msra.mxu1 %v945_v56  ;;  %v323_v56 = vrot.slane %v318_v25, %v322_v54 }
  0xad   :  { %1074 = vmatpush1.bf16.msra.mxu0 %v1073_v57  ;;  %948 = vmatprep.subr.bf16.mxu1 %v947_v58  ;;  %v327_v57 = vrot.slane %v318_v25, %v326_v55 }
  0xae   :  { %1076 = vmatprep.subr.bf16.mxu0 %v1075_v62 }
  0xb0   :  { %950 = vmatpush1.bf16.msra.mxu1 %v949_v4 }
  0xb1   :  { %1078 = vmatpush1.bf16.msra.mxu0 %v1077_v5  ;;  %952 = vmatprep.subr.bf16.mxu1 %v951_v6 }
  0xb2   :  { %1080 = vmatprep.subr.bf16.mxu0 %v1079_v10 }
  0xb4   :  { %954 = vmatpush1.bf16.msra.mxu1 %v953_v17 }
  0xb5   :  { %1082 = vmatpush1.bf16.msra.mxu0 %v1081_v18  ;;  %956 = vmatprep.subr.bf16.mxu1 %v955_v19 }
  0xb6   :  { %1084 = vmatprep.subr.bf16.mxu0 %v1083_v23 }
  0xb8   :  { %958 = vmatpush1.bf16.msra.mxu1 %v957_v29 }
  0xb9   :  { %1086 = vmatpush1.bf16.msra.mxu0 %v1085_v22  ;;  %1087 = vmatprep.subr.bf16.mxu1 %v1237_v34 }
  0xbb   :  { %510 = vmatmul.mubr.f32.vlgmr.msra.gmra.mrb[0].mxu1 %v1333_v31  ;;  %v674_v31 = vld [vmem:[#allocation7 + $0x30] sm:$0xff] }
  0xbc   :  { %652 = vmatmul.mubr.f32.vlgmr.msra.gmra.mrb[0].mxu0 %v1336_v33  ;;  %1089 = vmatpush3.bf16.msra.mxu1 %v1088_v32  ;;  %v1097_v33 = vpack.c.bf16 %v675_v41, %v674_v31 }
  0xbd   :  { %1090 = vmatprep.subr.bf16.mxu1 %v1237_v34  ;;  %828 = vmatprep.mubr.msk.f32.mxu1 %vm1238_vm0, %v1239_v53 }
  0xc0   :  { %1092 = vmatpush3.bf16.msra.mxu1 %v1091_v37 }
  0xc1   :  { %1093 = vmatprep.subr.bf16.mxu1 %v1237_v34 }
  0xc4   :  { %1095 = vmatpush3.bf16.msra.mxu1 %v1094_v40 }
  0xc5   :  { %1096 = vmatprep.subr.bf16.mxu1 %v1237_v34 }
  0xc8   :  { %1098 = vmatpush3.bf16.msra.mxu1 %v1097_v33 }
  0xc9   :  { %1099 = vmatprep.subr.bf16.mxu1 %v1237_v34 }
  0xcc   :  { %1101 = vmatpush3.bf16.msra.mxu1 %v1100_v44 }
  0xcd   :  { %1102 = vmatprep.subr.bf16.mxu1 %v1237_v34 }
  0xd0   :  { %1104 = vmatpush3.bf16.msra.mxu1 %v1103_v46 }
  0xd1   :  { %1105 = vmatprep.subr.bf16.mxu1 %v1237_v34 }
  0xd4   :  { %1107 = vmatpush3.bf16.msra.mxu1 %v1106_v49 }
  0xd5   :  { %1108 = vmatprep.subr.bf16.mxu1 %v1237_v34 }
  0xd8   :  { %1110 = vmatpush3.bf16.msra.mxu1 %v1109_v52 }
 0x18e   :  { %v511_v58 = vpop.f32.mrb[0].mxu1 }
 0x18f   :  { %v1111_v28 = vadd.f32 %v511_v58, %v323_v56  ;;  %v653_v59 = vpop.f32.mrb[0].mxu0  ;;  %v513_v60 = vpop.f32.mrb[1].mxu1 }
 0x190   :  { %v1113_v62 = vadd.f32 %v513_v60, %v327_v57  ;;  %v655_v63 = vpop.f32.mrb[1].mxu0 }
 0x191   :  { %v1112_v0 = vadd.f32 %v1111_v28, %v653_v59 }
 0x192   :  { %v1114_v1 = vadd.f32 %v1113_v62, %v655_v63 }
 0x194   :  { %v658_v2 = vmul.f32 %v1114_v1, %v1114_v1 }
 0x196   :  { %v659_v3 = vmul.f32 %v1114_v1, %v658_v2 }
 0x198   :  { %v660_v4 = vmul.f32 0.044715, %v659_v3 }
 0x19a   :  { %v661_v5 = vadd.f32 %v1114_v1, %v660_v4 }
 0x19c   :  { %v662_v6 = vmul.f32 0.7978846, %v661_v5 }
 0x19e   :  { %1133 = vtanh.f32 %v662_v6 }
 0x1a8   :  { %v1134_v7 = vpop.eup %1133 }
 0x1a9   :  { %v664_v8 = vadd.f32 1.0, %v1134_v7 }
 0x1ab   :  { %v665_v9 = vmul.f32 0.5, %v664_v8 }
 0x1ad   :  { %v666_v61 = vmul.f32 %v1114_v1, %v665_v9 }
 0x1af   :  { %v667_v10 = vmul.f32 %v1112_v0, %v666_v61 }
 0x1b1   :  { %829 = vmatmul.mubr.f32.vlgmr.msra.gmra.mrb[2].mxu1 %v667_v10 }
 0x284   :  { %v757_v13 = vpop.f32.mrb[2].mxu1 }
 0x285   :  { %v758_v14 = vadd.f32 %v778_v12, %v757_v13  ;;  %v830_v15 = vpop.f32.mrb[3].mxu1 }
 0x287   :  { %761 = vst [vmem:[#allocation8] sm:$0x3] %v758_v14 }
 0x288   :  { %1212 = shalt.err (!%p1209_p0)
}
 0x289   :  { %s1213_s13 = scalar_lea.hbm %s1371_s5, 32 }
 0x28a   :  { %p1214_p1 = scmp.ne.s32.totalorder %s1371_s5, %s1213_s13  ;;  %p1217_p2 = scmp.lt.u32.totalorder %s1213_s13, %s1371_s5 }
 0x28c   :  { %p1219_p3 = pnand %p1217_p2, %p1214_p1 }
 0x28e   :  { %1222 = shalt.err (!%p1219_p3)
}
 0x28f   :  { %771 = dma.vmem_to_hbm [thread:$0]  %s769_s9, 32, %s1371_s5, [#allocation4]  }
 0x290   :  { %1227 = dma.done.wait [#allocation4], 32  }
 0x291   :  { %1228 = vsyncadd [#allocation4], 4294967264 }
 0x292   :  { %775 = vsyncpa [#allocation3], 1 }
 0x293   :  { %776 = vsyncpa [#allocation6], 1 }
 0x294   :  { %777 = vsyncpa [#allocation4], 1 }

</bundles_post_ra>
